<compile_context>
chip_gen: v7x
topology: tpu7x:2x2x1
jax: 0.10.0
libtpu: 0.0.40
codegen_flags: <defaults>
</compile_context>

<pallas_src>
import jax
import jax.numpy as jnp
from jax import lax
from jax.experimental import pallas as pl
from jax.experimental.pallas import tpu as pltpu

CONTEXT_DIM = 15
MARKET_DIM = 32
ROUTING_DIM = 55
INPUT_DIM = CONTEXT_DIM + MARKET_DIM + ROUTING_DIM   # 102
PADDED_INPUT_DIM = 128                               # lane-aligned K for layer 1
HIDDEN_DIMS = (256, 128, 64)
LN_EPS = 1e-5  # PyTorch nn.LayerNorm default


def _round_up(n, m):
    return ((n + m - 1) // m) * m


# ---------------------------------------------------------------------------
# Kernel
# ---------------------------------------------------------------------------
def _critic_kernel(x_ref,
                   w1_ref, b1_ref,
                   w2_ref, b2_ref,
                   w3_ref, b3_ref,
                   w4_ref, b4_ref,
                   o_ref):
    """Full MLP forward for one batch tile, entirely in VMEM.

    Matmuls feed the MXU with bf16 operands (f32 accumulation); all
    elementwise / LayerNorm math stays in f32 on the VPU.  gamma/beta of each
    LayerNorm are pre-folded into the following layer's weights, so the LN
    epilogue is a plain per-row scale/shift.
    """

    def layer(h_bf16, w_ref, b_ref):
        # Linear on the MXU: bf16 operands, f32 accumulation, f32 bias add.
        z = jnp.dot(h_bf16, w_ref[...], preferred_element_type=jnp.float32) + b_ref[...]
        # ReLU
        z = jnp.maximum(z, 0.0)
        # One-pass LayerNorm statistics (biased variance, torch-style):
        #   var = E[z^2] - mu^2   (z >= 0 post-ReLU, cancellation risk is low)
        inv_n = 1.0 / z.shape[-1]
        mu = jnp.sum(z, axis=-1, keepdims=True) * inv_n
        ez2 = jnp.sum(z * z, axis=-1, keepdims=True) * inv_n
        var = jnp.maximum(ez2 - mu * mu, 0.0)
        # Per-row scale/shift epilogue (gamma/beta already folded downstream).
        a = lax.rsqrt(var + LN_EPS)            # (bm, 1)
        c = -mu * a                            # (bm, 1)
        return (z * a + c).astype(jnp.bfloat16)

    h = x_ref[...]                             # (bm, 128) bf16 (cast in wrapper)
    h = layer(h, w1_ref, b1_ref)               # (bm, 256) bf16
    h = layer(h, w2_ref, b2_ref)               # (bm, 128) bf16
    h = layer(h, w3_ref, b3_ref)               # (bm, 64)  bf16

    # Value head Linear(64 -> 1) (g3/beta3 already folded into w4/b4): computed
    # as (1,64) x (bm,64)^T so the result is a lane-dense (1, bm) row and the
    # output store uses full 128-lane vregs.
    v = lax.dot_general(w4_ref[...], h,
                        dimension_numbers=(((1,), (1,)), ((), ())),
                        preferred_element_type=jnp.float32)        # (1, bm)
    o_ref[...] = (v + b4_ref[...]).astype(o_ref.dtype)


# ---------------------------------------------------------------------------
# Parameter folding (wrapper-side, f32)
# ---------------------------------------------------------------------------
def _fold_params(params):
    """Fold each LayerNorm's gamma/beta into the next Linear's weights/bias.

      W'_{l+1} = diag(g_l) @ W_{l+1},   b'_{l+1} = beta_l @ W_{l+1} + b_{l+1}

    Mathematically identical to applying the affine LN epilogue explicitly
    (up to where bf16 rounding is applied).  Returns f32 (w, b) pairs.
    """
    w1, b1 = params["w1"], params["b1"]
    w2 = params["w2"] * params["g1"].reshape(-1, 1)
    b2 = params["beta1"] @ params["w2"] + params["b2"]
    w3 = params["w3"] * params["g2"].reshape(-1, 1)
    b3 = params["beta2"] @ params["w3"] + params["b3"]
    w4 = params["w4"] * params["g3"].reshape(-1, 1)
    b4 = params["beta3"] @ params["w4"] + params["b4"]
    return (w1, b1), (w2, b2), (w3, b3), (w4, b4)


# ---------------------------------------------------------------------------
# Wrapper
# ---------------------------------------------------------------------------
def critic_forward(x, params, *, block_m=1024):
    """Runs the centralized-critic MLP as a single Pallas kernel.

    Args:
      x: [B, 102] float32 combined state (context + market + routing).
      params: dict of weights (see init_params).
      block_m: max batch tile size; must be a multiple of 128 when the batch
        is tiled.

    Returns:
      [B, 1] float32 state-value estimates.
    """
    B, D = x.shape
    assert D == INPUT_DIM

    # ---- choose the batch tile & pad the batch ---------------------------
    if B < 256:
        bm = _round_up(B, 8)                    # single tile, sublane-aligned
    else:
        assert block_m % 128 == 0, "block_m must be a multiple of 128 when tiling"
        # At least two batch tiles so the "parallel" grid axis can shard
        # across both TensorCores on v7x; tiles are multiples of 128.
        half = _round_up(pl.cdiv(B, 2), 128)
        bm = min(block_m, half)
    B_pad = _round_up(B, bm)
    grid = B_pad // bm

    # ---- pad input: batch -> B_pad, features 102 -> 128; cast to bf16 ----
    # (single fused producer; x is only ever consumed by a bf16 MXU op)
    x_pad = jnp.pad(x.astype(jnp.bfloat16),
                    ((0, B_pad - B), (0, PADDED_INPUT_DIM - D)))

    # ---- prepare parameters: fold LN affines, bf16 MXU weights -----------
    (w1f, b1f), (w2f, b2f), (w3f, b3f), (w4f, b4f) = _fold_params(params)
    w1 = jnp.pad(w1f, ((0, PADDED_INPUT_DIM - INPUT_DIM), (0, 0))).astype(jnp.bfloat16)
    w2 = w2f.astype(jnp.bfloat16)
    w3 = w3f.astype(jnp.bfloat16)
    w4t = jnp.transpose(w4f).astype(jnp.bfloat16)          # (1, 64)

    flat = [w1, b1f, w2, b2f, w3, b3f, w4t, b4f]

    def resident(arr):
        ndim = arr.ndim
        # Whole array resident in VMEM for every grid step (constant index).
        return pl.BlockSpec(arr.shape, lambda i: (0,) * ndim)

    in_specs = [pl.BlockSpec((bm, PADDED_INPUT_DIM), lambda i: (i, 0))]
    in_specs += [resident(a) for a in flat]
    out_specs = pl.BlockSpec((1, bm), lambda i: (0, i))     # lane-dense output row

    # Advisory cost estimate so XLA can schedule this custom call sensibly.
    flops = 2 * B_pad * (PADDED_INPUT_DIM * 256 + 256 * 128 + 128 * 64 + 64)
    bytes_accessed = (int(x_pad.size) * 2
                      + sum(int(a.size) * a.dtype.itemsize for a in flat)
                      + B_pad * 4)
    cost = pl.CostEstimate(flops=flops, transcendentals=3 * B_pad,
                           bytes_accessed=bytes_accessed)

    out = pl.pallas_call(
        _critic_kernel,
        out_shape=jax.ShapeDtypeStruct((1, B_pad), jnp.float32),
        grid=(grid,),
        in_specs=in_specs,
        out_specs=out_specs,
        compiler_params=pltpu.CompilerParams(
            dimension_semantics=("parallel",)),
        cost_estimate=cost,
    )(x_pad, *flat)

    # (1, B_pad) -> (B, 1): drop padded rows, restore the module's layout.
    return out.reshape(B_pad, 1)[:B]


# ---------------------------------------------------------------------------
# Parameter init (mirrors the PyTorch module)
# ---------------------------------------------------------------------------
def init_params(key):
    """Orthogonal linear weights (gain=1), zero biases, LN gamma=1, beta=0.
    Linear weights are stored as [in, out] (transposed vs torch's [out, in])."""
    dims = (INPUT_DIM,) + HIDDEN_DIMS + (1,)
    orth = jax.nn.initializers.orthogonal(scale=1.0)
    params = {}
    keys = jax.random.split(key, len(dims) - 1)
    for i, (din, dout) in enumerate(zip(dims[:-1], dims[1:]), start=1):
        w_torch = orth(keys[i - 1], (dout, din), jnp.float32)
        params[f"w{i}"] = jnp.transpose(w_torch)            # [in, out]
        params[f"b{i}"] = jnp.zeros((1, dout), jnp.float32)
        if i <= len(HIDDEN_DIMS):
            params[f"g{i}"] = jnp.ones((1, dout), jnp.float32)
            params[f"beta{i}"] = jnp.zeros((1, dout), jnp.float32)
    return params


# ---------------------------------------------------------------------------
# References
# ---------------------------------------------------------------------------
def _reference_forward_f32(x, params):
    """Pure f32 reference matching the PyTorch module numerics exactly
    (two-pass LayerNorm, explicit gamma/beta)."""
    h = x
    for i in range(1, 4):
        z = jnp.dot(h, params[f"w{i}"], precision=lax.Precision.HIGHEST) + params[f"b{i}"]
        z = jnp.maximum(z, 0.0)
        mu = jnp.mean(z, axis=-1, keepdims=True)
        var = jnp.mean((z - mu) ** 2, axis=-1, keepdims=True)
        h = (z - mu) / jnp.sqrt(var + LN_EPS) * params[f"g{i}"] + params[f"beta{i}"]
    return jnp.dot(h, params["w4"], precision=lax.Precision.HIGHEST) + params["b4"]


def _reference_forward_mirror(x, params):
    """Reference mirroring the kernel's exact math: LN affines folded into the
    next layer, bf16 MXU operands, f32 accumulation, one-pass LN statistics,
    scale/shift epilogue, bf16 cast between layers."""
    folded = _fold_params(params)
    h = x.astype(jnp.bfloat16)
    for (w, b) in folded[:3]:
        z = jnp.dot(h, w.astype(jnp.bfloat16),
                    preferred_element_type=jnp.float32) + b
        z = jnp.maximum(z, 0.0)
        inv_n = 1.0 / z.shape[-1]
        mu = jnp.sum(z, axis=-1, keepdims=True) * inv_n
        ez2 = jnp.sum(z * z, axis=-1, keepdims=True) * inv_n
        var = jnp.maximum(ez2 - mu * mu, 0.0)
        a = lax.rsqrt(var + LN_EPS)
        c = -mu * a
        h = (z * a + c).astype(jnp.bfloat16)
    w4, b4 = folded[3]
    return jnp.dot(h, w4.astype(jnp.bfloat16),
                   preferred_element_type=jnp.float32) + b4


# ---------------------------------------------------------------------------
# Demo / self-check
# ---------------------------------------------------------------------------
if __name__ == "__main__":
    key = jax.random.PRNGKey(0)
    pkey, xkey, gkey, bkey = jax.random.split(key, 4)

    params = init_params(pkey)

    # Small demo batch; deliberately not a multiple of 8/128 to exercise the
    # wrapper-side batch padding and the >=2-tile grid selection.
    batch = 300
    # combined_state = [execution_context(15) | market_features(32) | routing_state(55)]
    combined_state = jax.random.normal(xkey, (batch, INPUT_DIM), dtype=jnp.float32)

    # Default path: bm=256, grid=2 (both v7x TensorCores busy).
    values = jax.block_until_ready(critic_forward(combined_state, params))
    assert values.shape == (batch, 1)
    # Smaller tile: bm=128, grid=3 (exercises the pipeline at a different tiling).
    values_t128 = jax.block_until_ready(critic_forward(combined_state, params, block_m=128))
    # Single-tile path (B < 256).
    values_small = jax.block_until_ready(critic_forward(combined_state[:100], params))

    ref_mirror = _reference_forward_mirror(combined_state, params)
    ref_f32 = _reference_forward_f32(combined_state, params)

    # Tight functional check against the dtype-mirrored reference.
    err_mirror = float(jnp.max(jnp.abs(values - ref_mirror)))
    assert jnp.allclose(values, ref_mirror, atol=2e-3, rtol=2e-3), (
        f"mismatch vs mirrored reference: max abs err {err_mirror}")
    # Loose sanity check against exact-f32 PyTorch-equivalent numerics
    # (difference is purely the intentional bf16 rounding at the MXU operands).
    err_f32 = float(jnp.max(jnp.abs(values - ref_f32)))
    assert jnp.allclose(values, ref_f32, atol=1e-1, rtol=1e-1), (
        f"mismatch vs f32 reference: max abs err {err_f32}")
    # Tiling must not change results (per-row math is tile-size independent).
    assert jnp.allclose(values, values_t128, atol=1e-5, rtol=1e-5)
    assert jnp.allclose(values[:100], values_small, atol=1e-5, rtol=1e-5)

    # Exercise the gamma/beta -> next-layer weight fold with non-trivial LN
    # affines (as after training); the mirror reference applies the same fold.
    params_t = dict(params)
    for i, dout in enumerate(HIDDEN_DIMS, start=1):
        kg, kb, gkey, bkey = jax.random.split(jax.random.fold_in(gkey, i), 4)
        params_t[f"g{i}"] = 1.0 + 0.1 * jax.random.normal(kg, (1, dout), jnp.float32)
        params_t[f"beta{i}"] = 0.1 * jax.random.normal(kb, (1, dout), jnp.float32)
    values_t = jax.block_until_ready(critic_forward(combined_state, params_t))
    ref_mirror_t = _reference_forward_mirror(combined_state, params_t)
    ref_f32_t = _reference_forward_f32(combined_state, params_t)
    assert jnp.allclose(values_t, ref_mirror_t, atol=2e-3, rtol=2e-3), (
        f"fold mismatch vs mirror: {float(jnp.max(jnp.abs(values_t - ref_mirror_t)))}")
    assert jnp.allclose(values_t, ref_f32_t, atol=1e-1, rtol=1e-1), (
        f"fold mismatch vs f32: {float(jnp.max(jnp.abs(values_t - ref_f32_t)))}")

    print("KERNEL_OK")
</pallas_src>

<mosaic_0001>
module attributes {stable_mosaic.version = 11 : i64} {
  func.func @_critic_kernel(%arg0: i32, %arg1: memref<256x128xbf16, #tpu.memory_space<vmem>>, %arg2: memref<128x256xbf16, #tpu.memory_space<vmem>>, %arg3: memref<1x256xf32, #tpu.memory_space<vmem>>, %arg4: memref<256x128xbf16, #tpu.memory_space<vmem>>, %arg5: memref<1x128xf32, #tpu.memory_space<vmem>>, %arg6: memref<128x64xbf16, #tpu.memory_space<vmem>>, %arg7: memref<1x64xf32, #tpu.memory_space<vmem>>, %arg8: memref<1x64xbf16, #tpu.memory_space<vmem>>, %arg9: memref<1x1xf32, #tpu.memory_space<vmem>>, %arg10: memref<1x256xf32, #tpu.memory_space<vmem>>) attributes {dimension_semantics = [#tpu.dimension_semantics<parallel>], iteration_bounds = array<i64: 2>, scalar_prefetch = 0 : i64, scratch_operands = 0 : i64, tpu.core_type = #tpu.core_type<tc>, window_params = [{transform_indices = @transform_0, window_bounds = array<i64: 256, 128>}, {pipeline_mode = #tpu.pipeline_mode<synchronous>, transform_indices = @transform_1, window_bounds = array<i64: 128, 256>}, {pipeline_mode = #tpu.pipeline_mode<synchronous>, transform_indices = @transform_2, window_bounds = array<i64: 1, 256>}, {pipeline_mode = #tpu.pipeline_mode<synchronous>, transform_indices = @transform_3, window_bounds = array<i64: 256, 128>}, {pipeline_mode = #tpu.pipeline_mode<synchronous>, transform_indices = @transform_4, window_bounds = array<i64: 1, 128>}, {pipeline_mode = #tpu.pipeline_mode<synchronous>, transform_indices = @transform_5, window_bounds = array<i64: 128, 64>}, {pipeline_mode = #tpu.pipeline_mode<synchronous>, transform_indices = @transform_6, window_bounds = array<i64: 1, 64>}, {pipeline_mode = #tpu.pipeline_mode<synchronous>, transform_indices = @transform_7, window_bounds = array<i64: 1, 64>}, {pipeline_mode = #tpu.pipeline_mode<synchronous>, transform_indices = @transform_8, window_bounds = array<i64: 1, 1>}, {transform_indices = @transform_9, window_bounds = array<i64: 1, 256>}]} {
    %c0 = arith.constant 0 : index
    %c0_0 = arith.constant 0 : index
    %0 = vector.load %arg1[%c0, %c0_0] : memref<256x128xbf16, #tpu.memory_space<vmem>>, vector<256x128xbf16>
    %c0_1 = arith.constant 0 : index
    %c0_2 = arith.constant 0 : index
    %1 = vector.load %arg2[%c0_1, %c0_2] : memref<128x256xbf16, #tpu.memory_space<vmem>>, vector<128x256xbf16>
    %cst = arith.constant dense<0.000000e+00> : vector<256x256xf32>
    %2 = tpu.matmul %0, %1, %cst {dimension_numbers = #tpu.dot_dimension_numbers<[1], [0], [0], [1], [0, 0, 1, 1], [], []>} : vector<256x128xbf16>, vector<128x256xbf16>, vector<256x256xf32> -> vector<256x256xf32>
    %c0_3 = arith.constant 0 : index
    %c0_4 = arith.constant 0 : index
    %3 = vector.load %arg3[%c0_3, %c0_4] : memref<1x256xf32, #tpu.memory_space<vmem>>, vector<1x256xf32>
    %4 = vector.broadcast %3 : vector<1x256xf32> to vector<256x256xf32>
    %5 = arith.addf %2, %4 : vector<256x256xf32>
    %cst_5 = arith.constant 0.000000e+00 : f32
    %6 = vector.broadcast %cst_5 : f32 to vector<256x256xf32>
    %7 = arith.maximumf %5, %6 : vector<256x256xf32>
    %cst_6 = arith.constant dense<0.000000e+00> : vector<256xf32>
    %8 = vector.multi_reduction <add>, %7, %cst_6 [1] : vector<256x256xf32> to vector<256xf32>
    %9 = vector.shape_cast %8 : vector<256xf32> to vector<256x1xf32>
    %cst_7 = arith.constant 3.906250e-03 : f32
    %10 = vector.broadcast %cst_7 : f32 to vector<256x1xf32>
    %11 = arith.mulf %9, %10 : vector<256x1xf32>
    %12 = arith.mulf %7, %7 : vector<256x256xf32>
    %cst_8 = arith.constant dense<0.000000e+00> : vector<256xf32>
    %13 = vector.multi_reduction <add>, %12, %cst_8 [1] : vector<256x256xf32> to vector<256xf32>
    %14 = vector.shape_cast %13 : vector<256xf32> to vector<256x1xf32>
    %cst_9 = arith.constant 3.906250e-03 : f32
    %15 = vector.broadcast %cst_9 : f32 to vector<256x1xf32>
    %16 = arith.mulf %14, %15 : vector<256x1xf32>
    %17 = arith.mulf %11, %11 : vector<256x1xf32>
    %18 = arith.subf %16, %17 : vector<256x1xf32>
    %cst_10 = arith.constant 0.000000e+00 : f32
    %19 = vector.broadcast %cst_10 : f32 to vector<256x1xf32>
    %20 = arith.maximumf %18, %19 : vector<256x1xf32>
    %cst_11 = arith.constant 9.99999974E-6 : f32
    %21 = vector.broadcast %cst_11 : f32 to vector<256x1xf32>
    %22 = arith.addf %20, %21 : vector<256x1xf32>
    %23 = math.rsqrt %22 : vector<256x1xf32>
    %cst_12 = arith.constant 0.000000e+00 : f32
    %24 = vector.broadcast %cst_12 : f32 to vector<256x1xf32>
    %25 = arith.subf %24, %11 : vector<256x1xf32>
    %26 = arith.mulf %25, %23 : vector<256x1xf32>
    %27 = vector.broadcast %23 : vector<256x1xf32> to vector<256x256xf32>
    %28 = arith.mulf %7, %27 : vector<256x256xf32>
    %29 = vector.broadcast %26 : vector<256x1xf32> to vector<256x256xf32>
    %30 = arith.addf %28, %29 : vector<256x256xf32>
    %31 = arith.truncf %30 : vector<256x256xf32> to vector<256x256xbf16>
    %c0_13 = arith.constant 0 : index
    %c0_14 = arith.constant 0 : index
    %32 = vector.load %arg4[%c0_13, %c0_14] : memref<256x128xbf16, #tpu.memory_space<vmem>>, vector<256x128xbf16>
    %cst_15 = arith.constant dense<0.000000e+00> : vector<256x128xf32>
    %33 = tpu.matmul %31, %32, %cst_15 {dimension_numbers = #tpu.dot_dimension_numbers<[1], [0], [0], [1], [0, 0, 1, 1], [], []>} : vector<256x256xbf16>, vector<256x128xbf16>, vector<256x128xf32> -> vector<256x128xf32>
    %c0_16 = arith.constant 0 : index
    %c0_17 = arith.constant 0 : index
    %34 = vector.load %arg5[%c0_16, %c0_17] : memref<1x128xf32, #tpu.memory_space<vmem>>, vector<1x128xf32>
    %35 = vector.broadcast %34 : vector<1x128xf32> to vector<256x128xf32>
    %36 = arith.addf %33, %35 : vector<256x128xf32>
    %cst_18 = arith.constant 0.000000e+00 : f32
    %37 = vector.broadcast %cst_18 : f32 to vector<256x128xf32>
    %38 = arith.maximumf %36, %37 : vector<256x128xf32>
    %cst_19 = arith.constant dense<0.000000e+00> : vector<256xf32>
    %39 = vector.multi_reduction <add>, %38, %cst_19 [1] : vector<256x128xf32> to vector<256xf32>
    %40 = vector.shape_cast %39 : vector<256xf32> to vector<256x1xf32>
    %cst_20 = arith.constant 7.812500e-03 : f32
    %41 = vector.broadcast %cst_20 : f32 to vector<256x1xf32>
    %42 = arith.mulf %40, %41 : vector<256x1xf32>
    %43 = arith.mulf %38, %38 : vector<256x128xf32>
    %cst_21 = arith.constant dense<0.000000e+00> : vector<256xf32>
    %44 = vector.multi_reduction <add>, %43, %cst_21 [1] : vector<256x128xf32> to vector<256xf32>
    %45 = vector.shape_cast %44 : vector<256xf32> to vector<256x1xf32>
    %cst_22 = arith.constant 7.812500e-03 : f32
    %46 = vector.broadcast %cst_22 : f32 to vector<256x1xf32>
    %47 = arith.mulf %45, %46 : vector<256x1xf32>
    %48 = arith.mulf %42, %42 : vector<256x1xf32>
    %49 = arith.subf %47, %48 : vector<256x1xf32>
    %cst_23 = arith.constant 0.000000e+00 : f32
    %50 = vector.broadcast %cst_23 : f32 to vector<256x1xf32>
    %51 = arith.maximumf %49, %50 : vector<256x1xf32>
    %cst_24 = arith.constant 9.99999974E-6 : f32
    %52 = vector.broadcast %cst_24 : f32 to vector<256x1xf32>
    %53 = arith.addf %51, %52 : vector<256x1xf32>
    %54 = math.rsqrt %53 : vector<256x1xf32>
    %cst_25 = arith.constant 0.000000e+00 : f32
    %55 = vector.broadcast %cst_25 : f32 to vector<256x1xf32>
    %56 = arith.subf %55, %42 : vector<256x1xf32>
    %57 = arith.mulf %56, %54 : vector<256x1xf32>
    %58 = vector.broadcast %54 : vector<256x1xf32> to vector<256x128xf32>
    %59 = arith.mulf %38, %58 : vector<256x128xf32>
    %60 = vector.broadcast %57 : vector<256x1xf32> to vector<256x128xf32>
    %61 = arith.addf %59, %60 : vector<256x128xf32>
    %62 = arith.truncf %61 : vector<256x128xf32> to vector<256x128xbf16>
    %c0_26 = arith.constant 0 : index
    %c0_27 = arith.constant 0 : index
    %63 = vector.load %arg6[%c0_26, %c0_27] : memref<128x64xbf16, #tpu.memory_space<vmem>>, vector<128x64xbf16>
    %cst_28 = arith.constant dense<0.000000e+00> : vector<256x64xf32>
    %64 = tpu.matmul %62, %63, %cst_28 {dimension_numbers = #tpu.dot_dimension_numbers<[1], [0], [0], [1], [0, 0, 1, 1], [], []>} : vector<256x128xbf16>, vector<128x64xbf16>, vector<256x64xf32> -> vector<256x64xf32>
    %c0_29 = arith.constant 0 : index
    %c0_30 = arith.constant 0 : index
    %65 = vector.load %arg7[%c0_29, %c0_30] : memref<1x64xf32, #tpu.memory_space<vmem>>, vector<1x64xf32>
    %66 = vector.broadcast %65 : vector<1x64xf32> to vector<256x64xf32>
    %67 = arith.addf %64, %66 : vector<256x64xf32>
    %cst_31 = arith.constant 0.000000e+00 : f32
    %68 = vector.broadcast %cst_31 : f32 to vector<256x64xf32>
    %69 = arith.maximumf %67, %68 : vector<256x64xf32>
    %cst_32 = arith.constant dense<0.000000e+00> : vector<256xf32>
    %70 = vector.multi_reduction <add>, %69, %cst_32 [1] : vector<256x64xf32> to vector<256xf32>
    %71 = vector.shape_cast %70 : vector<256xf32> to vector<256x1xf32>
    %cst_33 = arith.constant 1.562500e-02 : f32
    %72 = vector.broadcast %cst_33 : f32 to vector<256x1xf32>
    %73 = arith.mulf %71, %72 : vector<256x1xf32>
    %74 = arith.mulf %69, %69 : vector<256x64xf32>
    %cst_34 = arith.constant dense<0.000000e+00> : vector<256xf32>
    %75 = vector.multi_reduction <add>, %74, %cst_34 [1] : vector<256x64xf32> to vector<256xf32>
    %76 = vector.shape_cast %75 : vector<256xf32> to vector<256x1xf32>
    %cst_35 = arith.constant 1.562500e-02 : f32
    %77 = vector.broadcast %cst_35 : f32 to vector<256x1xf32>
    %78 = arith.mulf %76, %77 : vector<256x1xf32>
    %79 = arith.mulf %73, %73 : vector<256x1xf32>
    %80 = arith.subf %78, %79 : vector<256x1xf32>
    %cst_36 = arith.constant 0.000000e+00 : f32
    %81 = vector.broadcast %cst_36 : f32 to vector<256x1xf32>
    %82 = arith.maximumf %80, %81 : vector<256x1xf32>
    %cst_37 = arith.constant 9.99999974E-6 : f32
    %83 = vector.broadcast %cst_37 : f32 to vector<256x1xf32>
    %84 = arith.addf %82, %83 : vector<256x1xf32>
    %85 = math.rsqrt %84 : vector<256x1xf32>
    %cst_38 = arith.constant 0.000000e+00 : f32
    %86 = vector.broadcast %cst_38 : f32 to vector<256x1xf32>
    %87 = arith.subf %86, %73 : vector<256x1xf32>
    %88 = arith.mulf %87, %85 : vector<256x1xf32>
    %89 = vector.broadcast %85 : vector<256x1xf32> to vector<256x64xf32>
    %90 = arith.mulf %69, %89 : vector<256x64xf32>
    %91 = vector.broadcast %88 : vector<256x1xf32> to vector<256x64xf32>
    %92 = arith.addf %90, %91 : vector<256x64xf32>
    %93 = arith.truncf %92 : vector<256x64xf32> to vector<256x64xbf16>
    %c0_39 = arith.constant 0 : index
    %c0_40 = arith.constant 0 : index
    %94 = vector.load %arg8[%c0_39, %c0_40] : memref<1x64xbf16, #tpu.memory_space<vmem>>, vector<1x64xbf16>
    %cst_41 = arith.constant dense<0.000000e+00> : vector<1x256xf32>
    %95 = tpu.matmul %94, %93, %cst_41 {dimension_numbers = #tpu.dot_dimension_numbers<[1], [1], [0], [0], [0, 0, 1, 0], [], []>} : vector<1x64xbf16>, vector<256x64xbf16>, vector<1x256xf32> -> vector<1x256xf32>
    %c0_42 = arith.constant 0 : index
    %c0_43 = arith.constant 0 : index
    %96 = vector.load %arg9[%c0_42, %c0_43] : memref<1x1xf32, #tpu.memory_space<vmem>>, vector<1x1xf32>
    %97 = vector.broadcast %96 : vector<1x1xf32> to vector<1x256xf32>
    %98 = arith.addf %95, %97 : vector<1x256xf32>
    %c0_44 = arith.constant 0 : index
    %c0_45 = arith.constant 0 : index
    %99 = vector.load %arg10[%c0_44, %c0_45] : memref<1x256xf32, #tpu.memory_space<vmem>>, vector<1x256xf32>
    tpu.vector_store %arg10[%c0_44, %c0_45], %98 {strides = array<i32>} : memref<1x256xf32, #tpu.memory_space<vmem>>, vector<1x256xf32>,
    return
  }
  func.func @transform_0(%arg0: i32) -> (i32, i32) {
    %c0_i32 = arith.constant 0 : i32
    %c0_i32_0 = arith.constant 0 : i32
    return %arg0, %c0_i32 : i32, i32
  }
  func.func @transform_1(%arg0: i32) -> (i32, i32) {
    %c0_i32 = arith.constant 0 : i32
    %c0_i32_0 = arith.constant 0 : i32
    %c0_i32_1 = arith.constant 0 : i32
    return %c0_i32, %c0_i32_0 : i32, i32
  }
  func.func @transform_2(%arg0: i32) -> (i32, i32) {
    %c0_i32 = arith.constant 0 : i32
    %c0_i32_0 = arith.constant 0 : i32
    %c0_i32_1 = arith.constant 0 : i32
    return %c0_i32, %c0_i32_0 : i32, i32
  }
  func.func @transform_3(%arg0: i32) -> (i32, i32) {
    %c0_i32 = arith.constant 0 : i32
    %c0_i32_0 = arith.constant 0 : i32
    %c0_i32_1 = arith.constant 0 : i32
    return %c0_i32, %c0_i32_0 : i32, i32
  }
  func.func @transform_4(%arg0: i32) -> (i32, i32) {
    %c0_i32 = arith.constant 0 : i32
    %c0_i32_0 = arith.constant 0 : i32
    %c0_i32_1 = arith.constant 0 : i32
    return %c0_i32, %c0_i32_0 : i32, i32
  }
  func.func @transform_5(%arg0: i32) -> (i32, i32) {
    %c0_i32 = arith.constant 0 : i32
    %c0_i32_0 = arith.constant 0 : i32
    %c0_i32_1 = arith.constant 0 : i32
    return %c0_i32, %c0_i32_0 : i32, i32
  }
  func.func @transform_6(%arg0: i32) -> (i32, i32) {
    %c0_i32 = arith.constant 0 : i32
    %c0_i32_0 = arith.constant 0 : i32
    %c0_i32_1 = arith.constant 0 : i32
    return %c0_i32, %c0_i32_0 : i32, i32
  }
  func.func @transform_7(%arg0: i32) -> (i32, i32) {
    %c0_i32 = arith.constant 0 : i32
    %c0_i32_0 = arith.constant 0 : i32
    %c0_i32_1 = arith.constant 0 : i32
    return %c0_i32, %c0_i32_0 : i32, i32
  }
  func.func @transform_8(%arg0: i32) -> (i32, i32) {
    %c0_i32 = arith.constant 0 : i32
    %c0_i32_0 = arith.constant 0 : i32
    %c0_i32_1 = arith.constant 0 : i32
    return %c0_i32, %c0_i32_0 : i32, i32
  }
  func.func @transform_9(%arg0: i32) -> (i32, i32) {
    %c0_i32 = arith.constant 0 : i32
    %c0_i32_0 = arith.constant 0 : i32
    return %c0_i32, %arg0 : i32, i32
  }
}

</mosaic_0001>

<bundles_post_ra>
// kernel: tpu_custom_call.1
= control target key start
LH: loop header
LB: loop body
LE: loop exit
PB: predicated region body
PF: predicated region fallthrough
CT: control target
= control target key end

     0   :  { %s6194_s0 = inlined_call_operand.hbm [shape: bf16[512,128], index: 0, kind: input, shape index: {}]   ;;  %s6195_s1 = inlined_call_operand.hbm [shape: bf16[128,256], index: 1, kind: input, shape index: {}]   ;;  %s6196_s2 = inlined_call_operand.vmem [shape: f32[1,256], index: 2, kind: input, shape index: {}]   ;;  %s6197_s3 = inlined_call_operand.hbm [shape: bf16[256,128], index: 3, kind: input, shape index: {}]   ;;  %s6198_s4 = inlined_call_operand.vmem [shape: f32[1,128], index: 4, kind: input, shape index: {}]   ;;  %s6199_s5 = inlined_call_operand.vmem [shape: bf16[128,64], index: 5, kind: input, shape index: {}]   ;;  %s6200_s6 = inlined_call_operand.vmem [shape: f32[1,64], index: 6, kind: input, shape index: {}]   ;;  %s6201_s7 = inlined_call_operand.vmem [shape: bf16[1,64], index: 7, kind: input, shape index: {}]   ;;  %s6202_s8 = inlined_call_operand.<no memory space> [shape: f32[1,1], index: 8, kind: input, shape index: {}]   ;;  %s6203_s9 = inlined_call_operand.hbm [shape: f32[1,512], index: 9, kind: output, shape index: {}]  }
   0x1   :  { %v14_v0 = vstv %s6202_s8 }
   0x2   :  { %15 = vst [vmem:[#allocation2] sm:$0x1] %v14_v0 }
   0x3   :  { %16 = vsyncpa [#allocation4], 0 }
   0x4   :  { %18 = vsyncpa [#allocation4 + $0x1], 0 }
   0x5   :  { %19 = vsyncpa [#allocation7], 0 }
   0x6   :  { %20 = vsyncpa [#allocation5], 0 }
   0x7   :  { %22 = vsyncpa [#allocation5 + $0x1], 0  ;;  %s4365_s11 = smov 0   ;;  %s4367_s12 = smov 0  }
   0x8   :  { %s4369_s13 = smov 0   ;;  %s4371_s14 = smov 0  }
   0x9 LB: > { %s4386_s8 = sadd.s32 4294967295, %s4300_s14   ;;  %s3525_s15 = sadd.s32 4294967294, %s4300_s14   ;;  %s4300_s14 = sphi %s4371_s14, %s6344_s14   ;;  %s4296_s13 = sphi %s4369_s13, %s6343_s13   ;;  %s4292_s12 = sphi %s4367_s12, %s6342_s12   ;;  %s4288_s11 = sphi %s4365_s11, %s6341_s11  }
   0xa   : > { %p48_p0 = scmp.ne.s32.totalorder %s4292_s12, %s4288_s11  ;;  %p6204_p1 = scmp.eq.s32.totalorder %s4386_s8, 0 }
   0xb   : > { %p246_p3 = scmp.eq.s32.totalorder %s3525_s15, 1  ;;  %p3526_p5 = scmp.ge.s32.totalorder %s4300_s14, 1 }
   0xc   : > { %p4395_p4 = por %p6204_p1, %p48_p0  ;;  %p253_p7 = scmp.lt.s32.totalorder %s4300_s14, 3 }
   0xd   : > { %p4400_p6 = por %p246_p3, %p48_p0  ;;  %s4302_s19 = smov [#allocation6]  }
   0xe   : > { %s6248_s16 = scalar_select %p4395_p4, 1, 0 }
   0xf   : > { %s6249_s17 = scalar_select %p4400_p6, 1, 0 }
  0x10   : > { %p4405_p8 = pnand %p3526_p5, %p253_p7  ;;  %s265_s20 = sshll.u32 %s4302_s19, 4  ;;  %s4409_s20 = int_to_ptr.vmem [resolvable:$true] %s265_s20 }
  0x11   : > { %s4303_s22 = smov [#allocation8]   ;;  %s4144_s26 = scalar_lea.hbm %s6195_s1, 2048 }
  0x12   : > { %p3826_p9 = pneg %p4405_p8  ;;  %s281_s23 = sshll.u32 %s4303_s22, 4  ;;  %s4420_s23 = int_to_ptr.vmem [resolvable:$true] %s281_s23 }
  0x13   : > { %p4145_p12 = scmp.ne.s32.totalorder %s6195_s1, %s4144_s26  ;;  %p4151_p5 = scmp.lt.u32.totalorder %s4144_s26, %s6195_s1 }
  0x14   : > { %p4416_p11 = pnand %p3826_p9, %p6204_p1 }
  0x16   : > { %p4146_p13 = pneg %p4416_p11 }
  0x18   : > { %p4147_p0 = pnand %p4146_p13, %p4145_p12 }
  0x1a   : > { %p4148_p3 = pneg %p4147_p0 }
  0x1c   : > { %p4153_p7 = pnand %p4151_p5, %p4148_p3 }
  0x1e   : > { %4156 = shalt.err (!%p4153_p7)
}
  0x1f   : > { %s4157_s10 = scalar_lea.vmem %s4409_s20, 2048  ;;  %p4165_p2 = scmp.lt.s32.totalorder %s4409_s20, %s4409_s20 }
  0x20   : > { %p4158_p9 = scmp.ne.s32.totalorder %s4409_s20, %s4157_s10  ;;  %p4166_p12 = scmp.lt.s32.totalorder %s4157_s10, %s4157_s10 }
  0x22   : > { %p4160_p10 = pnand %p4158_p9, %p4146_p13  ;;  %p4167_p0 = por %p4166_p12, %p4165_p2 }
  0x24   : > { %p4161_p1 = pneg %p4160_p10 }
  0x26   : > { %p4168_p6 = pnand %p4167_p0, %p4161_p1 }
  0x28   : > { %4171 = shalt.err (!%p4168_p6)
}
  0x29   : > { %s4304_s15 = smov 128   ;;  %s4305_s19 = smov 8  }
  0x2a   : > { %3829 = dma.hbm_to_vmem [thread:$0]  (!%p4416_p11), %s6195_s1, 2048, %s4409_s20, [#allocation7], %s4304_s15, %s4304_s15, %s4305_s19  }
  0x2b   : > { %s4172_s27 = scalar_lea.hbm %s6197_s3, 2048 }
  0x2c   : > { %p4173_p2 = scmp.ne.s32.totalorder %s6197_s3, %s4172_s27  ;;  %p4179_p10 = scmp.lt.u32.totalorder %s4172_s27, %s6197_s3 }
  0x2e   : > { %p4175_p1 = pnand %p4173_p2, %p4146_p13 }
  0x30   : > { %p4176_p6 = pneg %p4175_p1 }
  0x32   : > { %p4181_p3 = pnand %p4179_p10, %p4176_p6 }
  0x34   : > { %4184 = shalt.err (!%p4181_p3)
}
  0x35   : > { %s4185_s20 = scalar_lea.vmem %s4420_s23, 2048  ;;  %p4193_p12 = scmp.lt.s32.totalorder %s4420_s23, %s4420_s23 }
  0x36   : > { %p4186_p5 = scmp.ne.s32.totalorder %s4420_s23, %s4185_s20  ;;  %p4194_p0 = scmp.lt.s32.totalorder %s4185_s20, %s4185_s20 }
  0x38   : > { %p4188_p7 = pnand %p4186_p5, %p4146_p13  ;;  %p4195_p2 = por %p4194_p0, %p4193_p12 }
  0x3a   : > { %p4189_p9 = pneg %p4188_p7 }
  0x3c   : > { %p4196_p1 = pnand %p4195_p2, %p4189_p9 }
  0x3e   : > { %4199 = shalt.err (!%p4196_p1)
}
  0x3f   : > { %s6205_s15 = smov 64   ;;  %s6206_s19 = smov 4  }
  0x40   : > { %3832 = dma.hbm_to_vmem [thread:$0]  (!%p4416_p11), %s6197_s3, 2048, %s4420_s23, [#allocation7], %s6205_s15, %s6205_s15, %s6206_s19  }
  0x41   : > { %s4478_s25 = sadd.s32 1, %s4300_s14   ;;  %s35_s27 = sadd.s32 1, %s4296_s13 }
  0x42   : > { %s32_s26 = ssub.s32 %s4300_s14, %s4478_s25  ;;  %p42_p6 = scmp.ne.s32.totalorder %s4296_s13, %s4292_s12 }
  0x43   : > { %p33_p13 = scmp.eq.s32.totalorder %s32_s26, 0  ;;  %p43_p10 = scmp.eq.s32.totalorder %s4300_s14, 0 }
  0x44   : > { %p6252_p5 = scmp.eq.s32.totalorder %s4386_s8, 1  ;;  %p3843_p9 = scmp.lt.s32.totalorder %s4300_s14, 2 }
  0x45   : > { %s4487_s28 = scalar_select %p33_p13, %s4296_s13, %s35_s27  }
  0x46   : > { %p44_p3 = por %p43_p10, %p42_p6  ;;  %p4491_p7 = por %p6252_p5, %p42_p6 }
  0x47   : > { %s310_s29 = sand.u32 1, %s4296_s13   ;;  %s3602_s23 = sshll.u32 %s4300_s14, 11 }
  0x48   : > { %s6253_s21 = scalar_select %p4491_p7, 1, 0 }
  0x49   : > { %s3530_s30 = sshll.u32 %s310_s29, 7  ;;  %s4501_s22 = scalar_lea.hbm %s6194_s0, %s3602_s23 }
  0x4a   : > { %s314_s24 = scalar_lea.vmem [#allocation3], %s3530_s30  ;;  %p4505_p11 = pnand %p3843_p9, %p44_p3 }
  0x4b   : > { %s321_s26 = sshll.u32 %s314_s24, 4  ;;  %s4509_s15 = scalar_lea.sflag [#allocation4], %s310_s29  ;;  %s4503_s26 = int_to_ptr.vmem [resolvable:$true] %s321_s26 }
  0x4c   : > { %s4200_s19 = scalar_lea.hbm %s4501_s22, 2048  ;;  %p4202_p0 = pneg %p4505_p11 }
  0x4d   : > { %p4201_p12 = scmp.ne.s32.totalorder %s4501_s22, %s4200_s19  ;;  %s4205_s10 = scalar_lea.hbm %s6194_s0, 4096 }
  0x4e   : > { %p4206_p13 = scmp.lt.u32.totalorder %s4501_s22, %s6194_s0  ;;  %p4207_p6 = scmp.lt.u32.totalorder %s4205_s10, %s4200_s19 }
  0x4f   : > { %p4203_p2 = pnand %p4202_p0, %p4201_p12  ;;  %p4209_p3 = scmp.lt.u32.totalorder %s4200_s19, %s4501_s22 }
  0x50   : > { %p4208_p10 = por %p4207_p6, %p4206_p13 }
  0x51   : > { %p4204_p1 = pneg %p4203_p2 }
  0x52   : > { %p4210_p5 = por %p4209_p3, %p4208_p10 }
  0x54   : > { %p4211_p9 = pnand %p4210_p5, %p4204_p1 }
  0x56   : > { %4214 = shalt.err (!%p4211_p9)
}
  0x57   : > { %s4215_s29 = scalar_lea.vmem %s4503_s26, 2048  ;;  %s4308_s30 = smov [#allocation3]  }
  0x58   : > { %p4216_p12 = scmp.ne.s32.totalorder %s4503_s26, %s4215_s29  ;;  %s4220_s23 = sshll.u32 %s4308_s30, 4  ;;  %s4221_s23 = int_to_ptr.vmem [resolvable:$false] %s4220_s23 }
  0x59   : > { %s4222_s20 = scalar_lea.vmem %s4221_s23, 4096  ;;  %p4223_p4 = scmp.lt.s32.totalorder %s4503_s26, %s4221_s23 }
  0x5a   : > { %p4218_p2 = pnand %p4216_p12, %p4202_p0  ;;  %p4224_p13 = scmp.lt.s32.totalorder %s4222_s20, %s4215_s29 }
  0x5c   : > { %p4219_p7 = pneg %p4218_p2  ;;  %p4225_p6 = por %p4224_p13, %p4223_p4 }
  0x5e   : > { %p4226_p10 = pnand %p4225_p6, %p4219_p7 }
  0x60   : > { %4229 = shalt.err (!%p4226_p10)
}
  0x61   : > { %s6255_s19 = smov 4   ;;  %s6256_s10 = smov 64  }
  0x62   : > { %3836 = dma.hbm_to_vmem [thread:$0]  (!%p4505_p11), %s4501_s22, 2048, %s4503_s26, %s4509_s15, %s6256_s10, %s6256_s10, %s6255_s19  }
  0x63   : > { %333 = sbr.rel (%p4405_p8) target bundleno = 1701 (0x6a5), region = 56 }
  0x6a   : > { %s4543_s24 = sand.u32 1, %s4292_s12   ;;  %p6257_p4 = scmp.ne.s32.totalorder %s6248_s16, 0 }
  0x6b   : > { %s3534_s29 = sshll.u32 %s4543_s24, 7  ;;  %s336_s30 = scalar_lea.sflag [#allocation4], %s4543_s24 }
  0x6c   : > { %s4547_s23 = scalar_lea.vmem [#allocation3], %s3534_s29 }
  0x6d   : > { %4275 = dma.done.wait (%p6257_p4), %s336_s30, 2048  }
  0x6e   : > { %4277 = vsyncadd (%p6257_p4), %s336_s30, 4294965248  ;;  %p6258_p7 = scmp.eq.s32.totalorder %s4386_s8, 0 }
  0x70   : > { %4279 = dma.done.wait (%p6258_p7), [#allocation7], 4096   ;;  %p6259_p8 = pmov %p6258_p7 }
  0x71   : > { %v4309_v1 = vmov 0   ;;  %v3888_v2 = vld [vmem:[#allocation6 + $0x4] ss:$8 sps:$4 sm:$0xff]   ;;  %v3890_v3 = vld [vmem:[#allocation6] ss:$8 sps:$4 sm:$0xff]   ;;  %v3914_v20 = vld [vmem:[%s4547_s23 + $0x10] sm:$0xff]   ;;  %v6209_v34 = vlaneseq }
  0x72   : > { %4281 = vsyncadd (%p6259_p8), [#allocation7], 4294963200  ;;  %653 = vmatprep.mubr.bf16.mxu0 %v4309_v1  ;;  %3887 = vset.pattern.permute.xlu0 %v4309_v1  ;;  %v3891_v4 = vld [vmem:[#allocation6 + $0x14] ss:$8 sps:$4 sm:$0xff]   ;;  %v3893_v5 = vld [vmem:[#allocation6 + $0x10] ss:$8 sps:$4 sm:$0xff]  }
  0x73   : > { %621 = vmatprep.subr.bf16.mxu0 %v3888_v2  ;;  %v3894_v6 = vld [vmem:[#allocation6 + $0x24] ss:$8 sps:$4 sm:$0xff]   ;;  %v3896_v7 = vld [vmem:[#allocation6 + $0x20] ss:$8 sps:$4 sm:$0xff]   ;;  %v3897_v8 = vld [vmem:[#allocation6 + $0x34] ss:$8 sps:$4 sm:$0xff]  }
  0x74   : > { %622 = vmatpush1.bf16.msra.mxu0 %v3890_v3  ;;  %v3899_v9 = vld [vmem:[#allocation6 + $0x30] ss:$8 sps:$4 sm:$0xff]   ;;  %v3900_v10 = vld [vmem:[#allocation6 + $0x44] ss:$8 sps:$4 sm:$0xff]   ;;  %v3902_v11 = vld [vmem:[#allocation6 + $0x40] ss:$8 sps:$4 sm:$0xff]  }
  0x75   : > { %623 = vmatprep.subr.bf16.mxu0 %v3891_v4  ;;  %v3903_v12 = vld [vmem:[#allocation6 + $0x54] ss:$8 sps:$4 sm:$0xff]   ;;  %v3905_v13 = vld [vmem:[#allocation6 + $0x50] ss:$8 sps:$4 sm:$0xff]   ;;  %v3906_v14 = vld [vmem:[#allocation6 + $0x64] ss:$8 sps:$4 sm:$0xff]  }
  0x76   : > { %v3908_v15 = vld [vmem:[#allocation6 + $0x60] ss:$8 sps:$4 sm:$0xff]   ;;  %v3909_v16 = vld [vmem:[#allocation6 + $0x74] ss:$8 sps:$4 sm:$0xff]   ;;  %v3911_v17 = vld [vmem:[#allocation6 + $0x70] ss:$8 sps:$4 sm:$0xff]  }
  0x77   : > { %v3912_v18 = vld [vmem:[%s4547_s23] sm:$0xff]   ;;  %v3913_v19 = vld [vmem:[%s4547_s23 + $0x8] sm:$0xff]   ;;  %v3915_v21 = vld [vmem:[%s4547_s23 + $0x18] sm:$0xff]   ;;  %v4591_v35 = vshrl.u32 %v6209_v34, 7  ;;  %vm2702_vm0 = vcmask 523264   ;;  %s3537_s16 = sshll.u32 %s4543_s24, 1 }
  0x78   : > { %624 = vmatpush1.bf16.msra.mxu0 %v3893_v5  ;;  %v3916_v22 = vld [vmem:[%s4547_s23 + $0x20] sm:$0xff]   ;;  %v3917_v23 = vld [vmem:[%s4547_s23 + $0x28] sm:$0xff]   ;;  %v3918_v24 = vld [vmem:[%s4547_s23 + $0x30] sm:$0xff]   ;;  %s3603_s18 = sshll.u32 %s4386_s8, 5  ;;  %s381_s15 = scalar_lea.vmem [#allocation9], %s3537_s16 }
  0x79   : > { %625 = vmatprep.subr.bf16.mxu0 %v3894_v6  ;;  %v3919_v25 = vld [vmem:[%s4547_s23 + $0x38] sm:$0xff]   ;;  %v3920_v26 = vld [vmem:[%s4547_s23 + $0x40] sm:$0xff]   ;;  %v3921_v27 = vld [vmem:[%s4547_s23 + $0x48] sm:$0xff]   ;;  %6260 = vst [vmem:[#allocation13_spill] sm:$0xff] %v4591_v35  ;;  %v6210_v36 = vsub.s32 0, %v4591_v35  ;;  %v441_v38 = vsub.s32 1, %v4591_v35  ;;  %s6150_s20 = scalar_lea.hbm %s6203_s9, %s3603_s18 }
  0x7a   : > { %v3922_v28 = vld [vmem:[%s4547_s23 + $0x50] sm:$0xff]   ;;  %v3923_v29 = vld [vmem:[%s4547_s23 + $0x58] sm:$0xff]   ;;  %v3924_v30 = vld [vmem:[%s4547_s23 + $0x60] sm:$0xff]   ;;  %s3436_s22 = sshll.u32 %s381_s15, 4  ;;  %s3422_s19 = scalar_lea.sflag [#allocation5], %s4543_s24  ;;  %s6152_s22 = int_to_ptr.vmem [resolvable:$true] %s3436_s22 }
  0x7b   : > { %v3925_v31 = vld [vmem:[%s4547_s23 + $0x68] sm:$0xff]   ;;  %v3926_v32 = vld [vmem:[%s4547_s23 + $0x70] sm:$0xff]   ;;  %v3927_v33 = vld [vmem:[%s4547_s23 + $0x78] sm:$0xff]   ;;  %s4230_s10 = scalar_lea.vmem %s6152_s22, 32  ;;  %p6338_p0 = scmp.ne.s32.totalorder %s6253_s21, 0 }
  0x7c   : > { %626 = vmatpush1.bf16.msra.mxu0 %v3896_v7  ;;  %v433_v37 = vld [vmem:[%s6196_s2] sm:$0x3]  ;;  %p4231_p11 = scmp.ne.s32.totalorder %s6152_s22, %s4230_s10  ;;  %s4311_s8 = smov [#allocation9]  }
  0x7d   : > { %627 = vmatprep.subr.bf16.mxu0 %v3897_v8  ;;  %v4600_v39 = vrot.slane %v433_v37, %v6210_v36  ;;  %v4602_v40 = vrot.slane %v433_v37, %v441_v38  ;;  %s4234_s29 = sshll.u32 %s4311_s8, 4  ;;  %s4235_s29 = int_to_ptr.vmem [resolvable:$false] %s4234_s29 }
  0x7e   : > { %p4232_p1 = pnand %p4231_p11, %p6338_p0  ;;  %s4236_s30 = scalar_lea.vmem %s4235_s29, 64 }
  0x7f   : > { %p4237_p5 = scmp.lt.s32.totalorder %s6152_s22, %s4235_s29  ;;  %p4238_p9 = scmp.lt.s32.totalorder %s4236_s30, %s4230_s10 }
  0x80   : > { %628 = vmatpush1.bf16.msra.mxu0 %v3899_v9  ;;  %p4233_p3 = pneg %p4232_p1 }
  0x81   : > { %629 = vmatprep.subr.bf16.mxu0 %v3900_v10  ;;  %p4239_p12 = por %p4238_p9, %p4237_p5 }
  0x83   : > { %p4240_p2 = pnand %p4239_p12, %p4233_p3 }
  0x84   : > { %630 = vmatpush1.bf16.msra.mxu0 %v3902_v11 }
  0x85   : > { %631 = vmatprep.subr.bf16.mxu0 %v3903_v12 }
  0x88   : > { %632 = vmatpush1.bf16.msra.mxu0 %v3905_v13 }
  0x89   : > { %633 = vmatprep.subr.bf16.mxu0 %v3906_v14 }
  0x8c   : > { %634 = vmatpush1.bf16.msra.mxu0 %v3908_v15 }
  0x8d   : > { %635 = vmatprep.subr.bf16.mxu0 %v3909_v16 }
  0x90   : > { %636 = vmatpush1.bf16.msra.mxu0 %v3911_v17 }
  0x93   : > { %654 = vmatmul.mubr.bf16.vlgmr.msra.gmra.mrb[0].mxu0 %v3912_v18 }
  0x94   : > { %663 = vmatprep.mubr.bf16.mxu0 %v4309_v1 }
  0x9b   : > { %664 = vmatmul.mubr.bf16.gmra.mrb[4].mxu0 %v3913_v19 }
  0x9c   : > { %673 = vmatprep.mubr.bf16.mxu0 %v4309_v1 }
  0xa3   : > { %674 = vmatmul.mubr.bf16.gmra.mrb[8].mxu0 %v3914_v20 }
  0xa4   : > { %683 = vmatprep.mubr.bf16.mxu0 %v4309_v1 }
  0xab   : > { %684 = vmatmul.mubr.bf16.gmra.mrb[12].mxu0 %v3915_v21 }
  0xac   : > { %693 = vmatprep.mubr.bf16.mxu0 %v4309_v1 }
  0xb3   : > { %694 = vmatmul.mubr.bf16.gmra.mrb[16].mxu0 %v3916_v22 }
  0xb4   : > { %703 = vmatprep.mubr.bf16.mxu0 %v4309_v1 }
  0xbb   : > { %704 = vmatmul.mubr.bf16.gmra.mrb[20].mxu0 %v3917_v23 }
  0xbc   : > { %713 = vmatprep.mubr.bf16.mxu0 %v4309_v1 }
  0xc3   : > { %714 = vmatmul.mubr.bf16.gmra.mrb[24].mxu0 %v3918_v24 }
  0xc4   : > { %723 = vmatprep.mubr.bf16.mxu0 %v4309_v1 }
  0xcb   : > { %724 = vmatmul.mubr.bf16.gmra.mrb[28].mxu0 %v3919_v25 }
  0xcc   : > { %733 = vmatprep.mubr.bf16.mxu0 %v4309_v1 }
  0xd3   : > { %734 = vmatmul.mubr.bf16.gmra.mrb[32].mxu0 %v3920_v26 }
  0xd4   : > { %743 = vmatprep.mubr.bf16.mxu0 %v4309_v1 }
  0xdb   : > { %744 = vmatmul.mubr.bf16.gmra.mrb[36].mxu0 %v3921_v27  ;;  %v3928_v27 = vld [vmem:[#allocation8 + $0x40] sm:$0xff]  }
  0xdc   : > { %753 = vmatprep.mubr.bf16.mxu0 %v4309_v1  ;;  %3604 = vmatprep.subr.bf16.mxu1 %v3928_v27  ;;  %v3936_v27 = vld [vmem:[#allocation8 + $0x60] sm:$0xff]  }
  0xe3   : > { %754 = vmatmul.mubr.bf16.gmra.mrb[40].mxu0 %v3922_v28 }
  0xe4   : > { %763 = vmatprep.mubr.bf16.mxu0 %v4309_v1 }
  0xeb   : > { %764 = vmatmul.mubr.bf16.gmra.mrb[44].mxu0 %v3923_v29  ;;  %v3929_v29 = vld [vmem:[#allocation8] sm:$0xff]  }
  0xec   : > { %773 = vmatprep.mubr.bf16.mxu0 %v4309_v1  ;;  %3605 = vmatpush3.bf16.msra.mxu1 %v3929_v29 }
  0xf3   : > { %774 = vmatmul.mubr.bf16.gmra.mrb[48].mxu0 %v3924_v30 }
  0xf4   : > { %783 = vmatprep.mubr.bf16.mxu0 %v4309_v1 }
  0xfb   : > { %784 = vmatmul.mubr.bf16.gmra.mrb[52].mxu0 %v3925_v31 }
  0xfc   : > { %793 = vmatprep.mubr.bf16.mxu0 %v4309_v1 }
 0x103   : > { %794 = vmatmul.mubr.bf16.gmra.mrb[56].mxu0 %v3926_v32 }
 0x104   : > { %803 = vmatprep.mubr.bf16.mxu0 %v4309_v1 }
 0x10b   : > { %804 = vmatmul.mubr.bf16.gmra.mrb[60].mxu0 %v3927_v33 }
 0x166   : > { %v655_v41 = vpop.f32.mrb[0].mxu0 }
 0x167   : > { %v656_v42 = vadd.f32 %v655_v41, %v4600_v39  ;;  %v657_v43 = vpop.f32.mrb[1].mxu0 }
 0x168   : > { %v658_v44 = vadd.f32 %v657_v43, %v4602_v40  ;;  %v659_v45 = vpop.f32.mrb[2].mxu0  ;;  %v3930_v43 = vld [vmem:[#allocation8 + $0x48] sm:$0xff]  }
 0x169   : > { %v4606_v46 = vmax.f32 %v656_v42, 0.0  ;;  %v660_v47 = vadd.f32 %v659_v45, %v4600_v39  ;;  %v661_v48 = vpop.f32.mrb[3].mxu0  ;;  %3606 = vmatprep.subr.bf16.mxu1 %v3930_v43 }
 0x16a   : > { %v4609_v49 = vmax.f32 %v658_v44, 0.0  ;;  %v662_v50 = vadd.f32 %v661_v48, %v4602_v40 }
 0x16b   : > { %v4612_v51 = vmax.f32 %v660_v47, 0.0  ;;  %v1006_v52 = vmul.f32 %v4606_v46, %v4606_v46  ;;  %v3931_v47 = vld [vmem:[#allocation8 + $0x8] sm:$0xff]  }
 0x16c   : > { %v4616_v53 = vmax.f32 %v662_v50, 0.0  ;;  %v878_v54 = vadd.f32 %v4609_v49, %v4606_v46  ;;  %v1007_v55 = vmul.f32 %v4609_v49, %v4609_v49  ;;  %3607 = vmatpush3.bf16.msra.mxu1 %v3931_v47  ;;  %v3938_v47 = vld [vmem:[#allocation8 + $0x68] sm:$0xff]  }
 0x16d   : > { %v1008_v58 = vmul.f32 %v4612_v51, %v4612_v51 }
 0x16e   : > { %v665_v56 = vpop.f32.mrb[4].mxu0  ;;  %879 = vadd.xlane.f32.xlu0 %v878_v54  ;;  %v1070_v57 = vadd.f32 %v1007_v55, %v1006_v52  ;;  %v1009_v59 = vmul.f32 %v4616_v53, %v4616_v53  ;;  %v881_v0 = vadd.f32 %v4616_v53, %v4612_v51 }
 0x16f   : > { %v666_v60 = vadd.f32 %v665_v56, %v4600_v39  ;;  %v667_v61 = vpop.f32.mrb[5].mxu0 }
 0x170   : > { %v668_v62 = vadd.f32 %v667_v61, %v4602_v40  ;;  %v669_v63 = vpop.f32.mrb[6].mxu0  ;;  %1071 = vadd.xlane.f32.xlu1 %v1070_v57  ;;  %v1073_v6 = vadd.f32 %v1009_v59, %v1008_v58 }
 0x171   : > { %v4630_v1 = vmax.f32 %v666_v60, 0.0  ;;  %v670_v2 = vadd.f32 %v669_v63, %v4600_v39  ;;  %v671_v3 = vpop.f32.mrb[7].mxu0  ;;  %v3932_v60 = vld [vmem:[#allocation8 + $0x50] sm:$0xff]  }
 0x172   : > { %v4633_v4 = vmax.f32 %v668_v62, 0.0  ;;  %v672_v5 = vadd.f32 %v671_v3, %v4602_v40  ;;  %882 = vadd.xlane.f32.xlu0 %v881_v0  ;;  %v3933_v62 = vld [vmem:[#allocation8 + $0x10] sm:$0xff]   ;;  %3608 = vmatprep.subr.bf16.mxu1 %v3932_v60 }
 0x173   : > { %v4636_v7 = vmax.f32 %v670_v2, 0.0  ;;  %v1010_v10 = vmul.f32 %v4630_v1, %v4630_v1  ;;  %3609 = vmatpush3.bf16.msra.mxu1 %v3933_v62 }
 0x174   : > { %v4638_v8 = vmax.f32 %v672_v5, 0.0  ;;  %1074 = vadd.xlane.f32.xlu1 %v1073_v6  ;;  %v884_v9 = vadd.f32 %v4633_v4, %v4630_v1  ;;  %v1011_v11 = vmul.f32 %v4633_v4, %v4633_v4 }
 0x175   : > { %v1012_v14 = vmul.f32 %v4636_v7, %v4636_v7 }
 0x176   : > { %v675_v12 = vpop.f32.mrb[8].mxu0  ;;  %885 = vadd.xlane.f32.xlu0 %v884_v9  ;;  %v887_v13 = vadd.f32 %v4638_v8, %v4636_v7  ;;  %v1013_v15 = vmul.f32 %v4638_v8, %v4638_v8  ;;  %v1076_v20 = vadd.f32 %v1011_v11, %v1010_v10 }
 0x177   : > { %v676_v16 = vadd.f32 %v675_v12, %v4600_v39  ;;  %v677_v17 = vpop.f32.mrb[9].mxu0 }
 0x178   : > { %v678_v18 = vadd.f32 %v677_v17, %v4602_v40  ;;  %v679_v19 = vpop.f32.mrb[10].mxu0  ;;  %888 = vadd.xlane.f32.xlu1 %v887_v13  ;;  %v1079_v26 = vadd.f32 %v1013_v15, %v1012_v14  ;;  %v3934_v13 = vld [vmem:[#allocation8 + $0x58] sm:$0xff]  }
 0x179   : > { %v4654_v21 = vmax.f32 %v676_v16, 0.0  ;;  %v680_v22 = vadd.f32 %v679_v19, %v4600_v39  ;;  %v681_v23 = vpop.f32.mrb[11].mxu0  ;;  %v3935_v17 = vld [vmem:[#allocation8 + $0x18] sm:$0xff]   ;;  %3610 = vmatprep.subr.bf16.mxu1 %v3934_v13 }
 0x17a   : > { %v4657_v24 = vmax.f32 %v678_v18, 0.0  ;;  %v682_v25 = vadd.f32 %v681_v23, %v4602_v40  ;;  %1077 = vadd.xlane.f32.xlu0 %v1076_v20  ;;  %3611 = vmatpush3.bf16.msra.mxu1 %v3935_v17 }
 0x17b   : > { %v4660_v28 = vmax.f32 %v680_v22, 0.0  ;;  %v1014_v32 = vmul.f32 %v4654_v21, %v4654_v21  ;;  %3612 = vmatprep.subr.bf16.mxu1 %v3936_v27  ;;  %v3943_v27 = vld [vmem:[#allocation8 + $0x38] sm:$0xff]  }
 0x17c   : > { %v4662_v30 = vmax.f32 %v682_v25, 0.0  ;;  %1080 = vadd.xlane.f32.xlu1 %v1079_v26  ;;  %v890_v31 = vadd.f32 %v4657_v24, %v4654_v21  ;;  %v1015_v33 = vmul.f32 %v4657_v24, %v4657_v24 }
 0x17d   : > { %v1016_v41 = vmul.f32 %v4660_v28, %v4660_v28 }
 0x17e   : > { %v685_v37 = vpop.f32.mrb[12].mxu0  ;;  %891 = vadd.xlane.f32.xlu0 %v890_v31  ;;  %v893_v38 = vadd.f32 %v4662_v30, %v4660_v28  ;;  %v1017_v42 = vmul.f32 %v4662_v30, %v4662_v30  ;;  %v1082_v52 = vadd.f32 %v1015_v33, %v1014_v32 }
 0x17f   : > { %v686_v44 = vadd.f32 %v685_v37, %v4600_v39  ;;  %v687_v45 = vpop.f32.mrb[13].mxu0  ;;  %v3937_v37 = vld [vmem:[#allocation8 + $0x20] sm:$0xff]  }
 0x180   : > { %v688_v48 = vadd.f32 %v687_v45, %v4602_v40  ;;  %v689_v50 = vpop.f32.mrb[14].mxu0  ;;  %894 = vadd.xlane.f32.xlu1 %v893_v38  ;;  %v1085_v59 = vadd.f32 %v1017_v42, %v1016_v41  ;;  %3613 = vmatpush3.bf16.msra.mxu1 %v3937_v37 }
 0x181   : > { %v4678_v54 = vmax.f32 %v686_v44, 0.0  ;;  %v690_v55 = vadd.f32 %v689_v50, %v4600_v39  ;;  %v691_v56 = vpop.f32.mrb[15].mxu0  ;;  %3614 = vmatprep.subr.bf16.mxu1 %v3938_v47 }
 0x182   : > { %v4681_v57 = vmax.f32 %v688_v48, 0.0  ;;  %v692_v58 = vadd.f32 %v691_v56, %v4602_v40  ;;  %1083 = vadd.xlane.f32.xlu0 %v1082_v52 }
 0x183   : > { %v4684_v61 = vmax.f32 %v690_v55, 0.0  ;;  %v1018_v2 = vmul.f32 %v4678_v54, %v4678_v54  ;;  %v3939_v55 = vld [vmem:[#allocation8 + $0x28] sm:$0xff]  }
 0x184   : > { %v4686_v63 = vmax.f32 %v692_v58, 0.0  ;;  %1086 = vadd.xlane.f32.xlu1 %v1085_v59  ;;  %v896_v0 = vadd.f32 %v4681_v57, %v4678_v54  ;;  %v1019_v3 = vmul.f32 %v4681_v57, %v4681_v57  ;;  %3615 = vmatpush3.bf16.msra.mxu1 %v3939_v55 }
 0x185   : > { %v1020_v9 = vmul.f32 %v4684_v61, %v4684_v61 }
 0x186   : > { %v695_v5 = vpop.f32.mrb[16].mxu0  ;;  %897 = vadd.xlane.f32.xlu0 %v896_v0  ;;  %v899_v6 = vadd.f32 %v4686_v63, %v4684_v61  ;;  %v1021_v10 = vmul.f32 %v4686_v63, %v4686_v63  ;;  %v1088_v16 = vadd.f32 %v1019_v3, %v1018_v2  ;;  %v3940_v3 = vld [vmem:[#allocation8 + $0x70] sm:$0xff]  }
 0x187   : > { %v696_v11 = vadd.f32 %v695_v5, %v4600_v39  ;;  %v697_v12 = vpop.f32.mrb[17].mxu0  ;;  %3616 = vmatprep.subr.bf16.mxu1 %v3940_v3 }
 0x188   : > { %v698_v14 = vadd.f32 %v697_v12, %v4602_v40  ;;  %v699_v15 = vpop.f32.mrb[18].mxu0  ;;  %900 = vadd.xlane.f32.xlu1 %v899_v6  ;;  %v1091_v25 = vadd.f32 %v1021_v10, %v1020_v9 }
 0x189   : > { %v4702_v18 = vmax.f32 %v696_v11, 0.0  ;;  %v700_v19 = vadd.f32 %v699_v15, %v4600_v39  ;;  %v701_v20 = vpop.f32.mrb[19].mxu0  ;;  %v3941_v11 = vld [vmem:[#allocation8 + $0x30] sm:$0xff]  }
 0x18a   : > { %v4705_v22 = vmax.f32 %v698_v14, 0.0  ;;  %v702_v23 = vadd.f32 %v701_v20, %v4602_v40  ;;  %1089 = vadd.xlane.f32.xlu0 %v1088_v16  ;;  %3617 = vmatpush3.bf16.msra.mxu1 %v3941_v11 }
 0x18b   : > { %v4708_v26 = vmax.f32 %v700_v19, 0.0  ;;  %v1022_v32 = vmul.f32 %v4702_v18, %v4702_v18  ;;  %v3942_v19 = vld [vmem:[#allocation8 + $0x78] sm:$0xff]  }
 0x18c   : > { %v4710_v29 = vmax.f32 %v702_v23, 0.0  ;;  %1092 = vadd.xlane.f32.xlu1 %v1091_v25  ;;  %v902_v31 = vadd.f32 %v4705_v22, %v4702_v18  ;;  %v1023_v33 = vmul.f32 %v4705_v22, %v4705_v22  ;;  %3618 = vmatprep.subr.bf16.mxu1 %v3942_v19 }
 0x18d   : > { %v1024_v42 = vmul.f32 %v4708_v26, %v4708_v26 }
 0x18e   : > { %v705_v38 = vpop.f32.mrb[20].mxu0  ;;  %903 = vadd.xlane.f32.xlu0 %v902_v31  ;;  %v905_v41 = vadd.f32 %v4710_v29, %v4708_v26  ;;  %v1025_v43 = vmul.f32 %v4710_v29, %v4710_v29  ;;  %v1094_v52 = vadd.f32 %v1023_v33, %v1022_v32  ;;  %3619 = vmatpush3.bf16.msra.mxu1 %v3943_v27 }
 0x18f   : > { %v706_v44 = vadd.f32 %v705_v38, %v4600_v39  ;;  %v707_v45 = vpop.f32.mrb[21].mxu0 }
 0x190   : > { %v708_v48 = vadd.f32 %v707_v45, %v4602_v40  ;;  %v709_v50 = vpop.f32.mrb[22].mxu0  ;;  %906 = vadd.xlane.f32.xlu1 %v905_v41  ;;  %v1097_v0 = vadd.f32 %v1025_v43, %v1024_v42 }
 0x191   : > { %v4726_v56 = vmax.f32 %v706_v44, 0.0  ;;  %v710_v58 = vadd.f32 %v709_v50, %v4600_v39  ;;  %v711_v59 = vpop.f32.mrb[23].mxu0 }
 0x192   : > { %v4729_v60 = vmax.f32 %v708_v48, 0.0  ;;  %v712_v62 = vadd.f32 %v711_v59, %v4602_v40  ;;  %1095 = vadd.xlane.f32.xlu0 %v1094_v52 }
 0x193   : > { %v4732_v2 = vmax.f32 %v710_v58, 0.0  ;;  %v1026_v9 = vmul.f32 %v4726_v56, %v4726_v56 }
 0x194   : > { %v4734_v5 = vmax.f32 %v712_v62, 0.0  ;;  %1098 = vadd.xlane.f32.xlu1 %v1097_v0  ;;  %v908_v6 = vadd.f32 %v4729_v60, %v4726_v56  ;;  %v1027_v10 = vmul.f32 %v4729_v60, %v4729_v60 }
 0x195   : > { %v1028_v14 = vmul.f32 %v4732_v2, %v4732_v2 }
 0x196   : > { %v715_v12 = vpop.f32.mrb[24].mxu0  ;;  %909 = vadd.xlane.f32.xlu0 %v908_v6  ;;  %v911_v13 = vadd.f32 %v4734_v5, %v4732_v2  ;;  %v1029_v15 = vmul.f32 %v4734_v5, %v4734_v5  ;;  %v1100_v25 = vadd.f32 %v1027_v10, %v1026_v9 }
 0x197   : > { %v716_v16 = vadd.f32 %v715_v12, %v4600_v39  ;;  %v717_v17 = vpop.f32.mrb[25].mxu0 }
 0x198   : > { %v718_v20 = vadd.f32 %v717_v17, %v4602_v40  ;;  %v719_v23 = vpop.f32.mrb[26].mxu0  ;;  %912 = vadd.xlane.f32.xlu1 %v911_v13  ;;  %v1103_v41 = vadd.f32 %v1029_v15, %v1028_v14 }
 0x199   : > { %v4750_v31 = vmax.f32 %v716_v16, 0.0  ;;  %v720_v32 = vadd.f32 %v719_v23, %v4600_v39  ;;  %v721_v33 = vpop.f32.mrb[27].mxu0 }
 0x19a   : > { %v4753_v37 = vmax.f32 %v718_v20, 0.0  ;;  %v722_v38 = vadd.f32 %v721_v33, %v4602_v40  ;;  %1101 = vadd.xlane.f32.xlu0 %v1100_v25 }
 0x19b   : > { %v4756_v42 = vmax.f32 %v720_v32, 0.0  ;;  %v1030_v45 = vmul.f32 %v4750_v31, %v4750_v31 }
 0x19c   : > { %v4758_v43 = vmax.f32 %v722_v38, 0.0  ;;  %1104 = vadd.xlane.f32.xlu1 %v1103_v41  ;;  %v914_v44 = vadd.f32 %v4753_v37, %v4750_v31  ;;  %v1031_v47 = vmul.f32 %v4753_v37, %v4753_v37 }
 0x19d   : > { %v1032_v52 = vmul.f32 %v4756_v42, %v4756_v42 }
 0x19e   : > { %v725_v48 = vpop.f32.mrb[28].mxu0  ;;  %915 = vadd.xlane.f32.xlu0 %v914_v44  ;;  %v917_v50 = vadd.f32 %v4758_v43, %v4756_v42  ;;  %v1033_v55 = vmul.f32 %v4758_v43, %v4758_v43  ;;  %v1106_v3 = vadd.f32 %v1031_v47, %v1030_v45 }
 0x19f   : > { %v726_v58 = vadd.f32 %v725_v48, %v4600_v39  ;;  %v727_v59 = vpop.f32.mrb[29].mxu0 }
 0x1a0   : > { %v728_v62 = vadd.f32 %v727_v59, %v4602_v40  ;;  %v729_v0 = vpop.f32.mrb[30].mxu0  ;;  %918 = vadd.xlane.f32.xlu1 %v917_v50  ;;  %v1109_v13 = vadd.f32 %v1033_v55, %v1032_v52 }
 0x1a1   : > { %v4774_v6 = vmax.f32 %v726_v58, 0.0  ;;  %v730_v9 = vadd.f32 %v729_v0, %v4600_v39  ;;  %v731_v10 = vpop.f32.mrb[31].mxu0 }
 0x1a2   : > { %v4777_v11 = vmax.f32 %v728_v62, 0.0  ;;  %v732_v12 = vadd.f32 %v731_v10, %v4602_v40  ;;  %1107 = vadd.xlane.f32.xlu0 %v1106_v3 }
 0x1a3   : > { %v4780_v14 = vmax.f32 %v730_v9, 0.0  ;;  %v1034_v17 = vmul.f32 %v4774_v6, %v4774_v6 }
 0x1a4   : > { %v4782_v15 = vmax.f32 %v732_v12, 0.0  ;;  %1110 = vadd.xlane.f32.xlu1 %v1109_v13  ;;  %v920_v16 = vadd.f32 %v4777_v11, %v4774_v6  ;;  %v1035_v19 = vmul.f32 %v4777_v11, %v4777_v11 }
 0x1a5   : > { %v1036_v25 = vmul.f32 %v4780_v14, %v4780_v14 }
 0x1a6   : > { %v735_v20 = vpop.f32.mrb[32].mxu0  ;;  %921 = vadd.xlane.f32.xlu0 %v920_v16  ;;  %v923_v23 = vadd.f32 %v4782_v15, %v4780_v14  ;;  %v1037_v27 = vmul.f32 %v4782_v15, %v4782_v15  ;;  %v1112_v44 = vadd.f32 %v1035_v19, %v1034_v17 }
 0x1a7   : > { %v736_v32 = vadd.f32 %v735_v20, %v4600_v39  ;;  %v737_v33 = vpop.f32.mrb[33].mxu0 }
 0x1a8   : > { %v738_v38 = vadd.f32 %v737_v33, %v4602_v40  ;;  %v739_v41 = vpop.f32.mrb[34].mxu0  ;;  %924 = vadd.xlane.f32.xlu1 %v923_v23  ;;  %v1115_v55 = vadd.f32 %v1037_v27, %v1036_v25 }
 0x1a9   : > { %v4798_v45 = vmax.f32 %v736_v32, 0.0  ;;  %v740_v47 = vadd.f32 %v739_v41, %v4600_v39  ;;  %v741_v48 = vpop.f32.mrb[35].mxu0 }
 0x1aa   : > { %v4801_v50 = vmax.f32 %v738_v38, 0.0  ;;  %v742_v52 = vadd.f32 %v741_v48, %v4602_v40  ;;  %1113 = vadd.xlane.f32.xlu0 %v1112_v44 }
 0x1ab   : > { %v4804_v58 = vmax.f32 %v740_v47, 0.0  ;;  %v1038_v0 = vmul.f32 %v4798_v45, %v4798_v45 }
 0x1ac   : > { %v4806_v59 = vmax.f32 %v742_v52, 0.0  ;;  %1116 = vadd.xlane.f32.xlu1 %v1115_v55  ;;  %v926_v62 = vadd.f32 %v4801_v50, %v4798_v45  ;;  %v1039_v3 = vmul.f32 %v4801_v50, %v4801_v50 }
 0x1ad   : > { %v1040_v12 = vmul.f32 %v4804_v58, %v4804_v58 }
 0x1ae   : > { %v745_v9 = vpop.f32.mrb[36].mxu0  ;;  %927 = vadd.xlane.f32.xlu0 %v926_v62  ;;  %v929_v10 = vadd.f32 %v4806_v59, %v4804_v58  ;;  %v1041_v13 = vmul.f32 %v4806_v59, %v4806_v59  ;;  %v1118_v23 = vadd.f32 %v1039_v3, %v1038_v0 }
 0x1af   : > { %v746_v16 = vadd.f32 %v745_v9, %v4600_v39  ;;  %v747_v17 = vpop.f32.mrb[37].mxu0 }
 0x1b0   : > { %v748_v19 = vadd.f32 %v747_v17, %v4602_v40  ;;  %v749_v20 = vpop.f32.mrb[38].mxu0  ;;  %930 = vadd.xlane.f32.xlu1 %v929_v10  ;;  %v1121_v41 = vadd.f32 %v1041_v13, %v1040_v12 }
 0x1b1   : > { %v4822_v25 = vmax.f32 %v746_v16, 0.0  ;;  %v750_v27 = vadd.f32 %v749_v20, %v4600_v39  ;;  %v751_v32 = vpop.f32.mrb[39].mxu0 }
 0x1b2   : > { %v4825_v33 = vmax.f32 %v748_v19, 0.0  ;;  %v752_v38 = vadd.f32 %v751_v32, %v4602_v40  ;;  %1119 = vadd.xlane.f32.xlu0 %v1118_v23 }
 0x1b3   : > { %6261 = vst [vmem:[#allocation14_spill] sm:$0xff] %v4822_v25  ;;  %v4828_v44 = vmax.f32 %v750_v27, 0.0  ;;  %v1042_v52 = vmul.f32 %v4822_v25, %v4822_v25 }
 0x1b4   : > { %v4830_v47 = vmax.f32 %v752_v38, 0.0  ;;  %1122 = vadd.xlane.f32.xlu1 %v1121_v41  ;;  %v932_v48 = vadd.f32 %v4825_v33, %v4822_v25  ;;  %v1043_v55 = vmul.f32 %v4825_v33, %v4825_v33 }
 0x1b5   : > { %6262 = vst [vmem:[#allocation15_spill] sm:$0xff] %v4828_v44  ;;  %v1044_v3 = vmul.f32 %v4828_v44, %v4828_v44 }
 0x1b6   : > { %6263 = vst [vmem:[#allocation16_spill] sm:$0xff] %v4830_v47  ;;  %v755_v62 = vpop.f32.mrb[40].mxu0  ;;  %933 = vadd.xlane.f32.xlu0 %v932_v48  ;;  %v935_v0 = vadd.f32 %v4830_v47, %v4828_v44  ;;  %v1045_v9 = vmul.f32 %v4830_v47, %v4830_v47  ;;  %v1124_v17 = vadd.f32 %v1043_v55, %v1042_v52 }
 0x1b7   : > { %v756_v10 = vadd.f32 %v755_v62, %v4600_v39  ;;  %v757_v12 = vpop.f32.mrb[41].mxu0 }
 0x1b8   : > { %v758_v13 = vadd.f32 %v757_v12, %v4602_v40  ;;  %v759_v16 = vpop.f32.mrb[42].mxu0  ;;  %936 = vadd.xlane.f32.xlu1 %v935_v0  ;;  %v1127_v38 = vadd.f32 %v1045_v9, %v1044_v3 }
 0x1b9   : > { %v4846_v19 = vmax.f32 %v756_v10, 0.0  ;;  %v760_v20 = vadd.f32 %v759_v16, %v4600_v39  ;;  %v761_v23 = vpop.f32.mrb[43].mxu0 }
 0x1ba   : > { %v4849_v27 = vmax.f32 %v758_v13, 0.0  ;;  %v762_v32 = vadd.f32 %v761_v23, %v4602_v40  ;;  %1125 = vadd.xlane.f32.xlu0 %v1124_v17 }
 0x1bb   : > { %6264 = vst [vmem:[#allocation17_spill] sm:$0xff] %v4846_v19  ;;  %v4852_v41 = vmax.f32 %v760_v20, 0.0  ;;  %v1046_v52 = vmul.f32 %v4846_v19, %v4846_v19 }
 0x1bc   : > { %6265 = vst [vmem:[#allocation18_spill] sm:$0xff] %v4849_v27  ;;  %v4854_v48 = vmax.f32 %v762_v32, 0.0  ;;  %1128 = vadd.xlane.f32.xlu1 %v1127_v38  ;;  %v938_v62 = vadd.f32 %v4849_v27, %v4846_v19  ;;  %v1047_v55 = vmul.f32 %v4849_v27, %v4849_v27 }
 0x1bd   : > { %6266 = vst [vmem:[#allocation19_spill] sm:$0xff] %v4852_v41  ;;  %v1048_v3 = vmul.f32 %v4852_v41, %v4852_v41 }
 0x1be   : > { %6267 = vst [vmem:[#allocation20_spill] sm:$0xff] %v4854_v48  ;;  %v765_v0 = vpop.f32.mrb[44].mxu0  ;;  %939 = vadd.xlane.f32.xlu0 %v938_v62  ;;  %v941_v10 = vadd.f32 %v4854_v48, %v4852_v41  ;;  %v1049_v9 = vmul.f32 %v4854_v48, %v4854_v48  ;;  %v1130_v20 = vadd.f32 %v1047_v55, %v1046_v52 }
 0x1bf   : > { %v766_v12 = vadd.f32 %v765_v0, %v4600_v39  ;;  %v767_v13 = vpop.f32.mrb[45].mxu0 }
 0x1c0   : > { %v768_v16 = vadd.f32 %v767_v13, %v4602_v40  ;;  %v769_v17 = vpop.f32.mrb[46].mxu0  ;;  %942 = vadd.xlane.f32.xlu1 %v941_v10  ;;  %v1133_v36 = vadd.f32 %v1049_v9, %v1048_v3 }
 0x1c1   : > { %v4870_v23 = vmax.f32 %v766_v12, 0.0  ;;  %v770_v32 = vadd.f32 %v769_v17, %v4600_v39  ;;  %v771_v38 = vpop.f32.mrb[47].mxu0 }
 0x1c2   : > { %v4873_v62 = vmax.f32 %v768_v16, 0.0  ;;  %v772_v34 = vadd.f32 %v771_v38, %v4602_v40  ;;  %1131 = vadd.xlane.f32.xlu0 %v1130_v20 }
 0x1c3   : > { %6268 = vst [vmem:[#allocation21_spill] sm:$0xff] %v4870_v23  ;;  %v4876_v35 = vmax.f32 %v770_v32, 0.0  ;;  %v1050_v52 = vmul.f32 %v4870_v23, %v4870_v23 }
 0x1c4   : > { %6269 = vst [vmem:[#allocation22_spill] sm:$0xff] %v4873_v62  ;;  %v4878_v0 = vmax.f32 %v772_v34, 0.0  ;;  %1134 = vadd.xlane.f32.xlu1 %v1133_v36  ;;  %v944_v10 = vadd.f32 %v4873_v62, %v4870_v23  ;;  %v1051_v55 = vmul.f32 %v4873_v62, %v4873_v62 }
 0x1c5   : > { %6270 = vst [vmem:[#allocation23_spill] sm:$0xff] %v4876_v35  ;;  %v1052_v3 = vmul.f32 %v4876_v35, %v4876_v35 }
 0x1c6   : > { %6271 = vst [vmem:[#allocation24_spill] sm:$0xff] %v4878_v0  ;;  %v775_v12 = vpop.f32.mrb[48].mxu0  ;;  %945 = vadd.xlane.f32.xlu0 %v944_v10  ;;  %v947_v13 = vadd.f32 %v4878_v0, %v4876_v35  ;;  %v1053_v34 = vmul.f32 %v4878_v0, %v4878_v0  ;;  %v1136_v20 = vadd.f32 %v1051_v55, %v1050_v52 }
 0x1c7   : > { %v776_v36 = vadd.f32 %v775_v12, %v4600_v39  ;;  %v777_v9 = vpop.f32.mrb[49].mxu0 }
 0x1c8   : > { %v778_v16 = vadd.f32 %v777_v9, %v4602_v40  ;;  %v779_v17 = vpop.f32.mrb[50].mxu0  ;;  %948 = vadd.xlane.f32.xlu1 %v947_v13  ;;  %v1139_v62 = vadd.f32 %v1053_v34, %v1052_v3 }
 0x1c9   : > { %v4894_v32 = vmax.f32 %v776_v36, 0.0  ;;  %v780_v38 = vadd.f32 %v779_v17, %v4600_v39  ;;  %v781_v10 = vpop.f32.mrb[51].mxu0 }
 0x1ca   : > { %v4897_v23 = vmax.f32 %v778_v16, 0.0  ;;  %v782_v35 = vadd.f32 %v781_v10, %v4602_v40  ;;  %1137 = vadd.xlane.f32.xlu0 %v1136_v20 }
 0x1cb   : > { %6272 = vst [vmem:[#allocation25_spill] sm:$0xff] %v4894_v32  ;;  %v4900_v0 = vmax.f32 %v780_v38, 0.0  ;;  %v1054_v52 = vmul.f32 %v4894_v32, %v4894_v32 }
 0x1cc   : > { %6273 = vst [vmem:[#allocation26_spill] sm:$0xff] %v4897_v23  ;;  %v4902_v12 = vmax.f32 %v782_v35, 0.0  ;;  %1140 = vadd.xlane.f32.xlu1 %v1139_v62  ;;  %v950_v13 = vadd.f32 %v4897_v23, %v4894_v32  ;;  %v1055_v55 = vmul.f32 %v4897_v23, %v4897_v23 }
 0x1cd   : > { %6274 = vst [vmem:[#allocation27_spill] sm:$0xff] %v4900_v0  ;;  %v1056_v3 = vmul.f32 %v4900_v0, %v4900_v0 }
 0x1ce   : > { %6275 = vst [vmem:[#allocation28_spill] sm:$0xff] %v4902_v12  ;;  %v785_v36 = vpop.f32.mrb[52].mxu0  ;;  %951 = vadd.xlane.f32.xlu0 %v950_v13  ;;  %v953_v9 = vadd.f32 %v4902_v12, %v4900_v0  ;;  %v1057_v35 = vmul.f32 %v4902_v12, %v4902_v12  ;;  %v1142_v20 = vadd.f32 %v1055_v55, %v1054_v52 }
 0x1cf   : > { %v786_v62 = vadd.f32 %v785_v36, %v4600_v39  ;;  %v787_v34 = vpop.f32.mrb[53].mxu0 }
 0x1d0   : > { %v788_v16 = vadd.f32 %v787_v34, %v4602_v40  ;;  %v789_v17 = vpop.f32.mrb[54].mxu0  ;;  %954 = vadd.xlane.f32.xlu1 %v953_v9  ;;  %v1145_v23 = vadd.f32 %v1057_v35, %v1056_v3 }
 0x1d1   : > { %v4918_v38 = vmax.f32 %v786_v62, 0.0  ;;  %v790_v10 = vadd.f32 %v789_v17, %v4600_v39  ;;  %v791_v13 = vpop.f32.mrb[55].mxu0 }
 0x1d2   : > { %v4921_v32 = vmax.f32 %v788_v16, 0.0  ;;  %v792_v0 = vadd.f32 %v791_v13, %v4602_v40  ;;  %1143 = vadd.xlane.f32.xlu0 %v1142_v20 }
 0x1d3   : > { %6276 = vst [vmem:[#allocation29_spill] sm:$0xff] %v4918_v38  ;;  %v4924_v12 = vmax.f32 %v790_v10, 0.0  ;;  %v1058_v52 = vmul.f32 %v4918_v38, %v4918_v38 }
 0x1d4   : > { %6277 = vst [vmem:[#allocation30_spill] sm:$0xff] %v4921_v32  ;;  %v4926_v36 = vmax.f32 %v792_v0, 0.0  ;;  %1146 = vadd.xlane.f32.xlu1 %v1145_v23  ;;  %v956_v9 = vadd.f32 %v4921_v32, %v4918_v38  ;;  %v1059_v55 = vmul.f32 %v4921_v32, %v4921_v32 }
 0x1d5   : > { %6278 = vst [vmem:[#allocation31_spill] sm:$0xff] %v4924_v12  ;;  %v1060_v3 = vmul.f32 %v4924_v12, %v4924_v12 }
 0x1d6   : > { %6279 = vst [vmem:[#allocation32_spill] sm:$0xff] %v4926_v36  ;;  %v795_v62 = vpop.f32.mrb[56].mxu0  ;;  %957 = vadd.xlane.f32.xlu0 %v956_v9  ;;  %v959_v34 = vadd.f32 %v4926_v36, %v4924_v12  ;;  %v1061_v23 = vmul.f32 %v4926_v36, %v4926_v36  ;;  %v1148_v20 = vadd.f32 %v1059_v55, %v1058_v52 }
 0x1d7   : > { %v796_v0 = vadd.f32 %v795_v62, %v4600_v39  ;;  %v797_v35 = vpop.f32.mrb[57].mxu0 }
 0x1d8   : > { %v798_v16 = vadd.f32 %v797_v35, %v4602_v40  ;;  %v799_v17 = vpop.f32.mrb[58].mxu0  ;;  %960 = vadd.xlane.f32.xlu1 %v959_v34  ;;  %v1151_v32 = vadd.f32 %v1061_v23, %v1060_v3 }
 0x1d9   : > { %v4942_v10 = vmax.f32 %v796_v0, 0.0  ;;  %v800_v13 = vadd.f32 %v799_v17, %v4600_v39  ;;  %v801_v9 = vpop.f32.mrb[59].mxu0 }
 0x1da   : > { %v4945_v38 = vmax.f32 %v798_v16, 0.0  ;;  %v802_v12 = vadd.f32 %v801_v9, %v4602_v40  ;;  %1149 = vadd.xlane.f32.xlu0 %v1148_v20 }
 0x1db   : > { %6280 = vst [vmem:[#allocation33_spill] sm:$0xff] %v4942_v10  ;;  %v4948_v36 = vmax.f32 %v800_v13, 0.0  ;;  %v1062_v62 = vmul.f32 %v4942_v10, %v4942_v10 }
 0x1dc   : > { %6281 = vst [vmem:[#allocation34_spill] sm:$0xff] %v4945_v38  ;;  %v4952_v35 = vmax.f32 %v802_v12, 0.0  ;;  %1152 = vadd.xlane.f32.xlu1 %v1151_v32  ;;  %v962_v52 = vadd.f32 %v4945_v38, %v4942_v10  ;;  %v1063_v55 = vmul.f32 %v4945_v38, %v4945_v38 }
 0x1dd   : > { %6282 = vst [vmem:[#allocation35_spill] sm:$0xff] %v4948_v36  ;;  %v1064_v34 = vmul.f32 %v4948_v36, %v4948_v36 }
 0x1de   : > { %6283 = vst [vmem:[#allocation36_spill] sm:$0xff] %v4952_v35  ;;  %v805_v0 = vpop.f32.mrb[60].mxu0  ;;  %963 = vadd.xlane.f32.xlu0 %v962_v52  ;;  %v965_v3 = vadd.f32 %v4952_v35, %v4948_v36  ;;  %v1154_v23 = vadd.f32 %v1063_v55, %v1062_v62  ;;  %v1065_v12 = vmul.f32 %v4952_v35, %v4952_v35 }
 0x1df   : > { %v806_v32 = vadd.f32 %v805_v0, %v4600_v39  ;;  %v807_v16 = vpop.f32.mrb[61].mxu0 }
 0x1e0   : > { %v808_v17 = vadd.f32 %v807_v16, %v4602_v40  ;;  %v809_v20 = vpop.f32.mrb[62].mxu0  ;;  %966 = vadd.xlane.f32.xlu1 %v965_v3  ;;  %v1157_v13 = vadd.f32 %v1065_v12, %v1064_v34 }
 0x1e1   : > { %v4966_v9 = vmax.f32 %v806_v32, 0.0  ;;  %v810_v10 = vadd.f32 %v809_v20, %v4600_v39  ;;  %v811_v52 = vpop.f32.mrb[63].mxu0 }
 0x1e2   : > { %v4969_v38 = vmax.f32 %v808_v17, 0.0  ;;  %v812_v62 = vadd.f32 %v811_v52, %v4602_v40  ;;  %1155 = vadd.xlane.f32.xlu0 %v1154_v23 }
 0x1e3   : > { %6284 = vst [vmem:[#allocation37_spill] sm:$0xff] %v4966_v9  ;;  %v4972_v55 = vmax.f32 %v810_v10, 0.0  ;;  %v1066_v0 = vmul.f32 %v4966_v9, %v4966_v9 }
 0x1e4   : > { %6285 = vst [vmem:[#allocation38_spill] sm:$0xff] %v4969_v38  ;;  %v4976_v36 = vmax.f32 %v812_v62, 0.0  ;;  %1158 = vadd.xlane.f32.xlu1 %v1157_v13  ;;  %v968_v34 = vadd.f32 %v4969_v38, %v4966_v9  ;;  %v1067_v39 = vmul.f32 %v4969_v38, %v4969_v38 }
 0x1e5   : > { %6286 = vst [vmem:[#allocation39_spill] sm:$0xff] %v4972_v55  ;;  %v1068_v3 = vmul.f32 %v4972_v55, %v4972_v55 }
 0x1e6   : > { %6287 = vst [vmem:[#allocation40_spill] sm:$0xff] %v4976_v36  ;;  %969 = vadd.xlane.f32.xlu0 %v968_v34  ;;  %v971_v40 = vadd.f32 %v4976_v36, %v4972_v55  ;;  %v1160_v10 = vadd.f32 %v1067_v39, %v1066_v0  ;;  %v1069_v23 = vmul.f32 %v4976_v36, %v4976_v36 }
 0x1e8   : > { %972 = vadd.xlane.f32.xlu1 %v971_v40  ;;  %v1163_v12 = vadd.f32 %v1069_v23, %v1068_v3 }
 0x1ea   : > { %1161 = vadd.xlane.f32.xlu0 %v1160_v10 }
 0x1ec   : > { %1164 = vadd.xlane.f32.xlu1 %v1163_v12 }
 0x1fb   : > { %v880_v32 = vpop.xlane.xlu0 %879 }
 0x1fc   : > { %v974_v16 = vmul.f32 0.00390625, %v880_v32 }
 0x1fd   : > { %v1072_v17 = vpop.xlane.xlu1 %1071 }
 0x1fe   : > { %v1198_v20 = vmul.f32 %v974_v16, %v974_v16  ;;  %v1166_v13 = vmul.f32 0.00390625, %v1072_v17 }
 0x1ff   : > { %v883_v52 = vpop.xlane.xlu0 %882 }
 0x200   : > { %v1230_v62 = vsub.f32 %v1166_v13, %v1198_v20  ;;  %v975_v9 = vmul.f32 0.00390625, %v883_v52 }
 0x201   : > { %v1075_v34 = vpop.xlane.xlu1 %1074 }
 0x202   : > { %v1262_v38 = vmax.f32 %v1230_v62, 0.0  ;;  %v1199_v35 = vmul.f32 %v975_v9, %v975_v9  ;;  %v1167_v55 = vmul.f32 0.00390625, %v1075_v34 }
 0x203   : > { %v886_v0 = vpop.xlane.xlu0 %885 }
 0x204   : > { %v1294_v39 = vadd.f32 1e-05, %v1262_v38  ;;  %v1231_v41 = vsub.f32 %v1167_v55, %v1199_v35  ;;  %v4988_v36 = vmul.f32 0.00390625, %v886_v0 }
 0x205   : > { %v889_v3 = vpop.xlane.xlu1 %888 }
 0x206   : > { %3952 = vrsqrt.f32 %v1294_v39  ;;  %v1263_v40 = vmax.f32 %v1231_v41, 0.0  ;;  %v4990_v10 = vmul.f32 0.00390625, %v889_v3  ;;  %v1200_v32 = vmul.f32 %v4988_v36, %v4988_v36 }
 0x207   : > { %v1078_v23 = vpop.xlane.xlu0 %1077  ;;  %v1358_v3 = vsub.f32 0.0, %v974_v16 }
 0x208   : > { %v1295_v12 = vadd.f32 1e-05, %v1263_v40  ;;  %v1168_v17 = vmul.f32 0.00390625, %v1078_v23  ;;  %v1201_v13 = vmul.f32 %v4990_v10, %v4990_v10 }
 0x209   : > { %v1081_v20 = vpop.xlane.xlu1 %1080 }
 0x20a   : > { %3954 = vrsqrt.f32 %v1295_v12  ;;  %v1232_v38 = vsub.f32 %v1168_v17, %v1200_v32  ;;  %v1169_v35 = vmul.f32 0.00390625, %v1081_v20 }
 0x20b   : > { %v892_v55 = vpop.xlane.xlu0 %891 }
 0x20c   : > { %v1264_v52 = vmax.f32 %v1232_v38, 0.0  ;;  %v1233_v62 = vsub.f32 %v1169_v35, %v1201_v13  ;;  %v4996_v34 = vmul.f32 0.00390625, %v892_v55  ;;  %v1359_v55 = vsub.f32 0.0, %v975_v9 }
 0x20d   : > { %v895_v41 = vpop.xlane.xlu1 %894 }
 0x20e   : > { %v1296_v0 = vadd.f32 1e-05, %v1264_v52  ;;  %v1265_v39 = vmax.f32 %v1233_v62, 0.0  ;;  %v4998_v40 = vmul.f32 0.00390625, %v895_v41  ;;  %v1202_v19 = vmul.f32 %v4996_v34, %v4996_v34 }
 0x20f   : > { %v1084_v48 = vpop.xlane.xlu0 %1083 }
 0x210   : > { %v3953_v23 = vpop.eup %3952  ;;  %3956 = vrsqrt.f32 %v1296_v0  ;;  %v1297_v12 = vadd.f32 1e-05, %v1265_v39  ;;  %v1170_v32 = vmul.f32 0.00390625, %v1084_v48  ;;  %v1203_v17 = vmul.f32 %v4998_v40, %v4998_v40 }
 0x211   : > { %v1087_v20 = vpop.xlane.xlu1 %1086  ;;  %v1390_v13 = vmul.f32 %v3953_v23, %v1358_v3  ;;  %v1423_v16 = vmul.f32 %v3953_v23, %v4609_v49  ;;  %v1422_v62 = vmul.f32 %v3953_v23, %v4606_v46 }
 0x212   : > { %3958 = vrsqrt.f32 %v1297_v12  ;;  %v1234_v38 = vsub.f32 %v1170_v32, %v1202_v19  ;;  %v1171_v35 = vmul.f32 0.00390625, %v1087_v20 }
 0x213   : > { %v898_v52 = vpop.xlane.xlu0 %897  ;;  %v1487_v32 = vadd.f32 %v1423_v16, %v1390_v13  ;;  %v1486_v25 = vadd.f32 %v1422_v62, %v1390_v13 }
 0x214   : > { %v3955_v41 = vpop.eup %3954  ;;  %v1266_v0 = vmax.f32 %v1234_v38, 0.0  ;;  %v1235_v39 = vsub.f32 %v1171_v35, %v1203_v17  ;;  %v5006_v27 = vmul.f32 0.00390625, %v898_v52  ;;  %v1360_v35 = vsub.f32 0.0, %v4988_v36 }
 0x215   : > { %v901_v48 = vpop.xlane.xlu1 %900  ;;  %v1391_v44 = vmul.f32 %v3955_v41, %v1359_v55  ;;  %v1425_v47 = vmul.f32 %v3955_v41, %v4616_v53  ;;  %v1424_v3 = vmul.f32 %v3955_v41, %v4612_v51 }
 0x216   : > { %v1298_v12 = vadd.f32 1e-05, %v1266_v0  ;;  %v1267_v19 = vmax.f32 %v1235_v39, 0.0  ;;  %v5010_v20 = vmul.f32 0.00390625, %v901_v48  ;;  %v1204_v17 = vmul.f32 %v5006_v27, %v5006_v27 }
 0x217   : > { %v1090_v49 = vpop.xlane.xlu0 %1089  ;;  %v1489_v9 = vadd.f32 %v1425_v47, %v1391_v44  ;;  %v1488_v46 = vadd.f32 %v1424_v3, %v1391_v44  ;;  %v1361_v44 = vsub.f32 0.0, %v4990_v10 }
 0x218   : > { %3960 = vrsqrt.f32 %v1298_v12  ;;  %v1299_v23 = vadd.f32 1e-05, %v1267_v19  ;;  %v1172_v38 = vmul.f32 0.00390625, %v1090_v49  ;;  %v1205_v16 = vmul.f32 %v5010_v20, %v5010_v20 }
 0x219   : > { %v1093_v53 = vpop.xlane.xlu1 %1092  ;;  %v1551_v55 = vpack.c.bf16 %v1489_v9, %v1487_v32  ;;  %v1550_v51 = vpack.c.bf16 %v1488_v46, %v1486_v25 }
 0x21a   : > { %v3957_v52 = vpop.eup %3956  ;;  %3962 = vrsqrt.f32 %v1299_v23  ;;  %v1236_v41 = vsub.f32 %v1172_v38, %v1204_v17  ;;  %v1173_v47 = vmul.f32 0.00390625, %v1093_v53 }
 0x21b   : > { %1749 = vmatprep.mubr.bf16.mxu1 %v1551_v55  ;;  %v904_v13 = vpop.xlane.xlu0 %903  ;;  %v1392_v62 = vmul.f32 %v3957_v52, %v1360_v35  ;;  %v1427_v0 = vmul.f32 %v3957_v52, %v4633_v4  ;;  %v1426_v39 = vmul.f32 %v3957_v52, %v4630_v1 }
 0x21c   : > { %v3959_v36 = vpop.eup %3958  ;;  %v1268_v48 = vmax.f32 %v1236_v41, 0.0  ;;  %v1237_v3 = vsub.f32 %v1173_v47, %v1205_v16  ;;  %v5020_v25 = vmul.f32 0.00390625, %v904_v13  ;;  %1750 = vmatmul.mubr.bf16.vlgmr.msra.gmra.mrb[0].mxu1 %v1550_v51  ;;  %v1362_v51 = vsub.f32 0.0, %v4996_v34 }
 0x21d   : > { %v907_v12 = vpop.xlane.xlu1 %906  ;;  %v1393_v19 = vmul.f32 %v3959_v36, %v1361_v44  ;;  %v1429_v32 = vmul.f32 %v3959_v36, %v4638_v8  ;;  %v1428_v49 = vmul.f32 %v3959_v36, %v4636_v7  ;;  %v1491_v46 = vadd.f32 %v1427_v0, %v1392_v62 }
 0x21e   : > { %v1300_v10 = vadd.f32 1e-05, %v1268_v48  ;;  %v1269_v9 = vmax.f32 %v1237_v3, 0.0  ;;  %v5024_v23 = vmul.f32 0.00390625, %v907_v12  ;;  %v1490_v1 = vadd.f32 %v1426_v39, %v1392_v62 }
 0x21f   : > { %v1096_v4 = vpop.xlane.xlu0 %1095  ;;  %v1493_v17 = vadd.f32 %v1429_v32, %v1393_v19  ;;  %v1492_v38 = vadd.f32 %v1428_v49, %v1393_v19  ;;  %v1206_v53 = vmul.f32 %v5020_v25, %v5020_v25  ;;  %v1363_v13 = vsub.f32 0.0, %v4998_v40 }
 0x220   : > { %3964 = vrsqrt.f32 %v1300_v10  ;;  %v1301_v35 = vadd.f32 1e-05, %v1269_v9  ;;  %v1174_v55 = vmul.f32 0.00390625, %v1096_v4  ;;  %v1207_v41 = vmul.f32 %v5024_v23, %v5024_v23 }
 0x221   : > { %v1099_v8 = vpop.xlane.xlu1 %1098  ;;  %v1553_v52 = vpack.c.bf16 %v1493_v17, %v1491_v46  ;;  %v1552_v7 = vpack.c.bf16 %v1492_v38, %v1490_v1 }
 0x222   : > { %v3961_v16 = vpop.eup %3960  ;;  %3966 = vrsqrt.f32 %v1301_v35  ;;  %v1238_v47 = vsub.f32 %v1174_v55, %v1206_v53  ;;  %v1175_v44 = vmul.f32 0.00390625, %v1099_v8  ;;  %v1364_v55 = vsub.f32 0.0, %v5006_v27 }
 0x223   : > { %1757 = vmatprep.mubr.bf16.mxu1 %v1553_v52  ;;  %v910_v62 = vpop.xlane.xlu0 %909  ;;  %v1394_v0 = vmul.f32 %v3961_v16, %v1362_v51  ;;  %v1431_v39 = vmul.f32 %v3961_v16, %v4657_v24  ;;  %v1430_v36 = vmul.f32 %v3961_v16, %v4654_v21 }
 0x224   : > { %v3963_v34 = vpop.eup %3962  ;;  %v1270_v48 = vmax.f32 %v1238_v47, 0.0  ;;  %v1239_v3 = vsub.f32 %v1175_v44, %v1207_v41  ;;  %v5034_v12 = vmul.f32 0.00390625, %v910_v62  ;;  %1758 = vmatmul.mubr.bf16.gmra.mrb[4].mxu1 %v1552_v7  ;;  %v1365_v41 = vsub.f32 0.0, %v5010_v20 }
 0x225   : > { %v913_v19 = vpop.xlane.xlu1 %912  ;;  %v1395_v32 = vmul.f32 %v3963_v34, %v1363_v13  ;;  %v1433_v49 = vmul.f32 %v3963_v34, %v4662_v30  ;;  %v1432_v10 = vmul.f32 %v3963_v34, %v4660_v28  ;;  %v1495_v46 = vadd.f32 %v1431_v39, %v1394_v0 }
 0x226   : > { %v1302_v40 = vadd.f32 1e-05, %v1270_v48  ;;  %v1271_v9 = vmax.f32 %v1239_v3, 0.0  ;;  %v5038_v4 = vmul.f32 0.00390625, %v913_v19  ;;  %v1494_v21 = vadd.f32 %v1430_v36, %v1394_v0 }
 0x227   : > { %v1102_v24 = vpop.xlane.xlu0 %1101  ;;  %v1497_v17 = vadd.f32 %v1433_v49, %v1395_v32  ;;  %v1496_v1 = vadd.f32 %v1432_v10, %v1395_v32  ;;  %v1208_v35 = vmul.f32 %v5034_v12, %v5034_v12 }
 0x228   : > { %3968 = vrsqrt.f32 %v1302_v40  ;;  %v1303_v38 = vadd.f32 1e-05, %v1271_v9  ;;  %v1176_v53 = vmul.f32 0.00390625, %v1102_v24  ;;  %v1209_v52 = vmul.f32 %v5038_v4, %v5038_v4 }
 0x229   : > { %v1105_v30 = vpop.xlane.xlu1 %1104  ;;  %v1555_v51 = vpack.c.bf16 %v1497_v17, %v1495_v46  ;;  %v1554_v28 = vpack.c.bf16 %v1496_v1, %v1494_v21  ;;  %v1366_v21 = vsub.f32 0.0, %v5020_v25 }
 0x22a   : > { %v3965_v8 = vpop.eup %3964  ;;  %3970 = vrsqrt.f32 %v1303_v38  ;;  %v1240_v7 = vsub.f32 %v1176_v53, %v1208_v35  ;;  %v1177_v16 = vmul.f32 0.00390625, %v1105_v30  ;;  %v1367_v30 = vsub.f32 0.0, %v5024_v23 }
 0x22b   : > { %1765 = vmatprep.mubr.bf16.mxu1 %v1555_v51  ;;  %v916_v47 = vpop.xlane.xlu0 %915  ;;  %v1396_v44 = vmul.f32 %v3965_v8, %v1364_v55  ;;  %v1435_v13 = vmul.f32 %v3965_v8, %v4681_v57  ;;  %v1434_v62 = vmul.f32 %v3965_v8, %v4678_v54 }
 0x22c   : > { %v3967_v27 = vpop.eup %3966  ;;  %v1272_v0 = vmax.f32 %v1240_v7, 0.0  ;;  %v1241_v39 = vsub.f32 %v1177_v16, %v1209_v52  ;;  %v5048_v36 = vmul.f32 0.00390625, %v916_v47  ;;  %1766 = vmatmul.mubr.bf16.gmra.mrb[8].mxu1 %v1554_v28 }
 0x22d   : > { %v919_v34 = vpop.xlane.xlu1 %918  ;;  %v1397_v48 = vmul.f32 %v3967_v27, %v1365_v41  ;;  %v1437_v3 = vmul.f32 %v3967_v27, %v4686_v63  ;;  %v1436_v19 = vmul.f32 %v3967_v27, %v4684_v61  ;;  %v1499_v49 = vadd.f32 %v1435_v13, %v1396_v44 }
 0x22e   : > { %v1304_v20 = vadd.f32 1e-05, %v1272_v0  ;;  %v1273_v32 = vmax.f32 %v1241_v39, 0.0  ;;  %v5052_v10 = vmul.f32 0.00390625, %v919_v34  ;;  %v1498_v54 = vadd.f32 %v1434_v62, %v1396_v44 }
 0x22f   : > { %v1108_v57 = vpop.xlane.xlu0 %1107  ;;  %v1501_v40 = vadd.f32 %v1437_v3, %v1397_v48  ;;  %v1500_v9 = vadd.f32 %v1436_v19, %v1397_v48  ;;  %v1210_v24 = vmul.f32 %v5048_v36, %v5048_v36 }
 0x230   : > { %3972 = vrsqrt.f32 %v1304_v20  ;;  %v1305_v46 = vadd.f32 1e-05, %v1273_v32  ;;  %v1178_v17 = vmul.f32 0.00390625, %v1108_v57  ;;  %v1211_v35 = vmul.f32 %v5052_v10, %v5052_v10 }
 0x231   : > { %v1111_v63 = vpop.xlane.xlu1 %1110  ;;  %v1557_v1 = vpack.c.bf16 %v1501_v40, %v1499_v49  ;;  %v1556_v61 = vpack.c.bf16 %v1500_v9, %v1498_v54  ;;  %v1368_v32 = vsub.f32 0.0, %v5034_v12 }
 0x232   : > { %v3969_v38 = vpop.eup %3968  ;;  %3974 = vrsqrt.f32 %v1305_v46  ;;  %v1242_v53 = vsub.f32 %v1178_v17, %v1210_v24  ;;  %v1179_v55 = vmul.f32 0.00390625, %v1111_v63  ;;  %v1369_v46 = vsub.f32 0.0, %v5038_v4 }
 0x233   : > { %1773 = vmatprep.mubr.bf16.mxu1 %v1557_v1  ;;  %v922_v51 = vpop.xlane.xlu0 %921  ;;  %v1398_v28 = vmul.f32 %v3969_v38, %v1366_v21  ;;  %v1439_v8 = vmul.f32 %v3969_v38, %v4705_v22  ;;  %v1438_v52 = vmul.f32 %v3969_v38, %v4702_v18 }
 0x234   : > { %v3971_v25 = vpop.eup %3970  ;;  %v1274_v7 = vmax.f32 %v1242_v53, 0.0  ;;  %v1243_v16 = vsub.f32 %v1179_v55, %v1211_v35  ;;  %v5062_v41 = vmul.f32 0.00390625, %v922_v51  ;;  %1774 = vmatmul.mubr.bf16.gmra.mrb[12].mxu1 %v1556_v61 }
 0x235   : > { %v925_v47 = vpop.xlane.xlu1 %924  ;;  %v1399_v44 = vmul.f32 %v3971_v25, %v1367_v30  ;;  %v1441_v13 = vmul.f32 %v3971_v25, %v4710_v29  ;;  %v1440_v62 = vmul.f32 %v3971_v25, %v4708_v26  ;;  %v1503_v0 = vadd.f32 %v1439_v8, %v1398_v28 }
 0x236   : > { %v1306_v23 = vadd.f32 1e-05, %v1274_v7  ;;  %v1275_v27 = vmax.f32 %v1243_v16, 0.0  ;;  %v5066_v39 = vmul.f32 0.00390625, %v925_v47  ;;  %v1502_v18 = vadd.f32 %v1438_v52, %v1398_v28 }
 0x237   : > { %v1114_v22 = vpop.xlane.xlu0 %1113  ;;  %v1505_v34 = vadd.f32 %v1441_v13, %v1399_v44  ;;  %v1504_v48 = vadd.f32 %v1440_v62, %v1399_v44  ;;  %v1212_v19 = vmul.f32 %v5062_v41, %v5062_v41  ;;  %v1370_v44 = vsub.f32 0.0, %v5048_v36 }
 0x238   : > { %3976 = vrsqrt.f32 %v1306_v23  ;;  %v1307_v3 = vadd.f32 1e-05, %v1275_v27  ;;  %v1180_v20 = vmul.f32 0.00390625, %v1114_v22  ;;  %v1213_v40 = vmul.f32 %v5066_v39, %v5066_v39 }
 0x239   : > { %v1117_v29 = vpop.xlane.xlu1 %1116  ;;  %v1559_v49 = vpack.c.bf16 %v1505_v34, %v1503_v0  ;;  %v1558_v26 = vpack.c.bf16 %v1504_v48, %v1502_v18  ;;  %v1371_v22 = vsub.f32 0.0, %v5052_v10 }
 0x23a   : > { %v3973_v57 = vpop.eup %3972  ;;  %3978 = vrsqrt.f32 %v1307_v3  ;;  %v1244_v54 = vsub.f32 %v1180_v20, %v1212_v19  ;;  %v1181_v9 = vmul.f32 0.00390625, %v1117_v29 }
 0x23b   : > { %1781 = vmatprep.mubr.bf16.mxu1 %v1559_v49  ;;  %v928_v24 = vpop.xlane.xlu0 %927  ;;  %v1400_v17 = vmul.f32 %v3973_v57, %v1368_v32  ;;  %v1443_v21 = vmul.f32 %v3973_v57, %v4729_v60  ;;  %v1442_v63 = vmul.f32 %v3973_v57, %v4726_v56 }
 0x23c   : > { %v3975_v12 = vpop.eup %3974  ;;  %v1276_v1 = vmax.f32 %v1244_v54, 0.0  ;;  %v1245_v61 = vsub.f32 %v1181_v9, %v1213_v40  ;;  %v5076_v38 = vmul.f32 0.00390625, %v928_v24  ;;  %1782 = vmatmul.mubr.bf16.gmra.mrb[16].mxu1 %v1558_v26 }
 0x23d   : > { %v931_v35 = vpop.xlane.xlu1 %930  ;;  %v1401_v53 = vmul.f32 %v3975_v12, %v1369_v46  ;;  %v1445_v55 = vmul.f32 %v3975_v12, %v4734_v5  ;;  %v1444_v30 = vmul.f32 %v3975_v12, %v4732_v2  ;;  %v1507_v28 = vadd.f32 %v1443_v21, %v1400_v17 }
 0x23e   : > { %v1308_v4 = vadd.f32 1e-05, %v1276_v1  ;;  %v1277_v51 = vmax.f32 %v1245_v61, 0.0  ;;  %v5080_v8 = vmul.f32 0.00390625, %v931_v35  ;;  %v1506_v56 = vadd.f32 %v1442_v63, %v1400_v17 }
 0x23f   : > { %v1120_v60 = vpop.xlane.xlu0 %1119  ;;  %v1509_v52 = vadd.f32 %v1445_v55, %v1401_v53  ;;  %v1508_v25 = vadd.f32 %v1444_v30, %v1401_v53  ;;  %v1214_v16 = vmul.f32 %v5076_v38, %v5076_v38  ;;  %v1372_v12 = vsub.f32 0.0, %v5062_v41 }
 0x240   : > { %3980 = vrsqrt.f32 %v1308_v4  ;;  %v1309_v7 = vadd.f32 1e-05, %v1277_v51  ;;  %v1182_v47 = vmul.f32 0.00390625, %v1120_v60  ;;  %v1215_v23 = vmul.f32 %v5080_v8, %v5080_v8 }
 0x241   : > { %v1123_v5 = vpop.xlane.xlu1 %1122  ;;  %v1561_v13 = vpack.c.bf16 %v1509_v52, %v1507_v28  ;;  %v1560_v2 = vpack.c.bf16 %v1508_v25, %v1506_v56  ;;  %v1373_v30 = vsub.f32 0.0, %v5066_v39 }
 0x242   : > { %v3977_v62 = vpop.eup %3976  ;;  %3982 = vrsqrt.f32 %v1309_v7  ;;  %v1246_v27 = vsub.f32 %v1182_v47, %v1214_v16  ;;  %v1183_v0 = vmul.f32 0.00390625, %v1123_v5 }
 0x243   : > { %1789 = vmatprep.mubr.bf16.mxu1 %v1561_v13  ;;  %v934_v34 = vpop.xlane.xlu0 %933  ;;  %v1402_v18 = vmul.f32 %v3977_v62, %v1370_v44  ;;  %v1447_v48 = vmul.f32 %v3977_v62, %v4753_v37  ;;  %v1446_v3 = vmul.f32 %v3977_v62, %v4750_v31 }
 0x244   : > { %v3979_v36 = vpop.eup %3978  ;;  %v1278_v19 = vmax.f32 %v1246_v27, 0.0  ;;  %v1247_v20 = vsub.f32 %v1183_v0, %v1215_v23  ;;  %v5090_v32 = vmul.f32 0.00390625, %v934_v34  ;;  %1790 = vmatmul.mubr.bf16.gmra.mrb[20].mxu1 %v1560_v2  ;;  %v1374_v34 = vsub.f32 0.0, %v5076_v38 }
 0x245   : > { %v937_v29 = vpop.xlane.xlu1 %936  ;;  %v1403_v49 = vmul.f32 %v3979_v36, %v1371_v22  ;;  %v1449_v26 = vmul.f32 %v3979_v36, %v4758_v43  ;;  %v1448_v57 = vmul.f32 %v3979_v36, %v4756_v42  ;;  %v1511_v54 = vadd.f32 %v1447_v48, %v1402_v18 }
 0x246   : > { %v1310_v10 = vadd.f32 1e-05, %v1278_v19  ;;  %v1279_v40 = vmax.f32 %v1247_v20, 0.0  ;;  %v5094_v9 = vmul.f32 0.00390625, %v937_v29  ;;  %v1510_v31 = vadd.f32 %v1446_v3, %v1402_v18 }
 0x247   : > { %v1126_v37 = vpop.xlane.xlu0 %1125  ;;  %v1513_v46 = vadd.f32 %v1449_v26, %v1403_v49  ;;  %v1512_v24 = vadd.f32 %v1448_v57, %v1403_v49  ;;  %v1216_v21 = vmul.f32 %v5090_v32, %v5090_v32  ;;  %v1375_v20 = vsub.f32 0.0, %v5080_v8 }
 0x248   : > { %3984 = vrsqrt.f32 %v1310_v10  ;;  %v1311_v17 = vadd.f32 1e-05, %v1279_v40  ;;  %v1184_v63 = vmul.f32 0.00390625, %v1126_v37  ;;  %v1217_v35 = vmul.f32 %v5094_v9, %v5094_v9 }
 0x249   : > { %v1129_v43 = vpop.xlane.xlu1 %1128  ;;  %v1563_v1 = vpack.c.bf16 %v1513_v46, %v1511_v54  ;;  %v1562_v42 = vpack.c.bf16 %v1512_v24, %v1510_v31 }
 0x24a   : > { %v3981_v61 = vpop.eup %3980  ;;  %3986 = vrsqrt.f32 %v1311_v17  ;;  %v1248_v53 = vsub.f32 %v1184_v63, %v1216_v21  ;;  %v1185_v55 = vmul.f32 0.00390625, %v1129_v43 }
 0x24b   : > { %1797 = vmatprep.mubr.bf16.mxu1 %v1563_v1  ;;  %v940_v4 = vpop.xlane.xlu0 %939  ;;  %v1404_v51 = vmul.f32 %v3981_v61, %v1372_v12  ;;  %v1451_v28 = vmul.f32 %v3981_v61, %v4777_v11  ;;  %v1450_v60 = vmul.f32 %v3981_v61, %v4774_v6 }
 0x24c   : > { %v3983_v41 = vpop.eup %3982  ;;  %v1280_v52 = vmax.f32 %v1248_v53, 0.0  ;;  %v1249_v56 = vsub.f32 %v1185_v55, %v1217_v35  ;;  %v5104_v25 = vmul.f32 0.00390625, %v940_v4  ;;  %1798 = vmatmul.mubr.bf16.gmra.mrb[24].mxu1 %v1562_v42  ;;  %v1376_v35 = vsub.f32 0.0, %v5090_v32 }
 0x24d   : > { %v943_v7 = vpop.xlane.xlu1 %942  ;;  %v1405_v16 = vmul.f32 %v3983_v41, %v1373_v30  ;;  %v1453_v47 = vmul.f32 %v3983_v41, %v4782_v15  ;;  %v1452_v44 = vmul.f32 %v3983_v41, %v4780_v14  ;;  %v1515_v13 = vadd.f32 %v1451_v28, %v1404_v51 }
 0x24e   : > { %v1312_v39 = vadd.f32 1e-05, %v1280_v52  ;;  %v1281_v5 = vmax.f32 %v1249_v56, 0.0  ;;  %v5108_v2 = vmul.f32 0.00390625, %v943_v7  ;;  %v1514_v6 = vadd.f32 %v1450_v60, %v1404_v51  ;;  %v6288_v56 = vld [vmem:[#allocation14_spill] sm:$0xff] }
 0x24f   : > { %v1132_v11 = vpop.xlane.xlu0 %1131  ;;  %v1517_v62 = vadd.f32 %v1453_v47, %v1405_v16  ;;  %v1516_v23 = vadd.f32 %v1452_v44, %v1405_v16  ;;  %v1218_v0 = vmul.f32 %v5104_v25, %v5104_v25  ;;  %v1377_v28 = vsub.f32 0.0, %v5094_v9 }
 0x250   : > { %3988 = vrsqrt.f32 %v1312_v39  ;;  %v1313_v27 = vadd.f32 1e-05, %v1281_v5  ;;  %v1186_v22 = vmul.f32 0.00390625, %v1132_v11  ;;  %v1219_v3 = vmul.f32 %v5108_v2, %v5108_v2 }
 0x251   : > { %v1135_v15 = vpop.xlane.xlu1 %1134  ;;  %v1565_v18 = vpack.c.bf16 %v1517_v62, %v1515_v13  ;;  %v1564_v14 = vpack.c.bf16 %v1516_v23, %v1514_v6  ;;  %v6289_v13 = vld [vmem:[#allocation16_spill] sm:$0xff]  ;;  %v6290_v62 = vld [vmem:[#allocation15_spill] sm:$0xff] }
 0x252   : > { %v3985_v48 = vpop.eup %3984  ;;  %3990 = vrsqrt.f32 %v1313_v27  ;;  %v1250_v36 = vsub.f32 %v1186_v22, %v1218_v0  ;;  %v1187_v19 = vmul.f32 0.00390625, %v1135_v15 }
 0x253   : > { %1805 = vmatprep.mubr.bf16.mxu1 %v1565_v18  ;;  %v946_v29 = vpop.xlane.xlu0 %945  ;;  %v1406_v49 = vmul.f32 %v3985_v48, %v1374_v34  ;;  %v1455_v26 = vmul.f32 %v3985_v48, %v4801_v50  ;;  %v1454_v57 = vmul.f32 %v3985_v48, %v4798_v45 }
 0x254   : > { %v3987_v38 = vpop.eup %3986  ;;  %v1282_v10 = vmax.f32 %v1250_v36, 0.0  ;;  %v1251_v40 = vsub.f32 %v1187_v19, %v1219_v3  ;;  %v5118_v54 = vmul.f32 0.00390625, %v946_v29  ;;  %1806 = vmatmul.mubr.bf16.gmra.mrb[28].mxu1 %v1564_v14  ;;  %v1378_v3 = vsub.f32 0.0, %v5104_v25 }
 0x255   : > { %v949_v37 = vpop.xlane.xlu1 %948  ;;  %v1407_v46 = vmul.f32 %v3987_v38, %v1375_v20  ;;  %v1457_v31 = vmul.f32 %v3987_v38, %v4806_v59  ;;  %v1456_v24 = vmul.f32 %v3987_v38, %v4804_v58  ;;  %v1519_v21 = vadd.f32 %v1455_v26, %v1406_v49 }
 0x256   : > { %v1314_v8 = vadd.f32 1e-05, %v1282_v10  ;;  %v1283_v17 = vmax.f32 %v1251_v40, 0.0  ;;  %v5122_v63 = vmul.f32 0.00390625, %v949_v37  ;;  %v1518_v45 = vadd.f32 %v1454_v57, %v1406_v49  ;;  %v6291_v37 = vld [vmem:[#allocation18_spill] sm:$0xff] }
 0x257   : > { %v1138_v50 = vpop.xlane.xlu0 %1137  ;;  %v1521_v12 = vadd.f32 %v1457_v31, %v1407_v46  ;;  %v1520_v43 = vadd.f32 %v1456_v24, %v1407_v46  ;;  %v1220_v42 = vmul.f32 %v5118_v54, %v5118_v54  ;;  %v1379_v38 = vsub.f32 0.0, %v5108_v2  ;;  %v6292_v31 = vld [vmem:[#allocation17_spill] sm:$0xff] }
 0x258   : > { %3992 = vrsqrt.f32 %v1314_v8  ;;  %v1315_v1 = vadd.f32 1e-05, %v1283_v17  ;;  %v1188_v61 = vmul.f32 0.00390625, %v1138_v50  ;;  %v1221_v30 = vmul.f32 %v5122_v63, %v5122_v63 }
 0x259   : > { %v1141_v59 = vpop.xlane.xlu1 %1140  ;;  %v1567_v53 = vpack.c.bf16 %v1521_v12, %v1519_v21  ;;  %v1566_v58 = vpack.c.bf16 %v1520_v43, %v1518_v45  ;;  %v6293_v45 = vld [vmem:[#allocation20_spill] sm:$0xff] }
 0x25a   : > { %v3989_v55 = vpop.eup %3988  ;;  %3994 = vrsqrt.f32 %v1315_v1  ;;  %v1252_v4 = vsub.f32 %v1188_v61, %v1220_v42  ;;  %v1189_v51 = vmul.f32 0.00390625, %v1141_v59  ;;  %v6294_v1 = vld [vmem:[#allocation19_spill] sm:$0xff] }
 0x25b   : > { %1813 = vmatprep.mubr.bf16.mxu1 %v1567_v53  ;;  %v952_v60 = vpop.xlane.xlu0 %951  ;;  %v1408_v41 = vmul.f32 %v3989_v55, %v1376_v35  ;;  %v1459_v52 = vmul.f32 %v3989_v55, %v4825_v33  ;;  %v1458_v7 = vmul.f32 %v3989_v55, %v6288_v56 }
 0x25c   : > { %v3991_v32 = vpop.eup %3990  ;;  %v1284_v16 = vmax.f32 %v1252_v4, 0.0  ;;  %v1253_v47 = vsub.f32 %v1189_v51, %v1221_v30  ;;  %v5132_v44 = vmul.f32 0.00390625, %v952_v60  ;;  %1814 = vmatmul.mubr.bf16.gmra.mrb[32].mxu1 %v1566_v58  ;;  %v1380_v60 = vsub.f32 0.0, %v5118_v54 }
 0x25d   : > { %v955_v39 = vpop.xlane.xlu1 %954  ;;  %v1409_v5 = vmul.f32 %v3991_v32, %v1377_v28  ;;  %v1461_v11 = vmul.f32 %v3991_v32, %v6289_v13  ;;  %v1460_v6 = vmul.f32 %v3991_v32, %v6290_v62  ;;  %v1523_v27 = vadd.f32 %v1459_v52, %v1408_v41 }
 0x25e   : > { %v1316_v9 = vadd.f32 1e-05, %v1284_v16  ;;  %v1285_v23 = vmax.f32 %v1253_v47, 0.0  ;;  %v5136_v0 = vmul.f32 0.00390625, %v955_v39  ;;  %v1522_v34 = vadd.f32 %v1458_v7, %v1408_v41 }
 0x25f   : > { %v1144_v33 = vpop.xlane.xlu0 %1143  ;;  %v1525_v22 = vadd.f32 %v1461_v11, %v1409_v5  ;;  %v1524_v15 = vadd.f32 %v1460_v6, %v1409_v5  ;;  %v1222_v14 = vmul.f32 %v5132_v44, %v5132_v44  ;;  %v1381_v39 = vsub.f32 0.0, %v5122_v63  ;;  %v6295_v11 = vld [vmem:[#allocation22_spill] sm:$0xff]  ;;  %v6296_v6 = vld [vmem:[#allocation21_spill] sm:$0xff] }
 0x260   : > { %3996 = vrsqrt.f32 %v1316_v9  ;;  %v1317_v18 = vadd.f32 1e-05, %v1285_v23  ;;  %v1190_v48 = vmul.f32 0.00390625, %v1144_v33  ;;  %v1223_v49 = vmul.f32 %v5136_v0, %v5136_v0 }
 0x261   : > { %v1147_v36 = vpop.xlane.xlu1 %1146  ;;  %v1569_v19 = vpack.c.bf16 %v1525_v22, %v1523_v27  ;;  %v1568_v20 = vpack.c.bf16 %v1524_v15, %v1522_v34  ;;  %v6297_v15 = vld [vmem:[#allocation24_spill] sm:$0xff] }
 0x262   : > { %v3993_v29 = vpop.eup %3992  ;;  %3998 = vrsqrt.f32 %v1317_v18  ;;  %v1254_v26 = vsub.f32 %v1190_v48, %v1222_v14  ;;  %v1191_v57 = vmul.f32 0.00390625, %v1147_v36  ;;  %v6298_v14 = vld [vmem:[#allocation23_spill] sm:$0xff] }
 0x263   : > { %1821 = vmatprep.mubr.bf16.mxu1 %v1569_v19  ;;  %v958_v10 = vpop.xlane.xlu0 %957  ;;  %v1410_v40 = vmul.f32 %v3993_v29, %v1378_v3  ;;  %v1463_v46 = vmul.f32 %v3993_v29, %v6291_v37  ;;  %v1462_v24 = vmul.f32 %v3993_v29, %v6292_v31 }
 0x264   : > { %v3995_v25 = vpop.eup %3994  ;;  %v1286_v8 = vmax.f32 %v1254_v26, 0.0  ;;  %v1255_v17 = vsub.f32 %v1191_v57, %v1223_v49  ;;  %v5146_v21 = vmul.f32 0.00390625, %v958_v10  ;;  %1822 = vmatmul.mubr.bf16.gmra.mrb[36].mxu1 %v1568_v20 }
 0x265   : > { %v961_v50 = vpop.xlane.xlu1 %960  ;;  %v1411_v12 = vmul.f32 %v3995_v25, %v1379_v38  ;;  %v1465_v43 = vmul.f32 %v3995_v25, %v6293_v45  ;;  %v1464_v42 = vmul.f32 %v3995_v25, %v6294_v1  ;;  %v1527_v35 = vadd.f32 %v1463_v46, %v1410_v40 }
 0x266   : > { %v1318_v2 = vadd.f32 1e-05, %v1286_v8  ;;  %v1287_v61 = vmax.f32 %v1255_v17, 0.0  ;;  %v5150_v59 = vmul.f32 0.00390625, %v961_v50  ;;  %v1526_v55 = vadd.f32 %v1462_v24, %v1410_v40 }
 0x267   : > { %v1150_v53 = vpop.xlane.xlu0 %1149  ;;  %v1529_v58 = vadd.f32 %v1465_v43, %v1411_v12  ;;  %v1528_v30 = vadd.f32 %v1464_v42, %v1411_v12  ;;  %v1224_v51 = vmul.f32 %v5146_v21, %v5146_v21  ;;  %v1382_v40 = vsub.f32 0.0, %v5132_v44  ;;  %v6299_v43 = vld [vmem:[#allocation26_spill] sm:$0xff]  ;;  %v6300_v42 = vld [vmem:[#allocation25_spill] sm:$0xff] }
 0x268   : > { %4000 = vrsqrt.f32 %v1318_v2  ;;  %v1319_v4 = vadd.f32 1e-05, %v1287_v61  ;;  %v1192_v28 = vmul.f32 0.00390625, %v1150_v53  ;;  %v1225_v32 = vmul.f32 %v5150_v59, %v5150_v59 }
 0x269   : > { %v1153_v41 = vpop.xlane.xlu1 %1152  ;;  %v1571_v52 = vpack.c.bf16 %v1529_v58, %v1527_v35  ;;  %v1570_v56 = vpack.c.bf16 %v1528_v30, %v1526_v55  ;;  %v1383_v50 = vsub.f32 0.0, %v5136_v0  ;;  %v6301_v30 = vld [vmem:[#allocation28_spill] sm:$0xff] }
 0x26a   : > { %v3997_v7 = vpop.eup %3996  ;;  %4002 = vrsqrt.f32 %v1319_v4  ;;  %v1256_v16 = vsub.f32 %v1192_v28, %v1224_v51  ;;  %v1193_v47 = vmul.f32 0.00390625, %v1153_v41  ;;  %v6302_v51 = vld [vmem:[#allocation27_spill] sm:$0xff] }
 0x26b   : > { %1829 = vmatprep.mubr.bf16.mxu1 %v1571_v52  ;;  %v964_v5 = vpop.xlane.xlu0 %963  ;;  %v1412_v13 = vmul.f32 %v3997_v7, %v1380_v60  ;;  %v1467_v62 = vmul.f32 %v3997_v7, %v6295_v11  ;;  %v1466_v9 = vmul.f32 %v3997_v7, %v6296_v6 }
 0x26c   : > { %v3999_v54 = vpop.eup %3998  ;;  %v1288_v23 = vmax.f32 %v1256_v16, 0.0  ;;  %v1257_v27 = vsub.f32 %v1193_v47, %v1225_v32  ;;  %v5160_v33 = vmul.f32 0.00390625, %v964_v5  ;;  %1830 = vmatmul.mubr.bf16.gmra.mrb[40].mxu1 %v1570_v56 }
 0x26d   : > { %v967_v22 = vpop.xlane.xlu1 %966  ;;  %v1413_v34 = vmul.f32 %v3999_v54, %v1381_v39  ;;  %v1469_v18 = vmul.f32 %v3999_v54, %v6297_v15  ;;  %v1468_v48 = vmul.f32 %v3999_v54, %v6298_v14  ;;  %v1531_v19 = vadd.f32 %v1467_v62, %v1412_v13  ;;  %v6303_v15 = vld [vmem:[#allocation30_spill] sm:$0xff]  ;;  %v6304_v14 = vld [vmem:[#allocation29_spill] sm:$0xff] }
 0x26e   : > { %v1320_v63 = vadd.f32 1e-05, %v1288_v23  ;;  %v1289_v3 = vmax.f32 %v1257_v27, 0.0  ;;  %v1226_v36 = vmul.f32 %v5160_v33, %v5160_v33  ;;  %v5166_v20 = vmul.f32 0.00390625, %v967_v22 }
 0x26f   : > { %v1156_v29 = vpop.xlane.xlu0 %1155  ;;  %v1533_v49 = vadd.f32 %v1469_v18, %v1413_v34  ;;  %v1530_v26 = vadd.f32 %v1466_v9, %v1412_v13  ;;  %v1532_v57 = vadd.f32 %v1468_v48, %v1413_v34  ;;  %v1384_v13 = vsub.f32 0.0, %v5146_v21 }
 0x270   : > { %4004 = vrsqrt.f32 %v1320_v63  ;;  %v1321_v38 = vadd.f32 1e-05, %v1289_v3  ;;  %v1194_v10 = vmul.f32 0.00390625, %v1156_v29  ;;  %v1227_v37 = vmul.f32 %v5166_v20, %v5166_v20 }
 0x271   : > { %v1159_v46 = vpop.xlane.xlu1 %1158  ;;  %v1573_v31 = vpack.c.bf16 %v1533_v49, %v1531_v19  ;;  %v1572_v24 = vpack.c.bf16 %v1532_v57, %v1530_v26  ;;  %v1385_v22 = vsub.f32 0.0, %v5150_v59  ;;  %v6305_v19 = vld [vmem:[#allocation32_spill] sm:$0xff]  ;;  %v6306_v49 = vld [vmem:[#allocation31_spill] sm:$0xff] }
 0x272   : > { %v4001_v25 = vpop.eup %4000  ;;  %4006 = vrsqrt.f32 %v1321_v38  ;;  %v1258_v8 = vsub.f32 %v1194_v10, %v1226_v36  ;;  %v1195_v17 = vmul.f32 0.00390625, %v1159_v46 }
 0x273   : > { %1837 = vmatprep.mubr.bf16.mxu1 %v1573_v31  ;;  %v970_v12 = vpop.xlane.xlu0 %969  ;;  %v1414_v45 = vmul.f32 %v4001_v25, %v1382_v40  ;;  %v1471_v1 = vmul.f32 %v4001_v25, %v6299_v43  ;;  %v1470_v2 = vmul.f32 %v4001_v25, %v6300_v42  ;;  %v1386_v31 = vsub.f32 0.0, %v5160_v33  ;;  %v6308_v43 = vld [vmem:[#allocation33_spill] sm:$0xff] }
 0x274   : > { %v4003_v44 = vpop.eup %4002  ;;  %v1290_v61 = vmax.f32 %v1258_v8, 0.0  ;;  %v1259_v35 = vsub.f32 %v1195_v17, %v1227_v37  ;;  %v5174_v53 = vmul.f32 0.00390625, %v970_v12  ;;  %1838 = vmatmul.mubr.bf16.gmra.mrb[44].mxu1 %v1572_v24  ;;  %v1387_v17 = vsub.f32 0.0, %v5166_v20  ;;  %v6307_v12 = vld [vmem:[#allocation34_spill] sm:$0xff] }
 0x275   : > { %v973_v58 = vpop.xlane.xlu1 %972  ;;  %v1415_v55 = vmul.f32 %v4003_v44, %v1383_v50  ;;  %v1473_v4 = vmul.f32 %v4003_v44, %v6301_v30  ;;  %v1472_v28 = vmul.f32 %v4003_v44, %v6302_v51  ;;  %v1535_v52 = vadd.f32 %v1471_v1, %v1414_v45  ;;  %v6309_v44 = vld [vmem:[#allocation36_spill] sm:$0xff] }
 0x276   : > { %v1322_v0 = vadd.f32 1e-05, %v1290_v61  ;;  %v1291_v60 = vmax.f32 %v1259_v35, 0.0  ;;  %v1228_v41 = vmul.f32 %v5174_v53, %v5174_v53  ;;  %v5180_v56 = vmul.f32 0.00390625, %v973_v58  ;;  %v6310_v35 = vld [vmem:[#allocation35_spill] sm:$0xff] }
 0x277   : > { %v1162_v7 = vpop.xlane.xlu0 %1161  ;;  %v1537_v32 = vadd.f32 %v1473_v4, %v1415_v55  ;;  %v1534_v16 = vadd.f32 %v1470_v2, %v1414_v45  ;;  %v1536_v47 = vadd.f32 %v1472_v28, %v1415_v55  ;;  %v1388_v51 = vsub.f32 0.0, %v5174_v53 }
 0x278   : > { %4008 = vrsqrt.f32 %v1322_v0  ;;  %v1323_v39 = vadd.f32 1e-05, %v1291_v60  ;;  %v1196_v5 = vmul.f32 0.00390625, %v1162_v7  ;;  %v1229_v11 = vmul.f32 %v5180_v56, %v5180_v56 }
 0x279   : > { %v1165_v62 = vpop.xlane.xlu1 %1164  ;;  %v1575_v6 = vpack.c.bf16 %v1537_v32, %v1535_v52  ;;  %v1574_v9 = vpack.c.bf16 %v1536_v47, %v1534_v16  ;;  %v1389_v60 = vsub.f32 0.0, %v5180_v56  ;;  %v6311_v52 = vld [vmem:[#allocation38_spill] sm:$0xff]  ;;  %v6312_v32 = vld [vmem:[#allocation37_spill] sm:$0xff] }
 0x27a   : > { %v4005_v54 = vpop.eup %4004  ;;  %4010 = vrsqrt.f32 %v1323_v39  ;;  %v1260_v23 = vsub.f32 %v1196_v5, %v1228_v41  ;;  %v1197_v27 = vmul.f32 0.00390625, %v1165_v62  ;;  %v6313_v5 = vld [vmem:[#allocation40_spill] sm:$0xff] }
 0x27b   : > { %1845 = vmatprep.mubr.bf16.mxu1 %v1575_v6  ;;  %v1416_v34 = vmul.f32 %v4005_v54, %v1384_v13  ;;  %v1475_v18 = vmul.f32 %v4005_v54, %v6303_v15  ;;  %v1474_v48 = vmul.f32 %v4005_v54, %v6304_v14 }
 0x27c   : > { %v4007_v63 = vpop.eup %4006  ;;  %v1292_v21 = vmax.f32 %v1260_v23, 0.0  ;;  %v1261_v3 = vsub.f32 %v1197_v27, %v1229_v11  ;;  %1846 = vmatmul.mubr.bf16.gmra.mrb[48].mxu1 %v1574_v9  ;;  %v6314_v11 = vld [vmem:[#allocation39_spill] sm:$0xff] }
 0x27d   : > { %v1417_v36 = vmul.f32 %v4007_v63, %v1385_v22  ;;  %v1477_v29 = vmul.f32 %v4007_v63, %v6305_v19  ;;  %v1476_v26 = vmul.f32 %v4007_v63, %v6306_v49  ;;  %v1539_v10 = vadd.f32 %v1475_v18, %v1416_v34  ;;  %v5205_v22 = vld [vmem:[%s6198_s4] ss:$0 sm:$0xff]  ;;  %v3945_v19 = vld [vmem:[%s6199_s5 + $0x8] sm:$0xff]  }
 0x27e   : > { %v1324_v57 = vadd.f32 1e-05, %v1292_v21  ;;  %v1293_v38 = vmax.f32 %v1261_v3, 0.0  ;;  %v1538_v59 = vadd.f32 %v1474_v48, %v1416_v34  ;;  %v3944_v21 = vld [vmem:[%s6199_s5] sm:$0xff]  }
 0x27f   : > { %v1541_v40 = vadd.f32 %v1477_v29, %v1417_v36  ;;  %v1540_v37 = vadd.f32 %v1476_v26, %v1417_v36  ;;  %3758 = vmatprep.subr.bf16.mxu0 %v3944_v21 }
 0x280   : > { %4012 = vrsqrt.f32 %v1324_v57  ;;  %v1325_v46 = vadd.f32 1e-05, %v1293_v38  ;;  %3759 = vmatpush3.bf16.msra.mxu0 %v3944_v21 }
 0x281   : > { %v1577_v24 = vpack.c.bf16 %v1541_v40, %v1539_v10  ;;  %v1576_v25 = vpack.c.bf16 %v1540_v37, %v1538_v59  ;;  %3760 = vmatprep.subr.bf16.mxu0 %v3945_v19 }
 0x282   : > { %v4009_v8 = vpop.eup %4008  ;;  %4014 = vrsqrt.f32 %v1325_v46 }
 0x283   : > { %1853 = vmatprep.mubr.bf16.mxu1 %v1577_v24  ;;  %v1418_v50 = vmul.f32 %v4009_v8, %v1386_v31  ;;  %v1479_v45 = vmul.f32 %v4009_v8, %v6307_v12  ;;  %v1478_v1 = vmul.f32 %v4009_v8, %v6308_v43 }
 0x284   : > { %v4011_v42 = vpop.eup %4010  ;;  %1854 = vmatmul.mubr.bf16.gmra.mrb[52].mxu1 %v1576_v25  ;;  %3761 = vmatpush3.bf16.msra.mxu0 %v3945_v19 }
 0x285   : > { %v1419_v2 = vmul.f32 %v4011_v42, %v1387_v17  ;;  %v1481_v61 = vmul.f32 %v4011_v42, %v6309_v44  ;;  %v1480_v58 = vmul.f32 %v4011_v42, %v6310_v35  ;;  %v1543_v33 = vadd.f32 %v1479_v45, %v1418_v50 }
 0x286   : > { %v1542_v30 = vadd.f32 %v1478_v1, %v1418_v50 }
 0x287   : > { %v1545_v55 = vadd.f32 %v1481_v61, %v1419_v2  ;;  %v1544_v4 = vadd.f32 %v1480_v58, %v1419_v2 }
 0x289   : > { %v1579_v20 = vpack.c.bf16 %v1545_v55, %v1543_v33  ;;  %v1578_v28 = vpack.c.bf16 %v1544_v4, %v1542_v30 }
 0x28a   : > { %v4013_v0 = vpop.eup %4012 }
 0x28b   : > { %1861 = vmatprep.mubr.bf16.mxu1 %v1579_v20  ;;  %v1420_v41 = vmul.f32 %v4013_v0, %v1388_v51  ;;  %v1483_v7 = vmul.f32 %v4013_v0, %v6311_v52  ;;  %v1482_v16 = vmul.f32 %v4013_v0, %v6312_v32 }
 0x28c   : > { %v4015_v47 = vpop.eup %4014  ;;  %1862 = vmatmul.mubr.bf16.gmra.mrb[56].mxu1 %v1578_v28 }
 0x28d   : > { %v1421_v39 = vmul.f32 %v4015_v47, %v1389_v60  ;;  %v1485_v13 = vmul.f32 %v4015_v47, %v6313_v5  ;;  %v1484_v62 = vmul.f32 %v4015_v47, %v6314_v11  ;;  %v1547_v6 = vadd.f32 %v1483_v7, %v1420_v41 }
 0x28e   : > { %v1546_v9 = vadd.f32 %v1482_v16, %v1420_v41 }
 0x28f   : > { %v1549_v53 = vadd.f32 %v1485_v13, %v1421_v39  ;;  %v1548_v54 = vadd.f32 %v1484_v62, %v1421_v39 }
 0x291   : > { %v1581_v23 = vpack.c.bf16 %v1549_v53, %v1547_v6  ;;  %v1580_v27 = vpack.c.bf16 %v1548_v54, %v1546_v9  ;;  %v3946_v6 = vld [vmem:[%s6199_s5 + $0x10] sm:$0xff]  }
 0x292   : > { %3762 = vmatprep.subr.bf16.mxu0 %v3946_v6 }
 0x293   : > { %1869 = vmatprep.mubr.bf16.mxu1 %v1581_v23  ;;  %3763 = vmatpush3.bf16.msra.mxu0 %v3946_v6 }
 0x294   : > { %1870 = vmatmul.mubr.bf16.gmra.mrb[60].mxu1 %v1580_v27 }
 0x2ef   : > { %v3620_v56 = vpop.f32.mrb[0].mxu1 }
 0x2f0   : > { %v3621_v34 = vpop.f32.mrb[1].mxu1 }
 0x2f1   : > { %v3622_v15 = vadd.f32 %v3621_v34, %v3620_v56  ;;  %v3623_v18 = vpop.f32.mrb[2].mxu1  ;;  %v3947_v56 = vld [vmem:[%s6199_s5 + $0x18] sm:$0xff]  }
 0x2f2   : > { %v3624_v14 = vpop.f32.mrb[3].mxu1  ;;  %3764 = vmatprep.subr.bf16.mxu0 %v3947_v56 }
 0x2f3   : > { %v1752_v48 = vadd.f32 %v3622_v15, %v5205_v22  ;;  %v3625_v63 = vadd.f32 %v3624_v14, %v3623_v18  ;;  %3765 = vmatpush3.bf16.msra.mxu0 %v3947_v56 }
 0x2f5   : > { %v5211_v3 = vmax.f32 %v1752_v48, 0.0  ;;  %v1755_v36 = vadd.f32 %v3625_v63, %v5205_v22 }
 0x2f7   : > { %v5217_v29 = vmax.f32 %v1755_v36, 0.0  ;;  %1910 = vadd.xlane.f32.xlu0 %v5211_v3  ;;  %v3626_v49 = vpop.f32.mrb[4].mxu1  ;;  %v2006_v10 = vmul.f32 %v5211_v3, %v5211_v3  ;;  %v3948_v36 = vld [vmem:[%s6199_s5 + $0x20] sm:$0xff]  }
 0x2f8   : > { %v3627_v26 = vpop.f32.mrb[5].mxu1  ;;  %3766 = vmatprep.subr.bf16.mxu0 %v3948_v36 }
 0x2f9   : > { %v3628_v57 = vadd.f32 %v3627_v26, %v3626_v49  ;;  %1912 = vadd.xlane.f32.xlu1 %v5217_v29  ;;  %v3629_v38 = vpop.f32.mrb[6].mxu1  ;;  %v2007_v46 = vmul.f32 %v5217_v29, %v5217_v29  ;;  %3767 = vmatpush3.bf16.msra.mxu0 %v3948_v36 }
 0x2fa   : > { %v3630_v40 = vpop.f32.mrb[7].mxu1 }
 0x2fb   : > { %v1760_v59 = vadd.f32 %v3628_v57, %v5205_v22  ;;  %v3631_v37 = vadd.f32 %v3630_v40, %v3629_v38  ;;  %2038 = vadd.xlane.f32.xlu0 %v2006_v10  ;;  %v3949_v10 = vld [vmem:[%s6199_s5 + $0x28] sm:$0xff]  }
 0x2fc   : > { %3768 = vmatprep.subr.bf16.mxu0 %v3949_v10 }
 0x2fd   : > { %v5226_v31 = vmax.f32 %v1760_v59, 0.0  ;;  %v1763_v24 = vadd.f32 %v3631_v37, %v5205_v22  ;;  %2040 = vadd.xlane.f32.xlu1 %v2007_v46  ;;  %3769 = vmatpush3.bf16.msra.mxu0 %v3949_v10 }
 0x2ff   : > { %v5229_v25 = vmax.f32 %v1763_v24, 0.0  ;;  %1914 = vadd.xlane.f32.xlu0 %v5226_v31  ;;  %v3632_v8 = vpop.f32.mrb[8].mxu1  ;;  %v2008_v45 = vmul.f32 %v5226_v31, %v5226_v31 }
 0x300   : > { %v3633_v17 = vpop.f32.mrb[9].mxu1 }
 0x301   : > { %v3634_v50 = vadd.f32 %v3633_v17, %v3632_v8  ;;  %1916 = vadd.xlane.f32.xlu1 %v5229_v25  ;;  %v3635_v12 = vpop.f32.mrb[10].mxu1  ;;  %v2009_v2 = vmul.f32 %v5229_v25, %v5229_v25 }
 0x302   : > { %v3636_v43 = vpop.f32.mrb[11].mxu1 }
 0x303   : > { %v1768_v1 = vadd.f32 %v3634_v50, %v5205_v22  ;;  %v3637_v42 = vadd.f32 %v3636_v43, %v3635_v12  ;;  %2042 = vadd.xlane.f32.xlu0 %v2008_v45  ;;  %v3950_v50 = vld [vmem:[%s6199_s5 + $0x30] sm:$0xff]  }
 0x304   : > { %3770 = vmatprep.subr.bf16.mxu0 %v3950_v50 }
 0x305   : > { %v5238_v44 = vmax.f32 %v1768_v1, 0.0  ;;  %v1771_v61 = vadd.f32 %v3637_v42, %v5205_v22  ;;  %2044 = vadd.xlane.f32.xlu1 %v2009_v2  ;;  %3771 = vmatpush3.bf16.msra.mxu0 %v3950_v50  ;;  %v3951_v2 = vld [vmem:[%s6199_s5 + $0x38] sm:$0xff]  }
 0x306   : > { %3772 = vmatprep.subr.bf16.mxu0 %v3951_v2 }
 0x307   : > { %v5241_v35 = vmax.f32 %v1771_v61, 0.0  ;;  %1918 = vadd.xlane.f32.xlu0 %v5238_v44  ;;  %v3638_v58 = vpop.f32.mrb[12].mxu1  ;;  %v2010_v4 = vmul.f32 %v5238_v44, %v5238_v44 }
 0x308   : > { %v3639_v33 = vpop.f32.mrb[13].mxu1 }
 0x309   : > { %v3640_v55 = vadd.f32 %v3639_v33, %v3638_v58  ;;  %1920 = vadd.xlane.f32.xlu1 %v5241_v35  ;;  %v3641_v30 = vpop.f32.mrb[14].mxu1  ;;  %v2011_v0 = vmul.f32 %v5241_v35, %v5241_v35  ;;  %3773 = vmatpush3.bf16.msra.mxu0 %v3951_v2 }
 0x30a   : > { %v3642_v51 = vpop.f32.mrb[15].mxu1 }
 0x30b   : > { %v1776_v20 = vadd.f32 %v3640_v55, %v5205_v22  ;;  %v3643_v28 = vadd.f32 %v3642_v51, %v3641_v30  ;;  %2046 = vadd.xlane.f32.xlu0 %v2010_v4 }
 0x30d   : > { %v5250_v60 = vmax.f32 %v1776_v20, 0.0  ;;  %v1779_v41 = vadd.f32 %v3643_v28, %v5205_v22  ;;  %2048 = vadd.xlane.f32.xlu1 %v2011_v0 }
 0x30f   : > { %v5253_v52 = vmax.f32 %v1779_v41, 0.0  ;;  %1922 = vadd.xlane.f32.xlu0 %v5250_v60  ;;  %v3644_v7 = vpop.f32.mrb[16].mxu1  ;;  %v2012_v39 = vmul.f32 %v5250_v60, %v5250_v60 }
 0x310   : > { %v3645_v32 = vpop.f32.mrb[17].mxu1 }
 0x311   : > { %v3646_v16 = vadd.f32 %v3645_v32, %v3644_v7  ;;  %1924 = vadd.xlane.f32.xlu1 %v5253_v52  ;;  %v3647_v47 = vpop.f32.mrb[18].mxu1  ;;  %v2013_v62 = vmul.f32 %v5253_v52, %v5253_v52 }
 0x312   : > { %v3648_v5 = vpop.f32.mrb[19].mxu1 }
 0x313   : > { %v1784_v13 = vadd.f32 %v3646_v16, %v5205_v22  ;;  %v3649_v11 = vadd.f32 %v3648_v5, %v3647_v47  ;;  %2050 = vadd.xlane.f32.xlu0 %v2012_v39 }
 0x315   : > { %v5265_v53 = vmax.f32 %v1784_v13, 0.0  ;;  %v1787_v9 = vadd.f32 %v3649_v11, %v5205_v22  ;;  %2052 = vadd.xlane.f32.xlu1 %v2013_v62 }
 0x317   : > { %v5268_v54 = vmax.f32 %v1787_v9, 0.0  ;;  %1926 = vadd.xlane.f32.xlu0 %v5265_v53  ;;  %v3650_v23 = vpop.f32.mrb[20].mxu1  ;;  %v2014_v18 = vmul.f32 %v5265_v53, %v5265_v53 }
 0x318   : > { %v3651_v27 = vpop.f32.mrb[21].mxu1 }
 0x319   : > { %v3652_v34 = vadd.f32 %v3651_v27, %v3650_v23  ;;  %1928 = vadd.xlane.f32.xlu1 %v5268_v54  ;;  %v3653_v15 = vpop.f32.mrb[22].mxu1  ;;  %v2015_v21 = vmul.f32 %v5268_v54, %v5268_v54 }
 0x31a   : > { %v3654_v14 = vpop.f32.mrb[23].mxu1 }
 0x31b   : > { %v1792_v48 = vadd.f32 %v3652_v34, %v5205_v22  ;;  %v3655_v63 = vadd.f32 %v3654_v14, %v3653_v15  ;;  %2054 = vadd.xlane.f32.xlu0 %v2014_v18 }
 0x31d   : > { %v5283_v19 = vmax.f32 %v1792_v48, 0.0  ;;  %v1795_v49 = vadd.f32 %v3655_v63, %v5205_v22  ;;  %2056 = vadd.xlane.f32.xlu1 %v2015_v21 }
 0x31f   : > { %v5286_v26 = vmax.f32 %v1795_v49, 0.0  ;;  %1930 = vadd.xlane.f32.xlu0 %v5283_v19  ;;  %v3656_v57 = vpop.f32.mrb[24].mxu1  ;;  %v2016_v37 = vmul.f32 %v5283_v19, %v5283_v19 }
 0x320   : > { %v3657_v38 = vpop.f32.mrb[25].mxu1 }
 0x321   : > { %v3658_v40 = vadd.f32 %v3657_v38, %v3656_v57  ;;  %1932 = vadd.xlane.f32.xlu1 %v5286_v26  ;;  %v3659_v59 = vpop.f32.mrb[26].mxu1  ;;  %v2017_v17 = vmul.f32 %v5286_v26, %v5286_v26 }
 0x322   : > { %v3660_v46 = vpop.f32.mrb[27].mxu1 }
 0x323   : > { %v1800_v24 = vadd.f32 %v3658_v40, %v5205_v22  ;;  %v3661_v8 = vadd.f32 %v3660_v46, %v3659_v59  ;;  %2058 = vadd.xlane.f32.xlu0 %v2016_v37 }
 0x325   : > { %v5301_v12 = vmax.f32 %v1800_v24, 0.0  ;;  %v1803_v45 = vadd.f32 %v3661_v8, %v5205_v22  ;;  %2060 = vadd.xlane.f32.xlu1 %v2017_v17 }
 0x327   : > { %v5304_v43 = vmax.f32 %v1803_v45, 0.0  ;;  %1934 = vadd.xlane.f32.xlu0 %v5301_v12  ;;  %v3662_v1 = vpop.f32.mrb[28].mxu1  ;;  %v2018_v33 = vmul.f32 %v5301_v12, %v5301_v12 }
 0x328   : > { %v3663_v42 = vpop.f32.mrb[29].mxu1 }
 0x329   : > { %v3664_v61 = vadd.f32 %v3663_v42, %v3662_v1  ;;  %1936 = vadd.xlane.f32.xlu1 %v5304_v43  ;;  %v3665_v58 = vpop.f32.mrb[30].mxu1  ;;  %v2019_v51 = vmul.f32 %v5304_v43, %v5304_v43 }
 0x32a   : > { %v3666_v55 = vpop.f32.mrb[31].mxu1 }
 0x32b   : > { %v1808_v30 = vadd.f32 %v3664_v61, %v5205_v22  ;;  %v3667_v4 = vadd.f32 %v3666_v55, %v3665_v58  ;;  %2062 = vadd.xlane.f32.xlu0 %v2018_v33 }
 0x32d   : > { %v5316_v20 = vmax.f32 %v1808_v30, 0.0  ;;  %v1811_v28 = vadd.f32 %v3667_v4, %v5205_v22  ;;  %2064 = vadd.xlane.f32.xlu1 %v2019_v51 }
 0x32f   : > { %v5319_v0 = vmax.f32 %v1811_v28, 0.0  ;;  %1938 = vadd.xlane.f32.xlu0 %v5316_v20  ;;  %v3668_v41 = vpop.f32.mrb[32].mxu1  ;;  %v2020_v47 = vmul.f32 %v5316_v20, %v5316_v20 }
 0x330   : > { %v3669_v7 = vpop.f32.mrb[33].mxu1 }
 0x331   : > { %v3670_v32 = vadd.f32 %v3669_v7, %v3668_v41  ;;  %1940 = vadd.xlane.f32.xlu1 %v5319_v0  ;;  %v3671_v16 = vpop.f32.mrb[34].mxu1  ;;  %v2021_v11 = vmul.f32 %v5319_v0, %v5319_v0 }
 0x332   : > { %v3672_v39 = vpop.f32.mrb[35].mxu1 }
 0x333   : > { %v1816_v5 = vadd.f32 %v3670_v32, %v5205_v22  ;;  %v3673_v13 = vadd.f32 %v3672_v39, %v3671_v16  ;;  %2066 = vadd.xlane.f32.xlu0 %v2020_v47 }
 0x335   : > { %v5328_v62 = vmax.f32 %v1816_v5, 0.0  ;;  %v1819_v6 = vadd.f32 %v3673_v13, %v5205_v22  ;;  %2068 = vadd.xlane.f32.xlu1 %v2021_v11 }
 0x337   : > { %v5331_v9 = vmax.f32 %v1819_v6, 0.0  ;;  %1942 = vadd.xlane.f32.xlu0 %v5328_v62  ;;  %v3674_v23 = vpop.f32.mrb[36].mxu1  ;;  %v2022_v15 = vmul.f32 %v5328_v62, %v5328_v62 }
 0x338   : > { %v3675_v27 = vpop.f32.mrb[37].mxu1 }
 0x339   : > { %v3676_v56 = vadd.f32 %v3675_v27, %v3674_v23  ;;  %1944 = vadd.xlane.f32.xlu1 %v5331_v9  ;;  %v3677_v34 = vpop.f32.mrb[38].mxu1  ;;  %v2023_v63 = vmul.f32 %v5331_v9, %v5331_v9 }
 0x33a   : > { %v3678_v18 = vpop.f32.mrb[39].mxu1 }
 0x33b   : > { %v1824_v14 = vadd.f32 %v3676_v56, %v5205_v22  ;;  %v3679_v48 = vadd.f32 %v3678_v18, %v3677_v34  ;;  %2070 = vadd.xlane.f32.xlu0 %v2022_v15 }
 0x33d   : > { %v5340_v21 = vmax.f32 %v1824_v14, 0.0  ;;  %v1827_v36 = vadd.f32 %v3679_v48, %v5205_v22  ;;  %2072 = vadd.xlane.f32.xlu1 %v2023_v63 }
 0x33f   : > { %v5343_v49 = vmax.f32 %v1827_v36, 0.0  ;;  %1946 = vadd.xlane.f32.xlu0 %v5340_v21  ;;  %v3680_v57 = vpop.f32.mrb[40].mxu1  ;;  %v2024_v59 = vmul.f32 %v5340_v21, %v5340_v21 }
 0x340   : > { %v3681_v38 = vpop.f32.mrb[41].mxu1 }
 0x341   : > { %v3682_v10 = vadd.f32 %v3681_v38, %v3680_v57  ;;  %1948 = vadd.xlane.f32.xlu1 %v5343_v49  ;;  %v3683_v40 = vpop.f32.mrb[42].mxu1  ;;  %v2025_v8 = vmul.f32 %v5343_v49, %v5343_v49 }
 0x342   : > { %v3684_v37 = vpop.f32.mrb[43].mxu1 }
 0x343   : > { %v1832_v46 = vadd.f32 %v3682_v10, %v5205_v22  ;;  %v3685_v24 = vadd.f32 %v3684_v37, %v3683_v40  ;;  %2074 = vadd.xlane.f32.xlu0 %v2024_v59 }
 0x345   : > { %v5352_v17 = vmax.f32 %v1832_v46, 0.0  ;;  %v1835_v50 = vadd.f32 %v3685_v24, %v5205_v22  ;;  %2076 = vadd.xlane.f32.xlu1 %v2025_v8 }
 0x347   : > { %v5355_v45 = vmax.f32 %v1835_v50, 0.0  ;;  %1950 = vadd.xlane.f32.xlu0 %v5352_v17  ;;  %v3686_v1 = vpop.f32.mrb[44].mxu1  ;;  %v2026_v58 = vmul.f32 %v5352_v17, %v5352_v17 }
 0x348   : > { %v3687_v42 = vpop.f32.mrb[45].mxu1 }
 0x349   : > { %v3688_v2 = vadd.f32 %v3687_v42, %v3686_v1  ;;  %1952 = vadd.xlane.f32.xlu1 %v5355_v45  ;;  %v3689_v61 = vpop.f32.mrb[46].mxu1  ;;  %v2027_v4 = vmul.f32 %v5355_v45, %v5355_v45 }
 0x34a   : > { %v3690_v33 = vpop.f32.mrb[47].mxu1 }
 0x34b   : > { %v1840_v55 = vadd.f32 %v3688_v2, %v5205_v22  ;;  %v3691_v30 = vadd.f32 %v3690_v33, %v3689_v61  ;;  %2078 = vadd.xlane.f32.xlu0 %v2026_v58 }
 0x34d   : > { %v5364_v51 = vmax.f32 %v1840_v55, 0.0  ;;  %v1843_v28 = vadd.f32 %v3691_v30, %v5205_v22  ;;  %2080 = vadd.xlane.f32.xlu1 %v2027_v4 }
 0x34f   : > { %v5367_v41 = vmax.f32 %v1843_v28, 0.0  ;;  %1954 = vadd.xlane.f32.xlu0 %v5364_v51  ;;  %v3692_v7 = vpop.f32.mrb[48].mxu1  ;;  %v2028_v39 = vmul.f32 %v5364_v51, %v5364_v51 }
 0x350   : > { %v3693_v32 = vpop.f32.mrb[49].mxu1 }
 0x351   : > { %v3694_v16 = vadd.f32 %v3693_v32, %v3692_v7  ;;  %1956 = vadd.xlane.f32.xlu1 %v5367_v41  ;;  %v3695_v47 = vpop.f32.mrb[50].mxu1  ;;  %v2029_v6 = vmul.f32 %v5367_v41, %v5367_v41 }
 0x352   : > { %v3696_v5 = vpop.f32.mrb[51].mxu1 }
 0x353   : > { %v1848_v13 = vadd.f32 %v3694_v16, %v5205_v22  ;;  %v3697_v11 = vadd.f32 %v3696_v5, %v3695_v47  ;;  %2082 = vadd.xlane.f32.xlu0 %v2028_v39 }
 0x355   : > { %v5376_v23 = vmax.f32 %v1848_v13, 0.0  ;;  %v1851_v27 = vadd.f32 %v3697_v11, %v5205_v22  ;;  %2084 = vadd.xlane.f32.xlu1 %v2029_v6 }
 0x357   : > { %v5379_v56 = vmax.f32 %v1851_v27, 0.0  ;;  %1958 = vadd.xlane.f32.xlu0 %v5376_v23  ;;  %v3698_v34 = vpop.f32.mrb[52].mxu1  ;;  %v2030_v48 = vmul.f32 %v5376_v23, %v5376_v23 }
 0x358   : > { %v3699_v15 = vpop.f32.mrb[53].mxu1 }
 0x359   : > { %v3700_v18 = vadd.f32 %v3699_v15, %v3698_v34  ;;  %1960 = vadd.xlane.f32.xlu1 %v5379_v56  ;;  %v3701_v14 = vpop.f32.mrb[54].mxu1  ;;  %v2031_v38 = vmul.f32 %v5379_v56, %v5379_v56 }
 0x35a   : > { %v3702_v63 = vpop.f32.mrb[55].mxu1 }
 0x35b   : > { %v1856_v36 = vadd.f32 %v3700_v18, %v5205_v22  ;;  %v3703_v57 = vadd.f32 %v3702_v63, %v3701_v14  ;;  %2086 = vadd.xlane.f32.xlu0 %v2030_v48 }
 0x35d   : > { %v5388_v10 = vmax.f32 %v1856_v36, 0.0  ;;  %v1859_v40 = vadd.f32 %v3703_v57, %v5205_v22  ;;  %2088 = vadd.xlane.f32.xlu1 %v2031_v38 }
 0x35f   : > { %v5391_v59 = vmax.f32 %v1859_v40, 0.0  ;;  %1962 = vadd.xlane.f32.xlu0 %v5388_v10  ;;  %v3704_v37 = vpop.f32.mrb[56].mxu1  ;;  %v2032_v50 = vmul.f32 %v5388_v10, %v5388_v10 }
 0x360   : > { %v3705_v46 = vpop.f32.mrb[57].mxu1 }
 0x361   : > { %v3706_v24 = vadd.f32 %v3705_v46, %v3704_v37  ;;  %1964 = vadd.xlane.f32.xlu1 %v5391_v59  ;;  %v3707_v8 = vpop.f32.mrb[58].mxu1  ;;  %v2033_v61 = vmul.f32 %v5391_v59, %v5391_v59 }
 0x362   : > { %v3708_v1 = vpop.f32.mrb[59].mxu1 }
 0x363   : > { %v1864_v42 = vadd.f32 %v3706_v24, %v5205_v22  ;;  %v3709_v2 = vadd.f32 %v3708_v1, %v3707_v8  ;;  %2090 = vadd.xlane.f32.xlu0 %v2032_v50 }
 0x365   : > { %v5400_v58 = vmax.f32 %v1864_v42, 0.0  ;;  %v1867_v33 = vadd.f32 %v3709_v2, %v5205_v22  ;;  %2092 = vadd.xlane.f32.xlu1 %v2033_v61 }
 0x367   : > { %v5403_v55 = vmax.f32 %v1867_v33, 0.0  ;;  %1966 = vadd.xlane.f32.xlu0 %v5400_v58  ;;  %v3710_v30 = vpop.f32.mrb[60].mxu1  ;;  %v2034_v32 = vmul.f32 %v5400_v58, %v5400_v58 }
 0x368   : > { %v3711_v4 = vpop.f32.mrb[61].mxu1 }
 0x369   : > { %v3712_v28 = vadd.f32 %v3711_v4, %v3710_v30  ;;  %1968 = vadd.xlane.f32.xlu1 %v5403_v55  ;;  %v3713_v7 = vpop.f32.mrb[62].mxu1  ;;  %v2035_v5 = vmul.f32 %v5403_v55, %v5403_v55 }
 0x36a   : > { %v3714_v16 = vpop.f32.mrb[63].mxu1 }
 0x36b   : > { %v1872_v47 = vadd.f32 %v3712_v28, %v5205_v22  ;;  %v3715_v39 = vadd.f32 %v3714_v16, %v3713_v7  ;;  %2094 = vadd.xlane.f32.xlu0 %v2034_v32 }
 0x36d   : > { %v5412_v13 = vmax.f32 %v1872_v47, 0.0  ;;  %v1875_v11 = vadd.f32 %v3715_v39, %v5205_v22  ;;  %2096 = vadd.xlane.f32.xlu1 %v2035_v5 }
 0x36f   : > { %v5415_v6 = vmax.f32 %v1875_v11, 0.0  ;;  %1970 = vadd.xlane.f32.xlu0 %v5412_v13  ;;  %v2036_v27 = vmul.f32 %v5412_v13, %v5412_v13 }
 0x371   : > { %1972 = vadd.xlane.f32.xlu1 %v5415_v6  ;;  %v2037_v34 = vmul.f32 %v5415_v6, %v5415_v6 }
 0x373   : > { %2098 = vadd.xlane.f32.xlu0 %v2036_v27 }
 0x375   : > { %2100 = vadd.xlane.f32.xlu1 %v2037_v34 }
 0x384   : > { %v1911_v15 = vpop.xlane.xlu0 %1910 }
 0x385   : > { %v1974_v18 = vmul.f32 0.0078125, %v1911_v15 }
 0x386   : > { %v1913_v14 = vpop.xlane.xlu1 %1912 }
 0x387   : > { %v1975_v48 = vmul.f32 0.0078125, %v1913_v14  ;;  %v2134_v63 = vmul.f32 %v1974_v18, %v1974_v18 }
 0x388   : > { %v2039_v22 = vpop.xlane.xlu0 %2038 }
 0x389   : > { %v2102_v36 = vmul.f32 0.0078125, %v2039_v22  ;;  %v2135_v38 = vmul.f32 %v1975_v48, %v1975_v48 }
 0x38a   : > { %v2041_v57 = vpop.xlane.xlu1 %2040 }
 0x38b   : > { %v2166_v40 = vsub.f32 %v2102_v36, %v2134_v63  ;;  %v2103_v37 = vmul.f32 0.0078125, %v2041_v57 }
 0x38c   : > { %v1915_v46 = vpop.xlane.xlu0 %1914 }
 0x38d   : > { %v2198_v24 = vmax.f32 %v2166_v40, 0.0  ;;  %v2167_v8 = vsub.f32 %v2103_v37, %v2135_v38  ;;  %v5423_v50 = vmul.f32 0.0078125, %v1915_v46  ;;  %v2294_v40 = vsub.f32 0.0, %v1974_v18 }
 0x38e   : > { %v1917_v1 = vpop.xlane.xlu1 %1916 }
 0x38f   : > { %v2230_v42 = vadd.f32 1e-05, %v2198_v24  ;;  %v2199_v2 = vmax.f32 %v2167_v8, 0.0  ;;  %v5425_v61 = vmul.f32 0.0078125, %v1917_v1  ;;  %v2136_v4 = vmul.f32 %v5423_v50, %v5423_v50 }
 0x390   : > { %v2043_v33 = vpop.xlane.xlu0 %2042 }
 0x391   : > { %4016 = vrsqrt.f32 %v2230_v42  ;;  %v2231_v30 = vadd.f32 1e-05, %v2199_v2  ;;  %v2104_v28 = vmul.f32 0.0078125, %v2043_v33  ;;  %v2137_v32 = vmul.f32 %v5425_v61, %v5425_v61 }
 0x392   : > { %v2045_v7 = vpop.xlane.xlu1 %2044  ;;  %v2295_v42 = vsub.f32 0.0, %v1975_v48 }
 0x393   : > { %4018 = vrsqrt.f32 %v2231_v30  ;;  %v2168_v16 = vsub.f32 %v2104_v28, %v2136_v4  ;;  %v2105_v47 = vmul.f32 0.0078125, %v2045_v7 }
 0x394   : > { %v1919_v39 = vpop.xlane.xlu0 %1918 }
 0x395   : > { %v2200_v5 = vmax.f32 %v2168_v16, 0.0  ;;  %v2169_v11 = vsub.f32 %v2105_v47, %v2137_v32  ;;  %v5431_v27 = vmul.f32 0.0078125, %v1919_v39 }
 0x396   : > { %v1921_v34 = vpop.xlane.xlu1 %1920 }
 0x397   : > { %v2232_v15 = vadd.f32 1e-05, %v2200_v5  ;;  %v2201_v14 = vmax.f32 %v2169_v11, 0.0  ;;  %v5433_v22 = vmul.f32 0.0078125, %v1921_v34  ;;  %v2138_v57 = vmul.f32 %v5431_v27, %v5431_v27 }
 0x398   : > { %v2047_v63 = vpop.xlane.xlu0 %2046 }
 0x399   : > { %4020 = vrsqrt.f32 %v2232_v15  ;;  %v2233_v36 = vadd.f32 1e-05, %v2201_v14  ;;  %v2106_v38 = vmul.f32 0.0078125, %v2047_v63  ;;  %v2139_v24 = vmul.f32 %v5433_v22, %v5433_v22 }
 0x39a   : > { %v2049_v37 = vpop.xlane.xlu1 %2048 }
 0x39b   : > { %v4017_v46 = vpop.eup %4016  ;;  %4022 = vrsqrt.f32 %v2233_v36  ;;  %v2170_v8 = vsub.f32 %v2106_v38, %v2138_v57  ;;  %v2107_v1 = vmul.f32 0.0078125, %v2049_v37  ;;  %v2296_v36 = vsub.f32 0.0, %v5423_v50 }
 0x39c   : > { %v1923_v2 = vpop.xlane.xlu0 %1922  ;;  %v2326_v33 = vmul.f32 %v4017_v46, %v2294_v40  ;;  %v2358_v30 = vmul.f32 %v4017_v46, %v5211_v3 }
 0x39d   : > { %v4019_v4 = vpop.eup %4018  ;;  %v2202_v28 = vmax.f32 %v2170_v8, 0.0  ;;  %v2171_v7 = vsub.f32 %v2107_v1, %v2139_v24  ;;  %v5440_v32 = vmul.f32 0.0078125, %v1923_v2  ;;  %v2297_v24 = vsub.f32 0.0, %v5425_v61 }
 0x39e   : > { %v1925_v16 = vpop.xlane.xlu1 %1924  ;;  %v2327_v18 = vmul.f32 %v4019_v4, %v2295_v42  ;;  %v2359_v47 = vmul.f32 %v4019_v4, %v5217_v29  ;;  %v2390_v15 = vadd.f32 %v2358_v30, %v2326_v33 }
 0x39f   : > { %v2234_v39 = vadd.f32 1e-05, %v2202_v28  ;;  %v2203_v5 = vmax.f32 %v2171_v7, 0.0  ;;  %v5443_v11 = vmul.f32 0.0078125, %v1925_v16  ;;  %v2140_v3 = vmul.f32 %v5440_v32, %v5440_v32 }
 0x3a0   : > { %v2051_v34 = vpop.xlane.xlu0 %2050  ;;  %v2391_v48 = vadd.f32 %v2359_v47, %v2327_v18 }
 0x3a1   : > { %4024 = vrsqrt.f32 %v2234_v39  ;;  %v2235_v14 = vadd.f32 1e-05, %v2203_v5  ;;  %v2108_v63 = vmul.f32 0.0078125, %v2051_v34  ;;  %v2141_v29 = vmul.f32 %v5443_v11, %v5443_v11 }
 0x3a2   : > { %v2053_v57 = vpop.xlane.xlu1 %2052  ;;  %v2422_v38 = vpack.c.bf16 %v2391_v48, %v2390_v15  ;;  %v2298_v48 = vsub.f32 0.0, %v5431_v27 }
 0x3a3   : > { %v4021_v40 = vpop.eup %4020  ;;  %4026 = vrsqrt.f32 %v2235_v14  ;;  %v2172_v37 = vsub.f32 %v2108_v63, %v2140_v3  ;;  %v2109_v46 = vmul.f32 0.0078125, %v2053_v57 }
 0x3a4   : > { %3774 = vmatprep.mubr.bf16.mxu0 %v2422_v38  ;;  %v1927_v8 = vpop.xlane.xlu0 %1926  ;;  %v2328_v1 = vmul.f32 %v4021_v40, %v2296_v36  ;;  %v2360_v42 = vmul.f32 %v4021_v40, %v5226_v31  ;;  %v2299_v38 = vsub.f32 0.0, %v5433_v22 }
 0x3a5   : > { %v4023_v2 = vpop.eup %4022  ;;  %v2204_v33 = vmax.f32 %v2172_v37, 0.0  ;;  %v2173_v30 = vsub.f32 %v2109_v46, %v2141_v29  ;;  %v5452_v50 = vmul.f32 0.0078125, %v1927_v8 }
 0x3a6   : > { %v1929_v4 = vpop.xlane.xlu1 %1928  ;;  %v2329_v28 = vmul.f32 %v4023_v2, %v2297_v24  ;;  %v2361_v7 = vmul.f32 %v4023_v2, %v5229_v25  ;;  %v2392_v61 = vadd.f32 %v2360_v42, %v2328_v1 }
 0x3a7   : > { %v2236_v16 = vadd.f32 1e-05, %v2204_v33  ;;  %v2205_v18 = vmax.f32 %v2173_v30, 0.0  ;;  %v5455_v47 = vmul.f32 0.0078125, %v1929_v4  ;;  %v2142_v31 = vmul.f32 %v5452_v50, %v5452_v50 }
 0x3a8   : > { %v2055_v39 = vpop.xlane.xlu0 %2054  ;;  %v2393_v5 = vadd.f32 %v2361_v7, %v2329_v28 }
 0x3a9   : > { %4028 = vrsqrt.f32 %v2236_v16  ;;  %v2237_v34 = vadd.f32 1e-05, %v2205_v18  ;;  %v2110_v15 = vmul.f32 0.0078125, %v2055_v39  ;;  %v2143_v25 = vmul.f32 %v5455_v47, %v5455_v47 }
 0x3aa   : > { %v2057_v14 = vpop.xlane.xlu1 %2056  ;;  %v2423_v3 = vpack.c.bf16 %v2393_v5, %v2392_v61  ;;  %v2300_v39 = vsub.f32 0.0, %v5440_v32 }
 0x3ab   : > { %v4025_v63 = vpop.eup %4024  ;;  %4030 = vrsqrt.f32 %v2237_v34  ;;  %v2174_v36 = vsub.f32 %v2110_v15, %v2142_v31  ;;  %v2111_v57 = vmul.f32 0.0078125, %v2057_v14 }
 0x3ac   : > { %3775 = vmatmul.mubr.bf16.vlgmr.msra.gmra.mrb[64].mxu0 %v2423_v3  ;;  %v1931_v40 = vpop.xlane.xlu0 %1930  ;;  %v2330_v29 = vmul.f32 %v4025_v63, %v2298_v48  ;;  %v2362_v37 = vmul.f32 %v4025_v63, %v5238_v44  ;;  %v2301_v48 = vsub.f32 0.0, %v5443_v11 }
 0x3ad   : > { %v4027_v46 = vpop.eup %4026  ;;  %v2206_v24 = vmax.f32 %v2174_v36, 0.0  ;;  %v2175_v8 = vsub.f32 %v2111_v57, %v2143_v25  ;;  %v5464_v27 = vmul.f32 0.0078125, %v1931_v40 }
 0x3ae   : > { %v1933_v1 = vpop.xlane.xlu1 %1932  ;;  %v2331_v42 = vmul.f32 %v4027_v46, %v2299_v38  ;;  %v2363_v2 = vmul.f32 %v4027_v46, %v5241_v35  ;;  %v2394_v22 = vadd.f32 %v2362_v37, %v2330_v29 }
 0x3af   : > { %v2238_v33 = vadd.f32 1e-05, %v2206_v24  ;;  %v2207_v30 = vmax.f32 %v2175_v8, 0.0  ;;  %v5467_v4 = vmul.f32 0.0078125, %v1933_v1  ;;  %v2144_v44 = vmul.f32 %v5464_v27, %v5464_v27 }
 0x3b0   : > { %v2059_v28 = vpop.xlane.xlu0 %2058  ;;  %v2395_v7 = vadd.f32 %v2363_v2, %v2331_v42 }
 0x3b1   : > { %4032 = vrsqrt.f32 %v2238_v33  ;;  %v2239_v16 = vadd.f32 1e-05, %v2207_v30  ;;  %v2112_v18 = vmul.f32 0.0078125, %v2059_v28  ;;  %v2145_v35 = vmul.f32 %v5467_v4, %v5467_v4 }
 0x3b2   : > { %v2061_v61 = vpop.xlane.xlu1 %2060  ;;  %v2424_v5 = vpack.c.bf16 %v2395_v7, %v2394_v22  ;;  %v2302_v33 = vsub.f32 0.0, %v5452_v50 }
 0x3b3   : > { %v4029_v34 = vpop.eup %4028  ;;  %4034 = vrsqrt.f32 %v2239_v16  ;;  %v2176_v31 = vsub.f32 %v2112_v18, %v2144_v44  ;;  %v2113_v15 = vmul.f32 0.0078125, %v2061_v61  ;;  %v2303_v44 = vsub.f32 0.0, %v5455_v47 }
 0x3b4   : > { %3778 = vmatprep.mubr.bf16.mxu0 %v2424_v5  ;;  %v1935_v14 = vpop.xlane.xlu0 %1934  ;;  %v2332_v3 = vmul.f32 %v4029_v34, %v2300_v39  ;;  %v2364_v63 = vmul.f32 %v4029_v34, %v5250_v60 }
 0x3b5   : > { %v4031_v25 = vpop.eup %4030  ;;  %v2208_v36 = vmax.f32 %v2176_v31, 0.0  ;;  %v2177_v57 = vsub.f32 %v2113_v15, %v2145_v35  ;;  %v5476_v32 = vmul.f32 0.0078125, %v1935_v14 }
 0x3b6   : > { %v1937_v38 = vpop.xlane.xlu1 %1936  ;;  %v2333_v40 = vmul.f32 %v4031_v25, %v2301_v48  ;;  %v2365_v29 = vmul.f32 %v4031_v25, %v5253_v52  ;;  %v2396_v11 = vadd.f32 %v2364_v63, %v2332_v3 }
 0x3b7   : > { %v2240_v37 = vadd.f32 1e-05, %v2208_v36  ;;  %v2209_v46 = vmax.f32 %v2177_v57, 0.0  ;;  %v5479_v24 = vmul.f32 0.0078125, %v1937_v38  ;;  %v2146_v60 = vmul.f32 %v5476_v32, %v5476_v32 }
 0x3b8   : > { %v2063_v8 = vpop.xlane.xlu0 %2062  ;;  %v2397_v1 = vadd.f32 %v2365_v29, %v2333_v40  ;;  %v2304_v40 = vsub.f32 0.0, %v5464_v27 }
 0x3b9   : > { %4036 = vrsqrt.f32 %v2240_v37  ;;  %v2241_v42 = vadd.f32 1e-05, %v2209_v46  ;;  %v2114_v2 = vmul.f32 0.0078125, %v2063_v8  ;;  %v2147_v52 = vmul.f32 %v5479_v24, %v5479_v24 }
 0x3ba   : > { %v2065_v30 = vpop.xlane.xlu1 %2064  ;;  %v2425_v28 = vpack.c.bf16 %v2397_v1, %v2396_v11  ;;  %v2305_v1 = vsub.f32 0.0, %v5467_v4 }
 0x3bb   : > { %v4033_v22 = vpop.eup %4032  ;;  %4038 = vrsqrt.f32 %v2241_v42  ;;  %v2178_v7 = vsub.f32 %v2114_v2, %v2146_v60  ;;  %v2115_v16 = vmul.f32 0.0078125, %v2065_v30 }
 0x3bc   : > { %3779 = vmatmul.mubr.bf16.gmra.mrb[68].mxu0 %v2425_v28  ;;  %v1939_v18 = vpop.xlane.xlu0 %1938  ;;  %v2334_v39 = vmul.f32 %v4033_v22, %v2302_v33  ;;  %v2366_v61 = vmul.f32 %v4033_v22, %v5265_v53 }
 0x3bd   : > { %v4035_v5 = vpop.eup %4034  ;;  %v2210_v34 = vmax.f32 %v2178_v7, 0.0  ;;  %v2179_v35 = vsub.f32 %v2115_v16, %v2147_v52  ;;  %v5488_v50 = vmul.f32 0.0078125, %v1939_v18 }
 0x3be   : > { %v1941_v31 = vpop.xlane.xlu1 %1940  ;;  %v2335_v15 = vmul.f32 %v4035_v5, %v2303_v44  ;;  %v2367_v48 = vmul.f32 %v4035_v5, %v5268_v54  ;;  %v2398_v47 = vadd.f32 %v2366_v61, %v2334_v39 }
 0x3bf   : > { %v2242_v14 = vadd.f32 1e-05, %v2210_v34  ;;  %v2211_v3 = vmax.f32 %v2179_v35, 0.0  ;;  %v5491_v63 = vmul.f32 0.0078125, %v1941_v31  ;;  %v2148_v53 = vmul.f32 %v5488_v50, %v5488_v50 }
 0x3c0   : > { %v2067_v25 = vpop.xlane.xlu0 %2066  ;;  %v2399_v36 = vadd.f32 %v2367_v48, %v2335_v15  ;;  %v2306_v35 = vsub.f32 0.0, %v5476_v32 }
 0x3c1   : > { %4040 = vrsqrt.f32 %v2242_v14  ;;  %v2243_v57 = vadd.f32 1e-05, %v2211_v3  ;;  %v2116_v38 = vmul.f32 0.0078125, %v2067_v25  ;;  %v2149_v54 = vmul.f32 %v5491_v63, %v5491_v63 }
 0x3c2   : > { %v2069_v29 = vpop.xlane.xlu1 %2068  ;;  %v2426_v37 = vpack.c.bf16 %v2399_v36, %v2398_v47  ;;  %v2307_v25 = vsub.f32 0.0, %v5479_v24 }
 0x3c3   : > { %v4037_v46 = vpop.eup %4036  ;;  %4042 = vrsqrt.f32 %v2243_v57  ;;  %v2180_v8 = vsub.f32 %v2116_v38, %v2148_v53  ;;  %v2117_v11 = vmul.f32 0.0078125, %v2069_v29 }
 0x3c4   : > { %3782 = vmatprep.mubr.bf16.mxu0 %v2426_v37  ;;  %v1943_v42 = vpop.xlane.xlu0 %1942  ;;  %v2336_v60 = vmul.f32 %v4037_v46, %v2304_v40  ;;  %v2368_v2 = vmul.f32 %v4037_v46, %v5283_v19 }
 0x3c5   : > { %v4039_v33 = vpop.eup %4038  ;;  %v2212_v30 = vmax.f32 %v2180_v8, 0.0  ;;  %v2181_v28 = vsub.f32 %v2117_v11, %v2149_v54  ;;  %v5500_v27 = vmul.f32 0.0078125, %v1943_v42 }
 0x3c6   : > { %v1945_v22 = vpop.xlane.xlu1 %1944  ;;  %v2337_v52 = vmul.f32 %v4039_v33, %v2305_v1  ;;  %v2369_v7 = vmul.f32 %v4039_v33, %v5286_v26  ;;  %v2400_v4 = vadd.f32 %v2368_v2, %v2336_v60  ;;  %v2308_v33 = vsub.f32 0.0, %v5488_v50 }
 0x3c7   : > { %v2244_v16 = vadd.f32 1e-05, %v2212_v30  ;;  %v2213_v44 = vmax.f32 %v2181_v28, 0.0  ;;  %v5503_v18 = vmul.f32 0.0078125, %v1945_v22  ;;  %v2150_v19 = vmul.f32 %v5500_v27, %v5500_v27 }
 0x3c8   : > { %v2071_v39 = vpop.xlane.xlu0 %2070  ;;  %v2401_v61 = vadd.f32 %v2369_v7, %v2337_v52 }
 0x3c9   : > { %4044 = vrsqrt.f32 %v2244_v16  ;;  %v2245_v5 = vadd.f32 1e-05, %v2213_v44  ;;  %v2118_v34 = vmul.f32 0.0078125, %v2071_v39  ;;  %v2151_v26 = vmul.f32 %v5503_v18, %v5503_v18 }
 0x3ca   : > { %v2073_v31 = vpop.xlane.xlu1 %2072  ;;  %v2427_v15 = vpack.c.bf16 %v2401_v61, %v2400_v4  ;;  %v2309_v16 = vsub.f32 0.0, %v5491_v63 }
 0x3cb   : > { %v4041_v48 = vpop.eup %4040  ;;  %4046 = vrsqrt.f32 %v2245_v5  ;;  %v2182_v14 = vsub.f32 %v2118_v34, %v2150_v19  ;;  %v2119_v3 = vmul.f32 0.0078125, %v2073_v31 }
 0x3cc   : > { %3783 = vmatmul.mubr.bf16.gmra.mrb[72].mxu0 %v2427_v15  ;;  %v1947_v47 = vpop.xlane.xlu0 %1946  ;;  %v2338_v36 = vmul.f32 %v4041_v48, %v2306_v35  ;;  %v2370_v57 = vmul.f32 %v4041_v48, %v5301_v12 }
 0x3cd   : > { %v4043_v53 = vpop.eup %4042  ;;  %v2214_v38 = vmax.f32 %v2182_v14, 0.0  ;;  %v2183_v40 = vsub.f32 %v2119_v3, %v2151_v26  ;;  %v5512_v32 = vmul.f32 0.0078125, %v1947_v47 }
 0x3ce   : > { %v1949_v29 = vpop.xlane.xlu1 %1948  ;;  %v2339_v37 = vmul.f32 %v4043_v53, %v2307_v25  ;;  %v2371_v46 = vmul.f32 %v4043_v53, %v5304_v43  ;;  %v2402_v24 = vadd.f32 %v2370_v57, %v2338_v36  ;;  %v2310_v36 = vsub.f32 0.0, %v5500_v27 }
 0x3cf   : > { %v2246_v54 = vadd.f32 1e-05, %v2214_v38  ;;  %v2215_v8 = vmax.f32 %v2183_v40, 0.0  ;;  %v5515_v11 = vmul.f32 0.0078125, %v1949_v29  ;;  %v2152_v12 = vmul.f32 %v5512_v32, %v5512_v32 }
 0x3d0   : > { %v2075_v1 = vpop.xlane.xlu0 %2074  ;;  %v2403_v42 = vadd.f32 %v2371_v46, %v2339_v37  ;;  %v2311_v37 = vsub.f32 0.0, %v5503_v18 }
 0x3d1   : > { %4048 = vrsqrt.f32 %v2246_v54  ;;  %v2247_v60 = vadd.f32 1e-05, %v2215_v8  ;;  %v2120_v2 = vmul.f32 0.0078125, %v2075_v1  ;;  %v2153_v43 = vmul.f32 %v5515_v11, %v5515_v11 }
 0x3d2   : > { %v2077_v30 = vpop.xlane.xlu1 %2076  ;;  %v2428_v28 = vpack.c.bf16 %v2403_v42, %v2402_v24 }
 0x3d3   : > { %v4045_v22 = vpop.eup %4044  ;;  %4050 = vrsqrt.f32 %v2247_v60  ;;  %v2184_v52 = vsub.f32 %v2120_v2, %v2152_v12  ;;  %v2121_v7 = vmul.f32 0.0078125, %v2077_v30 }
 0x3d4   : > { %3786 = vmatprep.mubr.bf16.mxu0 %v2428_v28  ;;  %v1951_v44 = vpop.xlane.xlu0 %1950  ;;  %v2340_v39 = vmul.f32 %v4045_v22, %v2308_v33  ;;  %v2372_v4 = vmul.f32 %v4045_v22, %v5316_v20 }
 0x3d5   : > { %v4047_v61 = vpop.eup %4046  ;;  %v2216_v5 = vmax.f32 %v2184_v52, 0.0  ;;  %v2185_v19 = vsub.f32 %v2121_v7, %v2153_v43  ;;  %v5524_v50 = vmul.f32 0.0078125, %v1951_v44 }
 0x3d6   : > { %v1953_v34 = vpop.xlane.xlu1 %1952  ;;  %v2341_v35 = vmul.f32 %v4047_v61, %v2309_v16  ;;  %v2373_v31 = vmul.f32 %v4047_v61, %v5319_v0  ;;  %v2404_v63 = vadd.f32 %v2372_v4, %v2340_v39  ;;  %v2312_v16 = vsub.f32 0.0, %v5512_v32 }
 0x3d7   : > { %v2248_v15 = vadd.f32 1e-05, %v2216_v5  ;;  %v2217_v48 = vmax.f32 %v2185_v19, 0.0  ;;  %v5527_v26 = vmul.f32 0.0078125, %v1953_v34  ;;  %v2154_v20 = vmul.f32 %v5524_v50, %v5524_v50 }
 0x3d8   : > { %v2079_v14 = vpop.xlane.xlu0 %2078  ;;  %v2405_v3 = vadd.f32 %v2373_v31, %v2341_v35  ;;  %v2313_v19 = vsub.f32 0.0, %v5515_v11 }
 0x3d9   : > { %4052 = vrsqrt.f32 %v2248_v15  ;;  %v2249_v25 = vadd.f32 1e-05, %v2217_v48  ;;  %v2122_v47 = vmul.f32 0.0078125, %v2079_v14  ;;  %v2155_v0 = vmul.f32 %v5527_v26, %v5527_v26 }
 0x3da   : > { %v2081_v57 = vpop.xlane.xlu1 %2080  ;;  %v2429_v53 = vpack.c.bf16 %v2405_v3, %v2404_v63 }
 0x3db   : > { %v4049_v38 = vpop.eup %4048  ;;  %4054 = vrsqrt.f32 %v2249_v25  ;;  %v2186_v40 = vsub.f32 %v2122_v47, %v2154_v20  ;;  %v2123_v29 = vmul.f32 0.0078125, %v2081_v57 }
 0x3dc   : > { %3787 = vmatmul.mubr.bf16.gmra.mrb[76].mxu0 %v2429_v53  ;;  %v1955_v46 = vpop.xlane.xlu0 %1954  ;;  %v2342_v54 = vmul.f32 %v4049_v38, %v2310_v36  ;;  %v2374_v8 = vmul.f32 %v4049_v38, %v5328_v62 }
 0x3dd   : > { %v4051_v1 = vpop.eup %4050  ;;  %v2218_v24 = vmax.f32 %v2186_v40, 0.0  ;;  %v2187_v42 = vsub.f32 %v2123_v29, %v2155_v0  ;;  %v5536_v27 = vmul.f32 0.0078125, %v1955_v46  ;;  %v2314_v40 = vsub.f32 0.0, %v5524_v50 }
 0x3de   : > { %v1957_v60 = vpop.xlane.xlu1 %1956  ;;  %v2343_v12 = vmul.f32 %v4051_v1, %v2311_v37  ;;  %v2375_v2 = vmul.f32 %v4051_v1, %v5331_v9  ;;  %v2406_v18 = vadd.f32 %v2374_v8, %v2342_v54  ;;  %v2315_v1 = vsub.f32 0.0, %v5527_v26 }
 0x3df   : > { %v2250_v33 = vadd.f32 1e-05, %v2218_v24  ;;  %v2219_v30 = vmax.f32 %v2187_v42, 0.0  ;;  %v5539_v28 = vmul.f32 0.0078125, %v1957_v60  ;;  %v2156_v62 = vmul.f32 %v5536_v27, %v5536_v27 }
 0x3e0   : > { %v2083_v22 = vpop.xlane.xlu0 %2082  ;;  %v2407_v43 = vadd.f32 %v2375_v2, %v2343_v12 }
 0x3e1   : > { %4056 = vrsqrt.f32 %v2250_v33  ;;  %v2251_v52 = vadd.f32 1e-05, %v2219_v30  ;;  %v2124_v7 = vmul.f32 0.0078125, %v2083_v22  ;;  %v2157_v9 = vmul.f32 %v5539_v28, %v5539_v28 }
 0x3e2   : > { %v2085_v44 = vpop.xlane.xlu1 %2084  ;;  %v2430_v39 = vpack.c.bf16 %v2407_v43, %v2406_v18 }
 0x3e3   : > { %v4053_v4 = vpop.eup %4052  ;;  %4058 = vrsqrt.f32 %v2251_v52  ;;  %v2188_v61 = vsub.f32 %v2124_v7, %v2156_v62  ;;  %v2125_v5 = vmul.f32 0.0078125, %v2085_v44 }
 0x3e4   : > { %3790 = vmatprep.mubr.bf16.mxu0 %v2430_v39  ;;  %v1959_v34 = vpop.xlane.xlu0 %1958  ;;  %v2344_v35 = vmul.f32 %v4053_v4, %v2312_v16  ;;  %v2376_v31 = vmul.f32 %v4053_v4, %v5340_v21  ;;  %v2316_v4 = vsub.f32 0.0, %v5536_v27 }
 0x3e5   : > { %v4055_v15 = vpop.eup %4054  ;;  %v2220_v48 = vmax.f32 %v2188_v61, 0.0  ;;  %v2189_v14 = vsub.f32 %v2125_v5, %v2157_v9  ;;  %v5548_v32 = vmul.f32 0.0078125, %v1959_v34 }
 0x3e6   : > { %v1961_v63 = vpop.xlane.xlu1 %1960  ;;  %v2345_v3 = vmul.f32 %v4055_v15, %v2313_v19  ;;  %v2377_v25 = vmul.f32 %v4055_v15, %v5343_v49  ;;  %v2408_v11 = vadd.f32 %v2376_v31, %v2344_v35  ;;  %v2317_v35 = vsub.f32 0.0, %v5539_v28 }
 0x3e7   : > { %v2252_v20 = vadd.f32 1e-05, %v2220_v48  ;;  %v2221_v47 = vmax.f32 %v2189_v14, 0.0  ;;  %v5551_v36 = vmul.f32 0.0078125, %v1961_v63  ;;  %v2158_v21 = vmul.f32 %v5548_v32, %v5548_v32 }
 0x3e8   : > { %v2087_v57 = vpop.xlane.xlu0 %2086  ;;  %v2409_v53 = vadd.f32 %v2377_v25, %v2345_v3 }
 0x3e9   : > { %4060 = vrsqrt.f32 %v2252_v20  ;;  %v2253_v38 = vadd.f32 1e-05, %v2221_v47  ;;  %v2126_v0 = vmul.f32 0.0078125, %v2087_v57  ;;  %v2159_v49 = vmul.f32 %v5551_v36, %v5551_v36 }
 0x3ea   : > { %v2089_v29 = vpop.xlane.xlu1 %2088  ;;  %v2431_v37 = vpack.c.bf16 %v2409_v53, %v2408_v11 }
 0x3eb   : > { %v4057_v46 = vpop.eup %4056  ;;  %4062 = vrsqrt.f32 %v2253_v38  ;;  %v2190_v54 = vsub.f32 %v2126_v0, %v2158_v21  ;;  %v2127_v8 = vmul.f32 0.0078125, %v2089_v29  ;;  %v2318_v29 = vsub.f32 0.0, %v5548_v32 }
 0x3ec   : > { %3791 = vmatmul.mubr.bf16.gmra.mrb[80].mxu0 %v2431_v37  ;;  %v1963_v24 = vpop.xlane.xlu0 %1962  ;;  %v2346_v42 = vmul.f32 %v4057_v46, %v2314_v40  ;;  %v2378_v60 = vmul.f32 %v4057_v46, %v5352_v17 }
 0x3ed   : > { %v4059_v12 = vpop.eup %4058  ;;  %v2222_v2 = vmax.f32 %v2190_v54, 0.0  ;;  %v2191_v33 = vsub.f32 %v2127_v8, %v2159_v49  ;;  %v5560_v50 = vmul.f32 0.0078125, %v1963_v24 }
 0x3ee   : > { %v1965_v30 = vpop.xlane.xlu1 %1964  ;;  %v2347_v22 = vmul.f32 %v4059_v12, %v2315_v1  ;;  %v2379_v18 = vmul.f32 %v4059_v12, %v5355_v45  ;;  %v2410_v26 = vadd.f32 %v2378_v60, %v2346_v42  ;;  %v2319_v1 = vsub.f32 0.0, %v5551_v36 }
 0x3ef   : > { %v2254_v43 = vadd.f32 1e-05, %v2222_v2  ;;  %v2223_v52 = vmax.f32 %v2191_v33, 0.0  ;;  %v5563_v62 = vmul.f32 0.0078125, %v1965_v30  ;;  %v2160_v17 = vmul.f32 %v5560_v50, %v5560_v50 }
 0x3f0   : > { %v2091_v7 = vpop.xlane.xlu0 %2090  ;;  %v2411_v16 = vadd.f32 %v2379_v18, %v2347_v22 }
 0x3f1   : > { %4064 = vrsqrt.f32 %v2254_v43  ;;  %v2255_v44 = vadd.f32 1e-05, %v2223_v52  ;;  %v2128_v39 = vmul.f32 0.0078125, %v2091_v7  ;;  %v2161_v45 = vmul.f32 %v5563_v62, %v5563_v62 }
 0x3f2   : > { %v2093_v9 = vpop.xlane.xlu1 %2092  ;;  %v2432_v61 = vpack.c.bf16 %v2411_v16, %v2410_v26 }
 0x3f3   : > { %v4061_v5 = vpop.eup %4060  ;;  %4066 = vrsqrt.f32 %v2255_v44  ;;  %v2192_v19 = vsub.f32 %v2128_v39, %v2160_v17  ;;  %v2129_v34 = vmul.f32 0.0078125, %v2093_v9 }
 0x3f4   : > { %3794 = vmatprep.mubr.bf16.mxu0 %v2432_v61  ;;  %v1967_v31 = vpop.xlane.xlu0 %1966  ;;  %v2348_v15 = vmul.f32 %v4061_v5, %v2316_v4  ;;  %v2380_v48 = vmul.f32 %v4061_v5, %v5364_v51 }
 0x3f5   : > { %v4063_v14 = vpop.eup %4062  ;;  %v2224_v63 = vmax.f32 %v2192_v19, 0.0  ;;  %v2193_v3 = vsub.f32 %v2129_v34, %v2161_v45  ;;  %v5572_v27 = vmul.f32 0.0078125, %v1967_v31 }
 0x3f6   : > { %v1969_v25 = vpop.xlane.xlu1 %1968  ;;  %v2349_v20 = vmul.f32 %v4063_v14, %v2317_v35  ;;  %v2381_v47 = vmul.f32 %v4063_v14, %v5367_v41  ;;  %v2412_v28 = vadd.f32 %v2380_v48, %v2348_v15 }
 0x3f7   : > { %v2256_v57 = vadd.f32 1e-05, %v2224_v63  ;;  %v2225_v11 = vmax.f32 %v2193_v3, 0.0  ;;  %v5575_v53 = vmul.f32 0.0078125, %v1969_v25  ;;  %v2162_v51 = vmul.f32 %v5572_v27, %v5572_v27 }
 0x3f8   : > { %v2095_v38 = vpop.xlane.xlu0 %2094  ;;  %v2413_v21 = vadd.f32 %v2381_v47, %v2349_v20 }
 0x3f9   : > { %4068 = vrsqrt.f32 %v2256_v57  ;;  %v2257_v0 = vadd.f32 1e-05, %v2225_v11  ;;  %v2130_v40 = vmul.f32 0.0078125, %v2095_v38  ;;  %v2163_v41 = vmul.f32 %v5575_v53, %v5575_v53 }
 0x3fa   : > { %v2097_v37 = vpop.xlane.xlu1 %2096  ;;  %v2433_v46 = vpack.c.bf16 %v2413_v21, %v2412_v28  ;;  %v2322_v57 = vsub.f32 0.0, %v5572_v27  ;;  %v2323_v38 = vsub.f32 0.0, %v5575_v53 }
 0x3fb   : > { %v4065_v49 = vpop.eup %4064  ;;  %4070 = vrsqrt.f32 %v2257_v0  ;;  %v2194_v54 = vsub.f32 %v2130_v40, %v2162_v51  ;;  %v2131_v8 = vmul.f32 0.0078125, %v2097_v37 }
 0x3fc   : > { %3795 = vmatmul.mubr.bf16.gmra.mrb[84].mxu0 %v2433_v46  ;;  %v1971_v24 = vpop.xlane.xlu0 %1970  ;;  %v2350_v42 = vmul.f32 %v4065_v49, %v2318_v29  ;;  %v2382_v60 = vmul.f32 %v4065_v49, %v5376_v23  ;;  %v2320_v23 = vsub.f32 0.0, %v5560_v50 }
 0x3fd   : > { %v4067_v12 = vpop.eup %4066  ;;  %v2226_v2 = vmax.f32 %v2194_v54, 0.0  ;;  %v2195_v33 = vsub.f32 %v2131_v8, %v2163_v41  ;;  %v2004_v32 = vmul.f32 0.0078125, %v1971_v24 }
 0x3fe   : > { %v1973_v30 = vpop.xlane.xlu1 %1972  ;;  %v2351_v22 = vmul.f32 %v4067_v12, %v2319_v1  ;;  %v2383_v18 = vmul.f32 %v4067_v12, %v5379_v56  ;;  %v2414_v16 = vadd.f32 %v2382_v60, %v2350_v42  ;;  %v2321_v56 = vsub.f32 0.0, %v5563_v62 }
 0x3ff   : > { %v2258_v43 = vadd.f32 1e-05, %v2226_v2  ;;  %v2227_v52 = vmax.f32 %v2195_v33, 0.0  ;;  %v2005_v7 = vmul.f32 0.0078125, %v1973_v30  ;;  %v2164_v17 = vmul.f32 %v2004_v32, %v2004_v32 }
 0x400   : > { %v2099_v26 = vpop.xlane.xlu0 %2098  ;;  %v2415_v44 = vadd.f32 %v2383_v18, %v2351_v22  ;;  %v2324_v29 = vsub.f32 0.0, %v2004_v32 }
 0x401   : > { %4072 = vrsqrt.f32 %v2258_v43  ;;  %v2259_v36 = vadd.f32 1e-05, %v2227_v52  ;;  %v2132_v39 = vmul.f32 0.0078125, %v2099_v26  ;;  %v2165_v5 = vmul.f32 %v2005_v7, %v2005_v7 }
 0x402   : > { %v2101_v4 = vpop.xlane.xlu1 %2100  ;;  %v2434_v9 = vpack.c.bf16 %v2415_v44, %v2414_v16  ;;  %v2325_v49 = vsub.f32 0.0, %v2005_v7 }
 0x403   : > { %v4069_v61 = vpop.eup %4068  ;;  %4074 = vrsqrt.f32 %v2259_v36  ;;  %v2196_v45 = vsub.f32 %v2132_v39, %v2164_v17  ;;  %v2133_v19 = vmul.f32 0.0078125, %v2101_v4 }
 0x404   : > { %3798 = vmatprep.mubr.bf16.mxu0 %v2434_v9  ;;  %v2352_v34 = vmul.f32 %v4069_v61, %v2320_v23  ;;  %v2384_v35 = vmul.f32 %v4069_v61, %v5388_v10 }
 0x405   : > { %v4071_v31 = vpop.eup %4070  ;;  %v2228_v15 = vmax.f32 %v2196_v45, 0.0  ;;  %v2197_v48 = vsub.f32 %v2133_v19, %v2165_v5 }
 0x406   : > { %v2353_v14 = vmul.f32 %v4071_v31, %v2321_v56  ;;  %v2385_v63 = vmul.f32 %v4071_v31, %v5391_v59  ;;  %v2416_v25 = vadd.f32 %v2384_v35, %v2352_v34 }
 0x407   : > { %v2260_v50 = vadd.f32 1e-05, %v2228_v15  ;;  %v2229_v3 = vmax.f32 %v2197_v48, 0.0 }
 0x408   : > { %v2417_v20 = vadd.f32 %v2385_v63, %v2353_v14 }
 0x409   : > { %4076 = vrsqrt.f32 %v2260_v50  ;;  %v2261_v47 = vadd.f32 1e-05, %v2229_v3 }
 0x40a   : > { %v2435_v11 = vpack.c.bf16 %v2417_v20, %v2416_v25 }
 0x40b   : > { %v4073_v62 = vpop.eup %4072  ;;  %4078 = vrsqrt.f32 %v2261_v47 }
 0x40c   : > { %3799 = vmatmul.mubr.bf16.gmra.mrb[88].mxu0 %v2435_v11  ;;  %v2354_v10 = vmul.f32 %v4073_v62, %v2322_v57  ;;  %v2386_v28 = vmul.f32 %v4073_v62, %v5400_v58 }
 0x40d   : > { %v4075_v21 = vpop.eup %4074 }
 0x40e   : > { %v2355_v0 = vmul.f32 %v4075_v21, %v2323_v38  ;;  %v2387_v59 = vmul.f32 %v4075_v21, %v5403_v55  ;;  %v2418_v51 = vadd.f32 %v2386_v28, %v2354_v10  ;;  %v5598_v55 = vld [vmem:[%s6200_s6] ss:$0 sm:$0xff] }
 0x410   : > { %v2419_v40 = vadd.f32 %v2387_v59, %v2355_v0 }
 0x412   : > { %v2436_v37 = vpack.c.bf16 %v2419_v40, %v2418_v51 }
 0x413   : > { %v4077_v46 = vpop.eup %4076 }
 0x414   : > { %3802 = vmatprep.mubr.bf16.mxu0 %v2436_v37  ;;  %v2356_v27 = vmul.f32 %v4077_v46, %v2324_v29  ;;  %v2388_v41 = vmul.f32 %v4077_v46, %v5412_v13 }
 0x415   : > { %v4079_v54 = vpop.eup %4078 }
 0x416   : > { %v2357_v53 = vmul.f32 %v4079_v54, %v2325_v49  ;;  %v2389_v8 = vmul.f32 %v4079_v54, %v5415_v6  ;;  %v2420_v1 = vadd.f32 %v2388_v41, %v2356_v27 }
 0x418   : > { %v2421_v58 = vadd.f32 %v2389_v8, %v2357_v53 }
 0x41a   : > { %v2437_v24 = vpack.c.bf16 %v2421_v58, %v2420_v1 }
 0x41c   : > { %3803 = vmatmul.mubr.bf16.gmra.mrb[92].mxu0 %v2437_v24 }
 0x47f   : > { %v3776_v42 = vpop.f32.mrb[64].mxu0 }
 0x480   : > { %v2552_v60 = vadd.f32 %v3776_v42, %v5598_v55  ;;  %v2543_v12 = vpop.f32.mrb[65].mxu0 }
 0x481   : > { %v2544_v2 = vadd.f32 %v5598_v55, %v2543_v12  ;;  %v3777_v13 = vpop.f32.mrb[66].mxu0 }
 0x482   : > { %v5602_v33 = vmax.f32 %v2552_v60, 0.0  ;;  %v2555_v6 = vadd.f32 %v3777_v13, %v5598_v55  ;;  %v2546_v32 = vpop.f32.mrb[67].mxu0 }
 0x483   : > { %v2547_v30 = vadd.f32 %v5598_v55, %v2546_v32  ;;  %v5606_v22 = vmax.f32 %v2544_v2, 0.0 }
 0x484   : > { %v5608_v18 = vmax.f32 %v2555_v6, 0.0  ;;  %v2709_v43 = vsel %vm2702_vm0, %v5602_v33, 0.0  ;;  %v2833_v16 = vmul.f32 %v5602_v33, %v5602_v33 }
 0x485   : > { %2710 = vadd.xlane.f32.xlu0 %v2709_v43  ;;  %v5612_v52 = vmax.f32 %v2547_v30, 0.0  ;;  %v2703_v26 = vsel %vm2702_vm0, %v5606_v22, 0.0  ;;  %v2831_v39 = vmul.f32 %v5606_v22, %v5606_v22 }
 0x486   : > { %v2712_v7 = vsel %vm2702_vm0, %v5608_v18, 0.0  ;;  %v2834_v36 = vmul.f32 %v5608_v18, %v5608_v18  ;;  %v2869_v17 = vsel %vm2702_vm0, %v2833_v16, 0.0 }
 0x487   : > { %2713 = vadd.xlane.f32.xlu1 %v2712_v7  ;;  %v2706_v44 = vsel %vm2702_vm0, %v5612_v52, 0.0  ;;  %v2832_v4 = vmul.f32 %v5612_v52, %v5612_v52  ;;  %v2863_v45 = vsel %vm2702_vm0, %v2831_v39, 0.0 }
 0x488   : > { %v2872_v23 = vsel %vm2702_vm0, %v2834_v36, 0.0 }
 0x489   : > { %2704 = vadd.xlane.f32.xlu0 %v2703_v26  ;;  %v2866_v15 = vsel %vm2702_vm0, %v2832_v4, 0.0 }
 0x48b   : > { %2707 = vadd.xlane.f32.xlu1 %v2706_v44 }
 0x48d   : > { %2870 = vadd.xlane.f32.xlu0 %v2869_v17 }
 0x48f   : > { %2873 = vadd.xlane.f32.xlu1 %v2872_v23  ;;  %v3780_v9 = vpop.f32.mrb[68].mxu0 }
 0x490   : > { %v2568_v61 = vadd.f32 %v3780_v9, %v5598_v55  ;;  %v2559_v5 = vpop.f32.mrb[69].mxu0 }
 0x491   : > { %v2560_v19 = vadd.f32 %v5598_v55, %v2559_v5  ;;  %2864 = vadd.xlane.f32.xlu0 %v2863_v45  ;;  %v3781_v56 = vpop.f32.mrb[70].mxu0 }
 0x492   : > { %v5633_v34 = vmax.f32 %v2568_v61, 0.0  ;;  %v2571_v35 = vadd.f32 %v3781_v56, %v5598_v55  ;;  %v2562_v31 = vpop.f32.mrb[71].mxu0 }
 0x493   : > { %v2563_v48 = vadd.f32 %v5598_v55, %v2562_v31  ;;  %2867 = vadd.xlane.f32.xlu1 %v2866_v15  ;;  %v5638_v14 = vmax.f32 %v2560_v19, 0.0 }
 0x494   : > { %v5640_v63 = vmax.f32 %v2571_v35, 0.0  ;;  %v2721_v50 = vsel %vm2702_vm0, %v5633_v34, 0.0  ;;  %v2837_v47 = vmul.f32 %v5633_v34, %v5633_v34 }
 0x495   : > { %2722 = vadd.xlane.f32.xlu0 %v2721_v50  ;;  %v5644_v3 = vmax.f32 %v2563_v48, 0.0  ;;  %v2715_v20 = vsel %vm2702_vm0, %v5638_v14, 0.0  ;;  %v2835_v38 = vmul.f32 %v5638_v14, %v5638_v14 }
 0x496   : > { %v2724_v25 = vsel %vm2702_vm0, %v5640_v63, 0.0  ;;  %v2838_v11 = vmul.f32 %v5640_v63, %v5640_v63  ;;  %v2881_v62 = vsel %vm2702_vm0, %v2837_v47, 0.0 }
 0x497   : > { %2725 = vadd.xlane.f32.xlu1 %v2724_v25  ;;  %v2718_v57 = vsel %vm2702_vm0, %v5644_v3, 0.0  ;;  %v2836_v28 = vmul.f32 %v5644_v3, %v5644_v3  ;;  %v2875_v51 = vsel %vm2702_vm0, %v2835_v38, 0.0 }
 0x498   : > { %v2884_v10 = vsel %vm2702_vm0, %v2838_v11, 0.0 }
 0x499   : > { %2716 = vadd.xlane.f32.xlu0 %v2715_v20  ;;  %v2878_v27 = vsel %vm2702_vm0, %v2836_v28, 0.0 }
 0x49b   : > { %2719 = vadd.xlane.f32.xlu1 %v2718_v57 }
 0x49d   : > { %2882 = vadd.xlane.f32.xlu0 %v2881_v62 }
 0x49f   : > { %2885 = vadd.xlane.f32.xlu1 %v2884_v10  ;;  %v3784_v21 = vpop.f32.mrb[72].mxu0 }
 0x4a0   : > { %v2584_v0 = vadd.f32 %v3784_v21, %v5598_v55  ;;  %v2575_v59 = vpop.f32.mrb[73].mxu0 }
 0x4a1   : > { %v2576_v40 = vadd.f32 %v5598_v55, %v2575_v59  ;;  %2876 = vadd.xlane.f32.xlu0 %v2875_v51  ;;  %v3785_v29 = vpop.f32.mrb[74].mxu0 }
 0x4a2   : > { %v5665_v37 = vmax.f32 %v2584_v0, 0.0  ;;  %v2587_v46 = vadd.f32 %v3785_v29, %v5598_v55  ;;  %v2578_v49 = vpop.f32.mrb[75].mxu0 }
 0x4a3   : > { %v2579_v41 = vadd.f32 %v5598_v55, %v2578_v49  ;;  %2879 = vadd.xlane.f32.xlu1 %v2878_v27  ;;  %v5670_v54 = vmax.f32 %v2576_v40, 0.0 }
 0x4a4   : > { %v5672_v53 = vmax.f32 %v2587_v46, 0.0  ;;  %v2733_v8 = vsel %vm2702_vm0, %v5665_v37, 0.0  ;;  %v2841_v42 = vmul.f32 %v5665_v37, %v5665_v37 }
 0x4a5   : > { %2734 = vadd.xlane.f32.xlu0 %v2733_v8  ;;  %v5676_v1 = vmax.f32 %v2579_v41, 0.0  ;;  %v2727_v24 = vsel %vm2702_vm0, %v5670_v54, 0.0  ;;  %v2839_v13 = vmul.f32 %v5670_v54, %v5670_v54 }
 0x4a6   : > { %v2736_v58 = vsel %vm2702_vm0, %v5672_v53, 0.0  ;;  %v2842_v12 = vmul.f32 %v5672_v53, %v5672_v53  ;;  %v2893_v2 = vsel %vm2702_vm0, %v2841_v42, 0.0 }
 0x4a7   : > { %2737 = vadd.xlane.f32.xlu1 %v2736_v58  ;;  %v2730_v60 = vsel %vm2702_vm0, %v5676_v1, 0.0  ;;  %v2840_v32 = vmul.f32 %v5676_v1, %v5676_v1  ;;  %v2887_v7 = vsel %vm2702_vm0, %v2839_v13, 0.0 }
 0x4a8   : > { %v2896_v6 = vsel %vm2702_vm0, %v2842_v12, 0.0 }
 0x4a9   : > { %2728 = vadd.xlane.f32.xlu0 %v2727_v24  ;;  %v2890_v36 = vsel %vm2702_vm0, %v2840_v32, 0.0 }
 0x4ab   : > { %2731 = vadd.xlane.f32.xlu1 %v2730_v60 }
 0x4ad   : > { %2894 = vadd.xlane.f32.xlu0 %v2893_v2 }
 0x4af   : > { %2897 = vadd.xlane.f32.xlu1 %v2896_v6  ;;  %v5694_v30 = vpop.f32.mrb[76].mxu0 }
 0x4b0   : > { %v2591_v43 = vpop.f32.mrb[77].mxu0 }
 0x4b1   : > { %v2592_v26 = vadd.f32 %v5598_v55, %v2591_v43  ;;  %2888 = vadd.xlane.f32.xlu0 %v2887_v7  ;;  %v5698_v16 = vpop.f32.mrb[78].mxu0 }
 0x4b2   : > { %v2594_v44 = vpop.f32.mrb[79].mxu0 }
 0x4b3   : > { %v5701_v17 = vmax.f32 %v2592_v26, 0.0  ;;  %v2595_v39 = vadd.f32 %v5598_v55, %v2594_v44  ;;  %2891 = vadd.xlane.f32.xlu1 %v2890_v36 }
 0x4b5   : > { %v5704_v23 = vmax.f32 %v2595_v39, 0.0  ;;  %v2739_v4 = vsel %vm2702_vm0, %v5701_v17, 0.0  ;;  %v2843_v9 = vmul.f32 %v5701_v17, %v5701_v17 }
 0x4b6   : > { %2740 = vadd.xlane.f32.xlu0 %v2739_v4 }
 0x4b7   : > { %v2742_v61 = vsel %vm2702_vm0, %v5704_v23, 0.0  ;;  %v2844_v5 = vmul.f32 %v5704_v23, %v5704_v23  ;;  %v2899_v45 = vsel %vm2702_vm0, %v2843_v9, 0.0 }
 0x4b8   : > { %2743 = vadd.xlane.f32.xlu1 %v2742_v61 }
 0x4b9   : > { %v2902_v19 = vsel %vm2702_vm0, %v2844_v5, 0.0 }
 0x4ba   : > { %2900 = vadd.xlane.f32.xlu0 %v2899_v45 }
 0x4bc   : > { %2903 = vadd.xlane.f32.xlu1 %v2902_v19 }
 0x4bf   : > { %v3792_v56 = vpop.f32.mrb[80].mxu0 }
 0x4c0   : > { %v2616_v35 = vadd.f32 %v3792_v56, %v5598_v55  ;;  %v2607_v31 = vpop.f32.mrb[81].mxu0 }
 0x4c1   : > { %v2608_v15 = vadd.f32 %v5598_v55, %v2607_v31  ;;  %v3793_v48 = vpop.f32.mrb[82].mxu0 }
 0x4c2   : > { %v5718_v50 = vmax.f32 %v2616_v35, 0.0  ;;  %v2619_v25 = vadd.f32 %v3793_v48, %v5598_v55  ;;  %v2610_v20 = vpop.f32.mrb[83].mxu0 }
 0x4c3   : > { %v2611_v47 = vadd.f32 %v5598_v55, %v2610_v20  ;;  %v5722_v57 = vmax.f32 %v2608_v15, 0.0 }
 0x4c4   : > { %v5724_v11 = vmax.f32 %v2619_v25, 0.0  ;;  %v2757_v62 = vsel %vm2702_vm0, %v5718_v50, 0.0  ;;  %v2849_v21 = vmul.f32 %v5718_v50, %v5718_v50 }
 0x4c5   : > { %2758 = vadd.xlane.f32.xlu0 %v2757_v62  ;;  %v5728_v38 = vmax.f32 %v2611_v47, 0.0  ;;  %v2751_v28 = vsel %vm2702_vm0, %v5722_v57, 0.0  ;;  %v2847_v40 = vmul.f32 %v5722_v57, %v5722_v57 }
 0x4c6   : > { %v2760_v10 = vsel %vm2702_vm0, %v5724_v11, 0.0  ;;  %v2850_v59 = vmul.f32 %v5724_v11, %v5724_v11  ;;  %v2917_v51 = vsel %vm2702_vm0, %v2849_v21, 0.0 }
 0x4c7   : > { %2761 = vadd.xlane.f32.xlu1 %v2760_v10  ;;  %v2754_v0 = vsel %vm2702_vm0, %v5728_v38, 0.0  ;;  %v2848_v46 = vmul.f32 %v5728_v38, %v5728_v38  ;;  %v2911_v8 = vsel %vm2702_vm0, %v2847_v40, 0.0 }
 0x4c8   : > { %v2920_v29 = vsel %vm2702_vm0, %v2850_v59, 0.0 }
 0x4c9   : > { %2752 = vadd.xlane.f32.xlu0 %v2751_v28  ;;  %v2914_v2 = vsel %vm2702_vm0, %v2848_v46, 0.0 }
 0x4cb   : > { %2755 = vadd.xlane.f32.xlu1 %v2754_v0 }
 0x4cd   : > { %2918 = vadd.xlane.f32.xlu0 %v2917_v51 }
 0x4cf   : > { %2921 = vadd.xlane.f32.xlu1 %v2920_v29  ;;  %v3796_v49 = vpop.f32.mrb[84].mxu0 }
 0x4d0   : > { %v2632_v27 = vadd.f32 %v3796_v49, %v5598_v55  ;;  %v2623_v41 = vpop.f32.mrb[85].mxu0 }
 0x4d1   : > { %v2624_v58 = vadd.f32 %v5598_v55, %v2623_v41  ;;  %2912 = vadd.xlane.f32.xlu0 %v2911_v8  ;;  %v3797_v24 = vpop.f32.mrb[86].mxu0 }
 0x4d2   : > { %v5749_v42 = vmax.f32 %v2632_v27, 0.0  ;;  %v2635_v60 = vadd.f32 %v3797_v24, %v5598_v55  ;;  %v2626_v12 = vpop.f32.mrb[87].mxu0  ;;  %v2600_v27 = vadd.f32 %v5694_v30, %v5598_v55 }
 0x4d3   : > { %v2627_v13 = vadd.f32 %v5598_v55, %v2626_v12  ;;  %2915 = vadd.xlane.f32.xlu1 %v2914_v2  ;;  %v5754_v6 = vmax.f32 %v2624_v58, 0.0  ;;  %v2603_v58 = vadd.f32 %v5698_v16, %v5598_v55 }
 0x4d4   : > { %v5756_v32 = vmax.f32 %v2635_v60, 0.0  ;;  %v2769_v43 = vsel %vm2702_vm0, %v5749_v42, 0.0  ;;  %v2853_v36 = vmul.f32 %v5749_v42, %v5749_v42  ;;  %v5814_v2 = vmax.f32 %v2600_v27, 0.0 }
 0x4d5   : > { %2770 = vadd.xlane.f32.xlu0 %v2769_v43  ;;  %v5760_v7 = vmax.f32 %v2627_v13, 0.0  ;;  %v2763_v44 = vsel %vm2702_vm0, %v5754_v6, 0.0  ;;  %v2851_v61 = vmul.f32 %v5754_v6, %v5754_v6 }
 0x4d6   : > { %v2772_v26 = vsel %vm2702_vm0, %v5756_v32, 0.0  ;;  %v2854_v4 = vmul.f32 %v5756_v32, %v5756_v32  ;;  %v2929_v9 = vsel %vm2702_vm0, %v2853_v36, 0.0  ;;  %6315 = vst [vmem:[#allocation14_spill] sm:$0xff] %v5814_v2 }
 0x4d7   : > { %2773 = vadd.xlane.f32.xlu1 %v2772_v26  ;;  %v2766_v39 = vsel %vm2702_vm0, %v5760_v7, 0.0  ;;  %v2852_v45 = vmul.f32 %v5760_v7, %v5760_v7  ;;  %v2923_v31 = vsel %vm2702_vm0, %v2851_v61, 0.0  ;;  %v2745_v61 = vsel %vm2702_vm0, %v5814_v2, 0.0 }
 0x4d8   : > { %v2932_v5 = vsel %vm2702_vm0, %v2854_v4, 0.0 }
 0x4d9   : > { %2764 = vadd.xlane.f32.xlu0 %v2763_v44  ;;  %v2926_v62 = vsel %vm2702_vm0, %v2852_v45, 0.0  ;;  %v5818_v44 = vmax.f32 %v2603_v58, 0.0 }
 0x4db   : > { %2767 = vadd.xlane.f32.xlu1 %v2766_v39  ;;  %6316 = vst [vmem:[#allocation16_spill] sm:$0xff] %v5818_v44 }
 0x4dd   : > { %2930 = vadd.xlane.f32.xlu0 %v2929_v9 }
 0x4df   : > { %2933 = vadd.xlane.f32.xlu1 %v2932_v5  ;;  %v3800_v19 = vpop.f32.mrb[88].mxu0 }
 0x4e0   : > { %v2648_v56 = vadd.f32 %v3800_v19, %v5598_v55  ;;  %v2639_v35 = vpop.f32.mrb[89].mxu0  ;;  %v2748_v19 = vsel %vm2702_vm0, %v5818_v44, 0.0 }
 0x4e1   : > { %v2640_v15 = vadd.f32 %v5598_v55, %v2639_v35  ;;  %2924 = vadd.xlane.f32.xlu0 %v2923_v31  ;;  %v3801_v48 = vpop.f32.mrb[90].mxu0 }
 0x4e2   : > { %v5781_v25 = vmax.f32 %v2648_v56, 0.0  ;;  %v2651_v20 = vadd.f32 %v3801_v48, %v5598_v55  ;;  %v2642_v47 = vpop.f32.mrb[91].mxu0 }
 0x4e3   : > { %v2643_v10 = vadd.f32 %v5598_v55, %v2642_v47  ;;  %2927 = vadd.xlane.f32.xlu1 %v2926_v62  ;;  %v5786_v28 = vmax.f32 %v2640_v15, 0.0 }
 0x4e4   : > { %v5788_v21 = vmax.f32 %v2651_v20, 0.0  ;;  %v2781_v0 = vsel %vm2702_vm0, %v5781_v25, 0.0  ;;  %v2857_v29 = vmul.f32 %v5781_v25, %v5781_v25 }
 0x4e5   : > { %2782 = vadd.xlane.f32.xlu0 %v2781_v0  ;;  %v5792_v59 = vmax.f32 %v2643_v10, 0.0  ;;  %v2775_v40 = vsel %vm2702_vm0, %v5786_v28, 0.0  ;;  %v2855_v8 = vmul.f32 %v5786_v28, %v5786_v28  ;;  %v2845_v10 = vmul.f32 %v5814_v2, %v5814_v2 }
 0x4e6   : > { %v2784_v51 = vsel %vm2702_vm0, %v5788_v21, 0.0  ;;  %v2858_v49 = vmul.f32 %v5788_v21, %v5788_v21  ;;  %v2941_v41 = vsel %vm2702_vm0, %v2857_v29, 0.0 }
 0x4e7   : > { %2785 = vadd.xlane.f32.xlu1 %v2784_v51  ;;  %v2778_v46 = vsel %vm2702_vm0, %v5792_v59, 0.0  ;;  %v2856_v60 = vmul.f32 %v5792_v59, %v5792_v59  ;;  %v2935_v43 = vsel %vm2702_vm0, %v2855_v8, 0.0  ;;  %v2846_v51 = vmul.f32 %v5818_v44, %v5818_v44 }
 0x4e8   : > { %v2944_v24 = vsel %vm2702_vm0, %v2858_v49, 0.0 }
 0x4e9   : > { %2776 = vadd.xlane.f32.xlu0 %v2775_v40  ;;  %v2938_v39 = vsel %vm2702_vm0, %v2856_v60, 0.0  ;;  %v2905_v40 = vsel %vm2702_vm0, %v2845_v10, 0.0 }
 0x4eb   : > { %2779 = vadd.xlane.f32.xlu1 %v2778_v46  ;;  %v2908_v46 = vsel %vm2702_vm0, %v2846_v51, 0.0 }
 0x4ed   : > { %2942 = vadd.xlane.f32.xlu0 %v2941_v41 }
 0x4ef   : > { %2945 = vadd.xlane.f32.xlu1 %v2944_v24  ;;  %v3804_v12 = vpop.f32.mrb[92].mxu0 }
 0x4f0   : > { %v2664_v30 = vadd.f32 %v3804_v12, %v5598_v55  ;;  %v2655_v13 = vpop.f32.mrb[93].mxu0 }
 0x4f1   : > { %2936 = vadd.xlane.f32.xlu0 %v2935_v43  ;;  %v3805_v26 = vpop.f32.mrb[94].mxu0  ;;  %v2656_v9 = vadd.f32 %v5598_v55, %v2655_v13 }
 0x4f2   : > { %v2667_v16 = vadd.f32 %v3805_v26, %v5598_v55  ;;  %v2658_v36 = vpop.f32.mrb[95].mxu0  ;;  %v5822_v4 = vmax.f32 %v2664_v30, 0.0 }
 0x4f3   : > { %2939 = vadd.xlane.f32.xlu1 %v2938_v39  ;;  %v2659_v45 = vadd.f32 %v5598_v55, %v2658_v36  ;;  %v5832_v56 = vmax.f32 %v2656_v9, 0.0 }
 0x4f4   : > { %6317 = vst [vmem:[#allocation15_spill] sm:$0xff] %v5822_v4  ;;  %v5827_v5 = vmax.f32 %v2667_v16, 0.0  ;;  %v2793_v35 = vsel %vm2702_vm0, %v5822_v4, 0.0  ;;  %v2861_v29 = vmul.f32 %v5822_v4, %v5822_v4 }
 0x4f5   : > { %2746 = vadd.xlane.f32.xlu0 %v2745_v61  ;;  %v5836_v31 = vmax.f32 %v2659_v45, 0.0  ;;  %v2787_v48 = vsel %vm2702_vm0, %v5832_v56, 0.0  ;;  %v2859_v55 = vmul.f32 %v5832_v56, %v5832_v56 }
 0x4f6   : > { %6318 = vst [vmem:[#allocation18_spill] sm:$0xff] %v5827_v5  ;;  %v2796_v15 = vsel %vm2702_vm0, %v5827_v5, 0.0  ;;  %v2862_v49 = vmul.f32 %v5827_v5, %v5827_v5  ;;  %v2953_v27 = vsel %vm2702_vm0, %v2861_v29, 0.0 }
 0x4f7   : > { %2749 = vadd.xlane.f32.xlu1 %v2748_v19  ;;  %6319 = vst [vmem:[#allocation17_spill] sm:$0xff] %v5836_v31  ;;  %v2790_v20 = vsel %vm2702_vm0, %v5836_v31, 0.0  ;;  %v2860_v47 = vmul.f32 %v5836_v31, %v5836_v31  ;;  %v2947_v62 = vsel %vm2702_vm0, %v2859_v55, 0.0 }
 0x4f8   : > { %v2956_v41 = vsel %vm2702_vm0, %v2862_v49, 0.0 }
 0x4f9   : > { %2794 = vadd.xlane.f32.xlu0 %v2793_v35  ;;  %v2950_v0 = vsel %vm2702_vm0, %v2860_v47, 0.0 }
 0x4fb   : > { %2797 = vadd.xlane.f32.xlu1 %v2796_v15 }
 0x4fd   : > { %2788 = vadd.xlane.f32.xlu0 %v2787_v48 }
 0x4ff   : > { %2791 = vadd.xlane.f32.xlu1 %v2790_v20 }
 0x501   : > { %2948 = vadd.xlane.f32.xlu0 %v2947_v62 }
 0x503   : > { %2951 = vadd.xlane.f32.xlu1 %v2950_v0 }
 0x505   : > { %2906 = vadd.xlane.f32.xlu0 %v2905_v40 }
 0x507   : > { %2909 = vadd.xlane.f32.xlu1 %v2908_v46 }
 0x509   : > { %2954 = vadd.xlane.f32.xlu0 %v2953_v27 }
 0x50b   : > { %2957 = vadd.xlane.f32.xlu1 %v2956_v41 }
 0x512   : > { %v2711_v8 = vpop.xlane.xlu0 %2710 }
 0x513   : > { %v2801_v60 = vmul.f32 0.015625, %v2711_v8 }
 0x514   : > { %v2714_v58 = vpop.xlane.xlu1 %2713 }
 0x515   : > { %v2802_v30 = vmul.f32 0.015625, %v2714_v58  ;;  %v2993_v43 = vmul.f32 %v2801_v60, %v2801_v60  ;;  %v3153_v49 = vsub.f32 0.0, %v2801_v60 }
 0x516   : > { %v5862_v24 = vpop.xlane.xlu0 %2704 }
 0x517   : > { %v2994_v36 = vmul.f32 %v2802_v30, %v2802_v30 }
 0x518   : > { %v5864_v12 = vpop.xlane.xlu1 %2707 }
 0x51a   : > { %v2871_v13 = vpop.xlane.xlu0 %2870 }
 0x51b   : > { %v2961_v26 = vmul.f32 0.015625, %v2871_v13 }
 0x51c   : > { %v2874_v16 = vpop.xlane.xlu1 %2873 }
 0x51d   : > { %v3025_v39 = vsub.f32 %v2961_v26, %v2993_v43  ;;  %v2962_v9 = vmul.f32 0.015625, %v2874_v16  ;;  %v3154_v43 = vsub.f32 0.0, %v2802_v30 }
 0x51e   : > { %v5866_v61 = vpop.xlane.xlu0 %2864 }
 0x51f   : > { %v3057_v45 = vmax.f32 %v3025_v39, 0.0  ;;  %v3026_v19 = vsub.f32 %v2962_v9, %v2994_v36 }
 0x520   : > { %v5868_v35 = vpop.xlane.xlu1 %2867 }
 0x521   : > { %v3089_v15 = vadd.f32 1e-05, %v3057_v45  ;;  %v3058_v48 = vmax.f32 %v3026_v19, 0.0 }
 0x522   : > { %v2723_v55 = vpop.xlane.xlu0 %2722 }
 0x523   : > { %4080 = vrsqrt.f32 %v3089_v15  ;;  %v3090_v20 = vadd.f32 1e-05, %v3058_v48  ;;  %v2805_v10 = vmul.f32 0.015625, %v2723_v55 }
 0x524   : > { %v2726_v47 = vpop.xlane.xlu1 %2725 }
 0x525   : > { %4082 = vrsqrt.f32 %v3090_v20  ;;  %v2806_v51 = vmul.f32 0.015625, %v2726_v47  ;;  %v2997_v29 = vmul.f32 %v2805_v10, %v2805_v10 }
 0x526   : > { %v5870_v62 = vpop.xlane.xlu0 %2716 }
 0x527   : > { %v2998_v8 = vmul.f32 %v2806_v51, %v2806_v51 }
 0x528   : > { %v5872_v0 = vpop.xlane.xlu1 %2719 }
 0x52a   : > { %v2883_v40 = vpop.xlane.xlu0 %2882 }
 0x52b   : > { %v2965_v46 = vmul.f32 0.015625, %v2883_v40 }
 0x52c   : > { %v2886_v27 = vpop.xlane.xlu1 %2885 }
 0x52d   : > { %v4081_v41 = vpop.eup %4080  ;;  %v3029_v58 = vsub.f32 %v2965_v46, %v2997_v29  ;;  %v2966_v13 = vmul.f32 0.015625, %v2886_v27 }
 0x52e   : > { %v5874_v26 = vpop.xlane.xlu0 %2876  ;;  %v3185_v16 = vmul.f32 %v4081_v41, %v3153_v49  ;;  %v3217_v36 = vmul.f32 %v4081_v41, %v5602_v33  ;;  %v5887_v33 = vld [vmem:[%s6201_s7] sm:$0x1] }
 0x52f   : > { %v4083_v39 = vpop.eup %4082  ;;  %v3061_v9 = vmax.f32 %v3029_v58, 0.0  ;;  %v3030_v45 = vsub.f32 %v2966_v13, %v2998_v8  ;;  %6320 = vst [vmem:[#allocation20_spill] sm:$0xff] %v5887_v33  ;;  %3756 = vmatprep.mubr.msk.bf16.mxu1 %vm2702_vm0, %v5887_v33  ;;  %v3296_v58 = vld [vmem:[#allocation2] sm:$0x1] }
 0x530   : > { %v5877_v19 = vpop.xlane.xlu1 %2879  ;;  %v3186_v15 = vmul.f32 %v4083_v39, %v3154_v43  ;;  %v3218_v48 = vmul.f32 %v4083_v39, %v5608_v18  ;;  %v5880_v60 = vadd.f32 %v3217_v36, %v3185_v16  ;;  %3299 = vperm.xlu0 %3887, %v3296_v58   ;;  %v3157_v16 = vsub.f32 0.0, %v2805_v10 }
 0x531   : > { %v3093_v55 = vadd.f32 1e-05, %v3061_v9  ;;  %v3062_v20 = vmax.f32 %v3030_v45, 0.0 }
 0x532   : > { %v2735_v47 = vpop.xlane.xlu0 %2734  ;;  %v5882_v40 = vadd.f32 %v3218_v48, %v3186_v15  ;;  %v3158_v48 = vsub.f32 0.0, %v2806_v51  ;;  %v5912_v51 = vmul.f32 0.015625, %v5862_v24 }
 0x533   : > { %4084 = vrsqrt.f32 %v3093_v55  ;;  %v3094_v30 = vadd.f32 1e-05, %v3062_v20  ;;  %v2809_v49 = vmul.f32 0.015625, %v2735_v47 }
 0x534   : > { %v2738_v29 = vpop.xlane.xlu1 %2737  ;;  %v2991_v24 = vmul.f32 %v5912_v51, %v5912_v51 }
 0x535   : > { %4086 = vrsqrt.f32 %v3094_v30  ;;  %v5897_v41 = vmul.f32 0.015625, %v2738_v29  ;;  %v3001_v13 = vmul.f32 %v2809_v49, %v2809_v49 }
 0x536   : > { %v5891_v18 = vpop.xlane.xlu0 %2728 }
 0x537   : > { %v3002_v9 = vmul.f32 %v5897_v41, %v5897_v41 }
 0x538   : > { %v5895_v27 = vpop.xlane.xlu1 %2731 }
 0x53a   : > { %v2895_v8 = vpop.xlane.xlu0 %2894 }
 0x53b   : > { %v2969_v43 = vmul.f32 0.015625, %v2895_v8 }
 0x53c   : > { %v2898_v36 = vpop.xlane.xlu1 %2897 }
 0x53d   : > { %v4085_v39 = vpop.eup %4084  ;;  %v3033_v45 = vsub.f32 %v2969_v43, %v3001_v13  ;;  %v2970_v15 = vmul.f32 0.015625, %v2898_v36  ;;  %v5917_v36 = vmul.f32 0.015625, %v5864_v12 }
 0x53e   : > { %v5901_v55 = vpop.xlane.xlu0 %2888  ;;  %v3189_v20 = vmul.f32 %v4085_v39, %v3157_v16  ;;  %v3221_v47 = vmul.f32 %v4085_v39, %v5633_v34  ;;  %v2959_v39 = vmul.f32 0.015625, %v5866_v61 }
 0x53f   : > { %v4087_v30 = vpop.eup %4086  ;;  %v3065_v29 = vmax.f32 %v3033_v45, 0.0  ;;  %v3034_v46 = vsub.f32 %v2970_v15, %v3002_v9  ;;  %v2992_v61 = vmul.f32 %v5917_v36, %v5917_v36 }
 0x540   : > { %v5904_v33 = vpop.xlane.xlu1 %2891  ;;  %v3190_v8 = vmul.f32 %v4087_v30, %v3158_v48  ;;  %v3222_v10 = vmul.f32 %v4087_v30, %v5640_v63  ;;  %v5907_v58 = vadd.f32 %v3221_v47, %v3189_v20  ;;  %v3023_v15 = vsub.f32 %v2959_v39, %v2991_v24 }
 0x541   : > { %v3097_v5 = vadd.f32 1e-05, %v3065_v29  ;;  %v3066_v4 = vmax.f32 %v3034_v46, 0.0 }
 0x542   : > { %v5909_v13 = vadd.f32 %v3222_v10, %v3190_v8  ;;  %v3161_v8 = vsub.f32 0.0, %v2809_v49 }
 0x543   : > { %4088 = vrsqrt.f32 %v3097_v5  ;;  %v3098_v43 = vadd.f32 1e-05, %v3066_v4  ;;  %v2741_v34 = vpop.xlane.xlu0 %2740  ;;  %v2960_v4 = vmul.f32 0.015625, %v5868_v35 }
 0x544   : > { %v5914_v16 = vmul.f32 0.015625, %v2741_v34  ;;  %v3055_v34 = vmax.f32 %v3023_v15, 0.0 }
 0x545   : > { %4090 = vrsqrt.f32 %v3098_v43  ;;  %v2744_v63 = vpop.xlane.xlu1 %2743  ;;  %v3024_v29 = vsub.f32 %v2960_v4, %v2992_v61 }
 0x546   : > { %v5922_v9 = vmul.f32 0.015625, %v2744_v63  ;;  %v3003_v45 = vmul.f32 %v5914_v16, %v5914_v16  ;;  %v5934_v63 = vmul.f32 0.015625, %v5872_v0  ;;  %v3087_v0 = vadd.f32 1e-05, %v3055_v34 }
 0x547   : > { %v2901_v5 = vpop.xlane.xlu0 %2900  ;;  %v3056_v31 = vmax.f32 %v3024_v29, 0.0 }
 0x548   : > { %v2971_v12 = vmul.f32 0.015625, %v2901_v5  ;;  %v3004_v20 = vmul.f32 %v5922_v9, %v5922_v9  ;;  %v3162_v5 = vsub.f32 0.0, %v5897_v41  ;;  %v2996_v41 = vmul.f32 %v5934_v63, %v5934_v63 }
 0x549   : > { %v2904_v48 = vpop.xlane.xlu1 %2903  ;;  %v3164_v34 = vsub.f32 0.0, %v5922_v9 }
 0x54a   : > { %v3035_v47 = vsub.f32 %v2971_v12, %v3003_v45  ;;  %v2972_v30 = vmul.f32 0.015625, %v2904_v48  ;;  %v2964_v45 = vmul.f32 0.015625, %v5877_v19 }
 0x54c   : > { %v3067_v10 = vmax.f32 %v3035_v47, 0.0  ;;  %v3036_v43 = vsub.f32 %v2972_v30, %v3004_v20  ;;  %v3028_v20 = vsub.f32 %v2964_v45, %v2996_v41 }
 0x54d   : > { %v4089_v35 = vpop.eup %4088 }
 0x54e   : > { %v3099_v46 = vadd.f32 1e-05, %v3067_v10  ;;  %v3068_v44 = vmax.f32 %v3036_v43, 0.0  ;;  %v3193_v39 = vmul.f32 %v4089_v35, %v3161_v8  ;;  %v3225_v24 = vmul.f32 %v4089_v35, %v5665_v37 }
 0x54f   : > { %v4091_v2 = vpop.eup %4090  ;;  %v3088_v37 = vadd.f32 1e-05, %v3056_v31  ;;  %v3163_v8 = vsub.f32 0.0, %v5914_v16  ;;  %v2963_v43 = vmul.f32 0.015625, %v5874_v26 }
 0x550   : > { %4092 = vrsqrt.f32 %v3099_v46  ;;  %v3100_v49 = vadd.f32 1e-05, %v3068_v44  ;;  %v3194_v4 = vmul.f32 %v4091_v2, %v3162_v5  ;;  %v3226_v12 = vmul.f32 %v4091_v2, %v5672_v53 }
 0x551   : > { %v5940_v61 = vadd.f32 %v3225_v24, %v3193_v39  ;;  %v5949_v44 = vmul.f32 0.015625, %v5870_v62  ;;  %v3060_v46 = vmax.f32 %v3028_v20, 0.0 }
 0x552   : > { %4094 = vrsqrt.f32 %v3100_v49  ;;  %v2759_v15 = vpop.xlane.xlu0 %2758  ;;  %v5944_v48 = vadd.f32 %v3226_v12, %v3194_v4 }
 0x553   : > { %4096 = vrsqrt.f32 %v3087_v0  ;;  %v5951_v2 = vmul.f32 0.015625, %v2759_v15  ;;  %v2995_v10 = vmul.f32 %v5949_v44, %v5949_v44  ;;  %v3092_v49 = vadd.f32 1e-05, %v3060_v46 }
 0x554   : > { %v2762_v47 = vpop.xlane.xlu1 %2761  ;;  %4098 = vrsqrt.f32 %v3088_v37 }
 0x555   : > { %v5953_v30 = vmul.f32 0.015625, %v2762_v47  ;;  %v3009_v5 = vmul.f32 %v5951_v2, %v5951_v2  ;;  %v3027_v37 = vsub.f32 %v2963_v43, %v2995_v10  ;;  %4100 = vrsqrt.f32 %v3092_v49 }
 0x556   : > { %v2753_v53 = vpop.xlane.xlu0 %2752 }
 0x557   : > { %v5959_v35 = vmul.f32 0.015625, %v2753_v53  ;;  %v3010_v16 = vmul.f32 %v5953_v30, %v5953_v30  ;;  %v3059_v49 = vmax.f32 %v3027_v37, 0.0 }
 0x558   : > { %v2756_v29 = vpop.xlane.xlu1 %2755 }
 0x559   : > { %v5966_v4 = vmul.f32 0.015625, %v2756_v29  ;;  %v3007_v20 = vmul.f32 %v5959_v35, %v5959_v35 }
 0x55a   : > { %v4093_v31 = vpop.eup %4092  ;;  %v2919_v62 = vpop.xlane.xlu0 %2918 }
 0x55b   : > { %v2977_v39 = vmul.f32 0.015625, %v2919_v62  ;;  %v3195_v24 = vmul.f32 %v4093_v31, %v3163_v8  ;;  %v3227_v26 = vmul.f32 %v4093_v31, %v5701_v17  ;;  %v3151_v17 = vsub.f32 0.0, %v5912_v51 }
 0x55c   : > { %v4095_v45 = vpop.eup %4094  ;;  %v2922_v12 = vpop.xlane.xlu1 %2921  ;;  %v5978_v31 = vmul.f32 0.015625, %v5895_v27  ;;  %v3008_v43 = vmul.f32 %v5966_v4, %v5966_v4 }
 0x55d   : > { %v3041_v0 = vsub.f32 %v2977_v39, %v3009_v5  ;;  %v2978_v41 = vmul.f32 0.015625, %v2922_v12  ;;  %v3196_v15 = vmul.f32 %v4095_v45, %v3164_v34  ;;  %v3228_v9 = vmul.f32 %v4095_v45, %v5704_v23  ;;  %v4097_v19 = vpop.eup %4096 }
 0x55e   : > { %v2913_v47 = vpop.xlane.xlu0 %2912  ;;  %v5972_v53 = vadd.f32 %v3227_v26, %v3195_v24  ;;  %v4099_v10 = vpop.eup %4098  ;;  %v3152_v24 = vsub.f32 0.0, %v5917_v36  ;;  %v2968_v45 = vmul.f32 0.015625, %v5904_v33 }
 0x55f   : > { %v3073_v46 = vmax.f32 %v3041_v0, 0.0  ;;  %v3042_v8 = vsub.f32 %v2978_v41, %v3010_v16  ;;  %v2975_v62 = vmul.f32 0.015625, %v2913_v47  ;;  %v5974_v29 = vadd.f32 %v3228_v9, %v3196_v15 }
 0x560   : > { %6321 = vst [vmem:[#allocation19_spill] sm:$0xff] %v5972_v53  ;;  %v2916_v23 = vpop.xlane.xlu1 %2915  ;;  %v5987_v41 = vmul.f32 0.015625, %v5891_v18  ;;  %v3000_v15 = vmul.f32 %v5978_v31, %v5978_v31  ;;  %v3184_v36 = vmul.f32 %v4099_v10, %v3152_v24  ;;  %v3091_v18 = vadd.f32 1e-05, %v3059_v49 }
 0x561   : > { %6322 = vst [vmem:[#allocation22_spill] sm:$0xff] %v5974_v29  ;;  %v3074_v34 = vmax.f32 %v3042_v8, 0.0  ;;  %v3039_v5 = vsub.f32 %v2975_v62, %v3007_v20  ;;  %v2976_v39 = vmul.f32 0.015625, %v2916_v23  ;;  %v3105_v16 = vadd.f32 1e-05, %v3073_v46 }
 0x562   : > { %v2771_v12 = vpop.xlane.xlu0 %2770  ;;  %v3183_v20 = vmul.f32 %v4097_v19, %v3151_v17  ;;  %v3216_v46 = vmul.f32 %v4099_v10, %v5612_v52  ;;  %v2967_v8 = vmul.f32 0.015625, %v5901_v55  ;;  %v3032_v37 = vsub.f32 %v2968_v45, %v3000_v15  ;;  %v4101_v55 = vpop.eup %4100 }
 0x563   : > { %v3106_v27 = vadd.f32 1e-05, %v3074_v34  ;;  %v3071_v26 = vmax.f32 %v3039_v5, 0.0  ;;  %v3040_v0 = vsub.f32 %v2976_v39, %v3008_v43  ;;  %v3215_v23 = vmul.f32 %v4097_v19, %v5606_v22 }
 0x564   : > { %v2774_v9 = vpop.xlane.xlu1 %2773  ;;  %v5994_v34 = vmul.f32 0.015625, %v2771_v12  ;;  %v2999_v17 = vmul.f32 %v5987_v41, %v5987_v41  ;;  %v6000_v52 = vadd.f32 %v3216_v46, %v3184_v36  ;;  %v3064_v24 = vmax.f32 %v3032_v37, 0.0 }
 0x565   : > { %4102 = vrsqrt.f32 %v3106_v27  ;;  %v3103_v33 = vadd.f32 1e-05, %v3071_v26  ;;  %v3072_v47 = vmax.f32 %v3040_v0, 0.0  ;;  %v5998_v39 = vmul.f32 0.015625, %v2774_v9 }
 0x566   : > { %4104 = vrsqrt.f32 %v3105_v16  ;;  %v2765_v62 = vpop.xlane.xlu0 %2764  ;;  %v3031_v10 = vsub.f32 %v2967_v8, %v2999_v17  ;;  %v6002_v16 = vadd.f32 %v3215_v23, %v3183_v20  ;;  %v3013_v22 = vmul.f32 %v5994_v34, %v5994_v34 }
 0x567   : > { %4106 = vrsqrt.f32 %v3103_v33  ;;  %v3104_v43 = vadd.f32 1e-05, %v3072_v47  ;;  %v6006_v19 = vmul.f32 0.015625, %v2765_v62  ;;  %v3155_v49 = vsub.f32 0.0, %v5949_v44 }
 0x568   : > { %v2768_v5 = vpop.xlane.xlu1 %2767  ;;  %v3156_v27 = vsub.f32 0.0, %v5934_v63  ;;  %v3014_v15 = vmul.f32 %v5998_v39, %v5998_v39  ;;  %v3279_v36 = vpack.c.bf16 %v6000_v52, %v6002_v16  ;;  %v3063_v33 = vmax.f32 %v3031_v10, 0.0 }
 0x569   : > { %4108 = vrsqrt.f32 %v3104_v43  ;;  %v6010_v26 = vmul.f32 0.015625, %v2768_v5  ;;  %v3096_v47 = vadd.f32 1e-05, %v3064_v24  ;;  %v3170_v46 = vsub.f32 0.0, %v5953_v30 }
 0x56a   : > { %v2931_v45 = vpop.xlane.xlu0 %2930  ;;  %4110 = vrsqrt.f32 %v3091_v18  ;;  %v3188_v37 = vmul.f32 %v4101_v55, %v3156_v27  ;;  %v3011_v63 = vmul.f32 %v6006_v19, %v6006_v19  ;;  %v3169_v17 = vsub.f32 0.0, %v5951_v2 }
 0x56b   : > { %v2981_v12 = vmul.f32 0.015625, %v2931_v45  ;;  %v3167_v5 = vsub.f32 0.0, %v5959_v35  ;;  %v3168_v52 = vsub.f32 0.0, %v5966_v4  ;;  %v3012_v10 = vmul.f32 %v6010_v26, %v6010_v26 }
 0x56c   : > { %v2934_v0 = vpop.xlane.xlu1 %2933  ;;  %4112 = vrsqrt.f32 %v3096_v47 }
 0x56d   : > { %v3045_v9 = vsub.f32 %v2981_v12, %v3013_v22  ;;  %v2982_v20 = vmul.f32 0.015625, %v2934_v0 }
 0x56e   : > { %v2925_v8 = vpop.xlane.xlu0 %2924 }
 0x56f   : > { %v4103_v44 = vpop.eup %4102  ;;  %v3077_v62 = vmax.f32 %v3045_v9, 0.0  ;;  %v3046_v23 = vsub.f32 %v2982_v20, %v3014_v15  ;;  %v2979_v18 = vmul.f32 0.015625, %v2925_v8 }
 0x570   : > { %v4105_v43 = vpop.eup %4104  ;;  %v2928_v30 = vpop.xlane.xlu1 %2927  ;;  %v3202_v12 = vmul.f32 %v4103_v44, %v3170_v46  ;;  %v3234_v2 = vmul.f32 %v4103_v44, %v5724_v11 }
 0x571   : > { %v4107_v24 = vpop.eup %4106  ;;  %v3078_v45 = vmax.f32 %v3046_v23, 0.0  ;;  %v3043_v16 = vsub.f32 %v2979_v18, %v3011_v63  ;;  %v2980_v22 = vmul.f32 0.015625, %v2928_v30  ;;  %v3109_v27 = vadd.f32 1e-05, %v3077_v62 }
 0x572   : > { %v2783_v0 = vpop.xlane.xlu0 %2782  ;;  %v3199_v15 = vmul.f32 %v4107_v24, %v3167_v5  ;;  %v3231_v9 = vmul.f32 %v4107_v24, %v5722_v57  ;;  %v3201_v23 = vmul.f32 %v4105_v43, %v3169_v17  ;;  %v3233_v63 = vmul.f32 %v4105_v43, %v5718_v50 }
 0x573   : > { %v4109_v20 = vpop.eup %4108  ;;  %v3110_v35 = vadd.f32 1e-05, %v3078_v45  ;;  %v3075_v4 = vmax.f32 %v3043_v16, 0.0  ;;  %v3044_v8 = vsub.f32 %v2980_v22, %v3012_v10  ;;  %v3220_v57 = vmul.f32 %v4101_v55, %v5644_v3 }
 0x574   : > { %v2786_v51 = vpop.xlane.xlu1 %2785  ;;  %v3200_v53 = vmul.f32 %v4109_v20, %v3168_v52  ;;  %v3232_v29 = vmul.f32 %v4109_v20, %v5728_v38  ;;  %v4111_v46 = vpop.eup %4110  ;;  %v3263_v44 = vadd.f32 %v3231_v9, %v3199_v15  ;;  %v3266_v5 = vadd.f32 %v3234_v2, %v3202_v12 }
 0x575   : > { %4114 = vrsqrt.f32 %v3110_v35  ;;  %v3107_v62 = vadd.f32 1e-05, %v3075_v4  ;;  %v3076_v18 = vmax.f32 %v3044_v8, 0.0  ;;  %v3095_v30 = vadd.f32 1e-05, %v3063_v33 }
 0x576   : > { %4116 = vrsqrt.f32 %v3109_v27  ;;  %v2777_v11 = vpop.xlane.xlu0 %2776  ;;  %v3264_v47 = vadd.f32 %v3232_v29, %v3200_v53  ;;  %v6029_v52 = vmul.f32 0.015625, %v2783_v0  ;;  %v3265_v24 = vadd.f32 %v3233_v63, %v3201_v23  ;;  %v4113_v12 = vpop.eup %4112 }
 0x577   : > { %4118 = vrsqrt.f32 %v3107_v62  ;;  %v3108_v10 = vadd.f32 1e-05, %v3076_v18  ;;  %v3187_v50 = vmul.f32 %v4111_v46, %v3155_v49  ;;  %v3219_v43 = vmul.f32 %v4111_v46, %v5638_v14 }
 0x578   : > { %v2780_v38 = vpop.xlane.xlu1 %2779  ;;  %v3287_v17 = vpack.c.bf16 %v3264_v47, %v3263_v44  ;;  %v6032_v45 = vmul.f32 0.015625, %v2786_v51  ;;  %v3310_v53 = vsel %vm2702_vm0, %v3279_v36, 0  ;;  %v3288_v29 = vpack.c.bf16 %v3266_v5, %v3265_v24 }
 0x579   : > { %4120 = vrsqrt.f32 %v3108_v10  ;;  %v6036_v55 = vadd.f32 %v3220_v57, %v3188_v37  ;;  %v3017_v33 = vmul.f32 %v6029_v52, %v6029_v52  ;;  %v6040_v16 = vmul.f32 0.015625, %v2777_v11 }
 0x57a   : > { %3806 = vmatprep.subr.msk.bf16.mxu1 %vm2702_vm0, %v3287_v17  ;;  %v2943_v3 = vpop.xlane.xlu0 %2942  ;;  %4122 = vrsqrt.f32 %v3095_v30  ;;  %v6042_v14 = vmul.f32 0.015625, %v2780_v38  ;;  %v6045_v22 = vadd.f32 %v3219_v43, %v3187_v50  ;;  %v3018_v36 = vmul.f32 %v6032_v45, %v6032_v45 }
 0x57b   : > { %v2985_v49 = vmul.f32 0.015625, %v2943_v3  ;;  %3741 = vmatpush3.bf16.xpose.msra.mxu1 %v3310_v53  ;;  %v6323_v0 = vpack.c.bf16 %v5882_v40, %v5880_v60  ;;  %v3159_v9 = vsub.f32 0.0, %v5987_v41  ;;  %v3160_v2 = vsub.f32 0.0, %v5978_v31 }
 0x57c   : > { %v2946_v51 = vpop.xlane.xlu1 %2945  ;;  %3807 = vmatprep.subr.msk.bf16.mxu1 %vm2702_vm0, %v3288_v29  ;;  %v3174_v20 = vsub.f32 0.0, %v5998_v39  ;;  %v3281_v4 = vpack.c.bf16 %v6036_v55, %v6045_v22  ;;  %v3015_v23 = vmul.f32 %v6040_v16, %v6040_v16  ;;  %v3173_v40 = vsub.f32 0.0, %v5994_v34 }
 0x57d   : > { %v3049_v37 = vsub.f32 %v2985_v49, %v3017_v33  ;;  %v2986_v27 = vmul.f32 0.015625, %v2946_v51  ;;  %v3313_v15 = vsel %vm2702_vm0, %v6323_v0, 0  ;;  %v3171_v41 = vsub.f32 0.0, %v6006_v19 }
 0x57e   : > { %v2937_v35 = vpop.xlane.xlu0 %2936  ;;  %v3172_v31 = vsub.f32 0.0, %v6010_v26  ;;  %v3016_v39 = vmul.f32 %v6042_v14, %v6042_v14  ;;  %v3192_v43 = vmul.f32 %v4113_v12, %v3160_v2 }
 0x57f   : > { %v4115_v8 = vpop.eup %4114  ;;  %v3081_v63 = vmax.f32 %v3049_v37, 0.0  ;;  %v3050_v46 = vsub.f32 %v2986_v27, %v3018_v36  ;;  %v2983_v62 = vmul.f32 0.015625, %v2937_v35 }
 0x580   : > { %v4117_v60 = vpop.eup %4116  ;;  %v2940_v18 = vpop.xlane.xlu1 %2939  ;;  %v3206_v5 = vmul.f32 %v4115_v8, %v3174_v20  ;;  %v3238_v34 = vmul.f32 %v4115_v8, %v5756_v32  ;;  %v3316_v8 = vsel %vm2702_vm0, %v3281_v4, 0  ;;  %v6324_v4 = vpack.c.bf16 %v5909_v13, %v5907_v58 }
 0x581   : > { %v4119_v57 = vpop.eup %4118  ;;  %v3082_v11 = vmax.f32 %v3050_v46, 0.0  ;;  %v3047_v44 = vsub.f32 %v2983_v62, %v3015_v23  ;;  %v2984_v47 = vmul.f32 0.015625, %v2940_v18  ;;  %v3113_v30 = vadd.f32 1e-05, %v3081_v63 }
 0x582   : > { %v2747_v10 = vpop.xlane.xlu0 %2746  ;;  %v3203_v38 = vmul.f32 %v4119_v57, %v3171_v41  ;;  %v3235_v17 = vmul.f32 %v4119_v57, %v5754_v6  ;;  %v3205_v55 = vmul.f32 %v4117_v60, %v3173_v40  ;;  %v3237_v33 = vmul.f32 %v4117_v60, %v5749_v42 }
 0x583   : > { %v4121_v24 = vpop.eup %4120  ;;  %v3114_v19 = vadd.f32 1e-05, %v3082_v11  ;;  %v3079_v50 = vmax.f32 %v3047_v44, 0.0  ;;  %v3048_v26 = vsub.f32 %v2984_v47, %v3016_v39  ;;  %3743 = vmatpush3.bf16.xpose.msra.mxu1 %v3313_v15  ;;  %v3224_v6 = vmul.f32 %v4113_v12, %v5676_v1 }
 0x584   : > { %v2750_v3 = vpop.xlane.xlu1 %2749  ;;  %v3204_v53 = vmul.f32 %v4121_v24, %v3172_v31  ;;  %v3236_v29 = vmul.f32 %v4121_v24, %v5760_v7  ;;  %v4123_v49 = vpop.eup %4122  ;;  %v3267_v36 = vadd.f32 %v3235_v17, %v3203_v38  ;;  %v3270_v27 = vadd.f32 %v3238_v34, %v3206_v5 }
 0x585   : > { %4124 = vrsqrt.f32 %v3114_v19  ;;  %v3111_v51 = vadd.f32 1e-05, %v3079_v50  ;;  %v3080_v22 = vmax.f32 %v3048_v26, 0.0  ;;  %v3269_v20 = vadd.f32 %v3237_v33, %v3205_v55 }
 0x586   : > { %4126 = vrsqrt.f32 %v3113_v30  ;;  %v2795_v32 = vpop.xlane.xlu0 %2794  ;;  %v3268_v37 = vadd.f32 %v3236_v29, %v3204_v53  ;;  %v3191_v7 = vmul.f32 %v4123_v49, %v3159_v9  ;;  %v3223_v35 = vmul.f32 %v4123_v49, %v5670_v54 }
 0x587   : > { %4128 = vrsqrt.f32 %v3111_v51  ;;  %v3112_v0 = vadd.f32 1e-05, %v3080_v22  ;;  %v3290_v1 = vpack.c.bf16 %v3270_v27, %v3269_v20  ;;  %v6073_v12 = vadd.f32 %v3224_v6, %v3192_v43 }
 0x588   : > { %v2798_v15 = vpop.xlane.xlu1 %2797  ;;  %v3289_v2 = vpack.c.bf16 %v3268_v37, %v3267_v36  ;;  %v6077_v63 = vmul.f32 0.015625, %v2747_v10  ;;  %v6079_v46 = vmul.f32 0.015625, %v2750_v3  ;;  %v3255_v54 = vadd.f32 %v3223_v35, %v3191_v7 }
 0x589   : > { %4130 = vrsqrt.f32 %v3112_v0  ;;  %v3319_v40 = vsel %vm2702_vm0, %v6324_v4, 0  ;;  %v3177_v39 = vsub.f32 0.0, %v6029_v52  ;;  %v3178_v18 = vsub.f32 0.0, %v6032_v45 }
 0x58a   : > { %3808 = vmatprep.subr.msk.bf16.mxu1 %vm2702_vm0, %v3289_v2  ;;  %v2789_v42 = vpop.xlane.xlu0 %2788  ;;  %v3283_v41 = vpack.c.bf16 %v6073_v12, %v3255_v54  ;;  %v3175_v47 = vsub.f32 0.0, %v6040_v16  ;;  %v3176_v5 = vsub.f32 0.0, %v6042_v14  ;;  %v3005_v58 = vmul.f32 %v6077_v63, %v6077_v63 }
 0x58b   : > { %v6075_v23 = vmul.f32 0.015625, %v2789_v42  ;;  %3745 = vmatpush3.bf16.xpose.msra.mxu1 %v3316_v8  ;;  %v3006_v13 = vmul.f32 %v6079_v46, %v6079_v46  ;;  %v6099_v52 = vmul.f32 0.015625, %v2795_v32  ;;  %v6105_v26 = vmul.f32 0.015625, %v2798_v15 }
 0x58c   : > { %v2792_v62 = vpop.xlane.xlu1 %2791  ;;  %3809 = vmatprep.subr.msk.bf16.mxu1 %vm2702_vm0, %v3290_v1  ;;  %v3322_v54 = vsel %vm2702_vm0, %v3283_v41, 0  ;;  %v6325_v41 = vpack.c.bf16 %v5944_v48, %v5940_v61 }
 0x58d   : > { %v6082_v9 = vmul.f32 0.015625, %v2792_v62  ;;  %v3019_v57 = vmul.f32 %v6075_v23, %v6075_v23 }
 0x58e   : > { %v2949_v60 = vpop.xlane.xlu0 %2948 }
 0x58f   : > { %v4125_v31 = vpop.eup %4124  ;;  %v2987_v11 = vmul.f32 0.015625, %v2949_v60  ;;  %v3020_v45 = vmul.f32 %v6082_v9, %v6082_v9 }
 0x590   : > { %v4127_v44 = vpop.eup %4126  ;;  %v2952_v30 = vpop.xlane.xlu1 %2951  ;;  %v3210_v14 = vmul.f32 %v4125_v31, %v3178_v18  ;;  %v3242_v19 = vmul.f32 %v4125_v31, %v5788_v21  ;;  %v3021_v21 = vmul.f32 %v6099_v52, %v6099_v52 }
 0x591   : > { %v4129_v10 = vpop.eup %4128  ;;  %v3051_v38 = vsub.f32 %v2987_v11, %v3019_v57  ;;  %v2988_v17 = vmul.f32 0.015625, %v2952_v30  ;;  %v3209_v49 = vmul.f32 %v4127_v44, %v3177_v39  ;;  %v3241_v51 = vmul.f32 %v4127_v44, %v5781_v25 }
 0x592   : > { %v2907_v34 = vpop.xlane.xlu0 %2906  ;;  %v3207_v24 = vmul.f32 %v4129_v10, %v3175_v47  ;;  %v3239_v16 = vmul.f32 %v4129_v10, %v5786_v28  ;;  %v3274_v0 = vadd.f32 %v3242_v19, %v3210_v14  ;;  %v3179_v11 = vsub.f32 0.0, %v6075_v23  ;;  %v6327_v19 = vld [vmem:[#allocation14_spill] sm:$0xff] }
 0x593   : > { %v4131_v50 = vpop.eup %4130  ;;  %v3083_v43 = vmax.f32 %v3051_v38, 0.0  ;;  %v3052_v3 = vsub.f32 %v2988_v17, %v3020_v45  ;;  %v2973_v53 = vmul.f32 0.015625, %v2907_v34  ;;  %3747 = vmatpush3.bf16.xpose.msra.mxu1 %v3319_v40  ;;  %v3273_v42 = vadd.f32 %v3241_v51, %v3209_v49  ;;  %v6326_v45 = vld [vmem:[#allocation17_spill] sm:$0xff] }
 0x594   : > { %v2910_v29 = vpop.xlane.xlu1 %2909  ;;  %v3208_v55 = vmul.f32 %v4131_v50, %v3176_v5  ;;  %v3240_v33 = vmul.f32 %v4131_v50, %v5792_v59  ;;  %v3271_v37 = vadd.f32 %v3239_v16, %v3207_v24  ;;  %v3022_v59 = vmul.f32 %v6105_v26, %v6105_v26 }
 0x595   : > { %v3115_v22 = vadd.f32 1e-05, %v3083_v43  ;;  %v3084_v6 = vmax.f32 %v3052_v3, 0.0  ;;  %v3037_v28 = vsub.f32 %v2973_v53, %v3005_v58  ;;  %v2974_v32 = vmul.f32 0.015625, %v2910_v29  ;;  %v6328_v43 = vld [vmem:[#allocation16_spill] sm:$0xff] }
 0x596   : > { %v2955_v36 = vpop.xlane.xlu0 %2954  ;;  %v3272_v27 = vadd.f32 %v3240_v33, %v3208_v55  ;;  %v3292_v60 = vpack.c.bf16 %v3274_v0, %v3273_v42  ;;  %v3180_v47 = vsub.f32 0.0, %v6082_v9  ;;  %v3325_v5 = vsel %vm2702_vm0, %v6325_v41, 0  ;;  %v6330_v55 = vld [vmem:[#allocation19_spill] sm:$0xff] }
 0x597   : > { %4132 = vrsqrt.f32 %v3115_v22  ;;  %v3116_v15 = vadd.f32 1e-05, %v3084_v6  ;;  %v3069_v2 = vmax.f32 %v3037_v28, 0.0  ;;  %v3038_v20 = vsub.f32 %v2974_v32, %v3006_v13  ;;  %v6332_v6 = vld [vmem:[#allocation15_spill] sm:$0xff] }
 0x598   : > { %v2989_v7 = vmul.f32 0.015625, %v2955_v36  ;;  %v2958_v25 = vpop.xlane.xlu1 %2957  ;;  %v3291_v35 = vpack.c.bf16 %v3272_v27, %v3271_v37  ;;  %v3165_v23 = vsub.f32 0.0, %v6077_v63  ;;  %v3166_v34 = vsub.f32 0.0, %v6079_v46  ;;  %v6329_v63 = vld [vmem:[#allocation22_spill] sm:$0xff] }
 0x599   : > { %4134 = vrsqrt.f32 %v3116_v15  ;;  %v3101_v8 = vadd.f32 1e-05, %v3069_v2  ;;  %v3070_v1 = vmax.f32 %v3038_v20, 0.0  ;;  %v2990_v12 = vmul.f32 0.015625, %v2958_v25  ;;  %v6334_v2 = vld [vmem:[#allocation20_spill] sm:$0xff]  ;;  %v6335_v25 = vld [vmem:[#allocation13_spill] sm:$0xff] }
 0x59a   : > { %v3053_v62 = vsub.f32 %v2989_v7, %v3021_v21  ;;  %3810 = vmatprep.subr.msk.bf16.mxu1 %vm2702_vm0, %v3291_v35  ;;  %v3181_v3 = vsub.f32 0.0, %v6099_v52  ;;  %v3182_v29 = vsub.f32 0.0, %v6105_v26  ;;  %v6331_v46 = vpack.c.bf16 %v6329_v63, %v6330_v55  ;;  %v6333_v21 = vld [vmem:[#allocation18_spill] sm:$0xff] }
 0x59b   : > { %4136 = vrsqrt.f32 %v3101_v8  ;;  %v3102_v4 = vadd.f32 1e-05, %v3070_v1  ;;  %v3054_v40 = vsub.f32 %v2990_v12, %v3022_v59  ;;  %3749 = vmatpush3.bf16.xpose.msra.mxu1 %v3322_v54  ;;  %v4310_v20 = vmov 1966171168  }
 0x59c   : > { %v3085_v31 = vmax.f32 %v3053_v62, 0.0  ;;  %3811 = vmatprep.subr.msk.bf16.mxu1 %vm2702_vm0, %v3292_v60  ;;  %v3328_v33 = vsel %vm2702_vm0, %v6331_v46, 0  ;;  %v3402_v59 = vunpack.c.l.s4 %v4310_v20  ;;  %v6336_v35 = vsub.s32 0, %v6335_v25 }
 0x59d   : > { %4138 = vrsqrt.f32 %v3102_v4  ;;  %v3086_v39 = vmax.f32 %v3054_v40, 0.0 }
 0x59e   : > { %v3117_v18 = vadd.f32 1e-05, %v3085_v31  ;;  %v3403_v8 = vunpack.c.0.s8 %v3402_v59 }
 0x59f   : > { %v3118_v57 = vadd.f32 1e-05, %v3086_v39 }
 0x5a0   : > { %4140 = vrsqrt.f32 %v3117_v18  ;;  %v3406_v54 = vsub.s32 %v3403_v8, %v6335_v25  ;;  %v6337_v18 = vlaneseq }
 0x5a1   : > { %v4133_v44 = vpop.eup %4132  ;;  %4142 = vrsqrt.f32 %v3118_v57 }
 0x5a2   : > { %v3211_v58 = vmul.f32 %v4133_v44, %v3179_v11  ;;  %v3243_v13 = vmul.f32 %v4133_v44, %v5832_v56  ;;  %vm3418_vm1 = vcmp.lt.s32.totalorder %v6337_v18, 256 }
 0x5a3   : > { %v4135_v30 = vpop.eup %4134  ;;  %3751 = vmatpush3.bf16.xpose.msra.mxu1 %v3325_v5 }
 0x5a4   : > { %v3212_v10 = vmul.f32 %v4135_v30, %v3180_v47  ;;  %v3244_v38 = vmul.f32 %v4135_v30, %v6326_v45  ;;  %v3275_v24 = vadd.f32 %v3243_v13, %v3211_v58 }
 0x5a5   : > { %v4137_v17 = vpop.eup %4136 }
 0x5a6   : > { %v3276_v9 = vadd.f32 %v3244_v38, %v3212_v10  ;;  %v3197_v14 = vmul.f32 %v4137_v17, %v3165_v23  ;;  %v3229_v50 = vmul.f32 %v4137_v17, %v6327_v19 }
 0x5a7   : > { %v4139_v16 = vpop.eup %4138 }
 0x5a8   : > { %v3293_v61 = vpack.c.bf16 %v3276_v9, %v3275_v24  ;;  %v3198_v48 = vmul.f32 %v4139_v16, %v3166_v34  ;;  %v3230_v56 = vmul.f32 %v4139_v16, %v6328_v43  ;;  %v3261_v36 = vadd.f32 %v3229_v50, %v3197_v14 }
 0x5aa   : > { %v4141_v53 = vpop.eup %4140  ;;  %3812 = vmatprep.subr.msk.bf16.mxu1 %vm2702_vm0, %v3293_v61  ;;  %v3262_v49 = vadd.f32 %v3230_v56, %v3198_v48 }
 0x5ab   : > { %v4143_v51 = vpop.eup %4142  ;;  %3753 = vmatpush3.bf16.xpose.msra.mxu1 %v3328_v33  ;;  %v3213_v22 = vmul.f32 %v4141_v53, %v3181_v3  ;;  %v3245_v28 = vmul.f32 %v4141_v53, %v6332_v6 }
 0x5ac   : > { %v3214_v32 = vmul.f32 %v4143_v51, %v3182_v29  ;;  %v3246_v52 = vmul.f32 %v4143_v51, %v6333_v21  ;;  %v3286_v27 = vpack.c.bf16 %v3262_v49, %v3261_v36 }
 0x5ad   : > { %v3277_v37 = vadd.f32 %v3245_v28, %v3213_v22 }
 0x5ae   : > { %v3278_v26 = vadd.f32 %v3246_v52, %v3214_v32  ;;  %v3331_v15 = vsel %vm2702_vm0, %v3286_v27, 0 }
 0x5af   : > { %v3300_v7 = vpop.permute.xlu0 %3299 }
 0x5b0   : > { %v3294_v0 = vpack.c.bf16 %v3278_v26, %v3277_v37  ;;  %v3305_v42 = vrot.slane %v3300_v7, %v6336_v35 }
 0x5b2   : > { %3813 = vmatprep.subr.msk.bf16.mxu1 %vm2702_vm0, %v3294_v0 }
 0x5b3   : > { %3755 = vmatpush3.bf16.xpose.msra.mxu1 %v3331_v15 }
 0x5ba   : > { %3757 = vmatmul.mubr.msk.bf16.vlgmr.msra.gmra.mrb[64].mxu1 %vm2702_vm0, %v6334_v2 }
 0x68d   : > { %v3391_v1 = vpop.f32.mrb[64].mxu1 }
 0x68e   : > { %v3393_v12 = vpop.f32.mrb[65].mxu1  ;;  %v3392_v62 = vadd.f32 %v3391_v1, %v3305_v42 }
 0x68f   : > { %v3394_v60 = vadd.f32 %v3393_v12, %v3305_v42  ;;  %v3395_v4 = vpop.f32.mrb[66].mxu1 }
 0x690   : > { %v3396_v40 = vpop.f32.mrb[67].mxu1 }
 0x691   : > { %v3400_v31 = vcombine.low %v3392_v62, %v3394_v60 }
 0x693   : > { %v3407_v39 = vrot.slane %v3400_v31, %v3406_v54 }
 0x695   : > { %v3414_v57 = vrot.slane %v3407_v39, %v3406_v54 }
 0x697   : > { %3420 = vst.msk [vmem:[%s381_s15] sm:$0x3] %vm3418_vm1, %v3414_v57 }
 0x698   : > { %4243 = shalt.err (!%p4240_p2)
}
 0x699   : > { %s4244_s24 = scalar_lea.hbm %s6150_s20, 32  ;;  %s4248_s18 = scalar_lea.hbm %s6203_s9, 64 }
 0x69a   : > { %p4245_p13 = scmp.ne.s32.totalorder %s6150_s20, %s4244_s24  ;;  %p4249_p4 = scmp.lt.u32.totalorder %s6150_s20, %s6203_s9 }
 0x69b   : > { %p4250_p7 = scmp.lt.u32.totalorder %s4248_s18, %s4244_s24  ;;  %p4252_p11 = scmp.lt.u32.totalorder %s4244_s24, %s6150_s20 }
 0x69c   : > { %p4246_p6 = pnand %p4245_p13, %p6338_p0 }
 0x69d   : > { %p4251_p8 = por %p4250_p7, %p4249_p4 }
 0x69e   : > { %p4247_p10 = pneg %p4246_p6 }
 0x69f   : > { %p4253_p1 = por %p4252_p11, %p4251_p8 }
 0x6a1   : > { %p4254_p3 = pnand %p4253_p1, %p4247_p10 }
 0x6a3   : > { %4257 = shalt.err (!%p4254_p3)
}
 0x6a4   : > { %3824 = dma.vmem_to_hbm [thread:$0]  (%p6338_p0), %s6152_s22, 32, %s6150_s20, %s3422_s19  }
 0x6a5 PF: > { %s3448_s27 = sand.u32 1, %s4288_s11   ;;  %p6339_p5 = scmp.ne.s32.totalorder %s6249_s17, 0 }
 0x6a6   : > { %p6340_p9 = scmp.ge.s32.totalorder %s4300_s14, 2  ;;  %s3449_s10 = scalar_lea.sflag [#allocation5], %s3448_s27 }
 0x6a8   : > { %p3838_p12 = pnand %p6340_p9, %p6339_p5 }
 0x6aa   : > { %4283 = dma.done.wait (!%p3838_p12), %s3449_s10, 32  }
 0x6ab   : > { %4285 = vsyncadd (!%p3838_p12), %s3449_s10, 4294967264  ;;  %p25_p2 = scmp.ge.s32.totalorder %s4478_s25, 4   ;;  %s6341_s11 = smov %s4292_s12 }
 0x6ac   : > { %s6342_s12 = smov %s4296_s13  ;;  %s6343_s13 = smov %s4487_s28 }
 0x6ad   : > { %s6344_s14 = smov %s4478_s25  ;;  %27 = sbr.rel (!%p25_p2) target bundleno = 9 (0x9), region = 109 }
 0x6b4   :  { %3454 = vsyncpa [#allocation4], 1 }
 0x6b5   :  { %3456 = vsyncpa [#allocation4 + $0x1], 1 }
 0x6b6   :  { %3457 = vsyncpa [#allocation7], 1 }
 0x6b7   :  { %3458 = vsyncpa [#allocation5], 1 }
 0x6b8   :  { %3460 = vsyncpa [#allocation5 + $0x1], 1 }

</bundles_post_ra>
